<compile_context>
chip_gen: v6e
topology: v6e:2x2x1
jax: 0.10.0
libtpu: 0.0.40
codegen_flags: <defaults>
</compile_context>

<pallas_src>
import jax
import jax.numpy as jnp
from jax.experimental import pallas as pl
from jax.experimental.pallas import tpu as pltpu

D_IN = 768        # fc1 in_features / fc2 out_features
D_HID = 1380      # fc1 out_features / fc2 in_features (module spec)
D_HID_PAD = 1408  # padded hidden dim: next multiple of 128 (11 * 128)
TM_MAX = 512      # batch-tile cap: good for v6e/v7x, still comfortable on v5e's VMEM


def _text_encoder_kernel(scales_ref, x_ref, w1_ref, b1_ref, w2_ref, b2_ref, o_ref):
    # scales_ref: SMEM (2,) f32 = [ratio, 1 - ratio]
    # x_ref:  (tm, 768) f32
    # w1_ref: (768, 1408) bf16   b1_ref: (1, 1408) f32
    # w2_ref: (1408, 768) bf16   b2_ref: (1, 768)  f32
    r = scales_ref[0]
    one_minus_r = scales_ref[1]

    x = x_ref[...]  # f32, also used for the residual path (exact)

    # fc1 + ReLU: bf16 MXU operands, f32 accumulation.
    h = jnp.dot(x.astype(jnp.bfloat16), w1_ref[...],
                preferred_element_type=jnp.float32) + b1_ref[...]
    h = jnp.maximum(h, 0.0)

    # fc2: bf16 MXU operands, f32 accumulation. Padded hidden rows of W2 are zero,
    # so the 1380 -> 1408 padding does not change the result.
    y = jnp.dot(h.astype(jnp.bfloat16), w2_ref[...],
                preferred_element_type=jnp.float32) + b2_ref[...]

    # residual mix: ratio * fc2(relu(fc1(x))) + (1 - ratio) * x
    o_ref[...] = (r * y + one_minus_r * x).astype(o_ref.dtype)


def prepare_params(w1_t, b1, w2_t, b2):
    """Pad hidden dim 1380 -> 1408 (zeros) and cast weights to bf16 (done once)."""
    pad = D_HID_PAD - D_HID
    w1p = jnp.pad(w1_t, ((0, 0), (0, pad))).astype(jnp.bfloat16)           # (768, 1408)
    b1p = jnp.pad(b1, (0, pad)).reshape(1, D_HID_PAD).astype(jnp.float32)  # (1, 1408)
    w2p = jnp.pad(w2_t, ((0, pad), (0, 0))).astype(jnp.bfloat16)           # (1408, 768)
    b2p = b2.reshape(1, D_IN).astype(jnp.float32)                          # (1, 768)
    return w1p, b1p, w2p, b2p


def _round_up(x, m):
    return -(-x // m) * m


def _select_tm(n):
    """Batch tile: >=2 grid steps whenever n > 8 (v7x megacore), 8-sublane aligned,
    capped at TM_MAX so VMEM stays small on v5e and grid overhead is amortized on
    v6e/v7x."""
    return max(8, min(TM_MAX, _round_up(pl.cdiv(n, 2), 8)))


def text_encoder_forward(x, w1p, b1p, w2p, b2p, ratio, *, tm=None):
    """x: [N, 768]; params from prepare_params(); returns [N, 768]."""
    N, d = x.shape
    assert d == D_IN
    if tm is None:
        tm = _select_tm(N)

    # Ceil-pad the batch so the grid is exact; pad rows are dropped afterwards.
    n_pad = (-N) % tm
    x_in = jnp.pad(x, ((0, n_pad), (0, 0))) if n_pad else x
    n_total = N + n_pad

    scales = jnp.array([ratio, 1.0 - ratio], dtype=jnp.float32)

    out = pl.pallas_call(
        _text_encoder_kernel,
        out_shape=jax.ShapeDtypeStruct((n_total, D_IN), x.dtype),
        grid_spec=pltpu.PrefetchScalarGridSpec(
            num_scalar_prefetch=0,
            grid=(n_total // tm,),
            in_specs=[
                pl.BlockSpec(memory_space=pltpu.MemorySpace.SMEM),  # [ratio, 1-ratio]
                pl.BlockSpec((tm, D_IN), lambda i: (i, 0)),         # x tile (pipelined)
                # Resident params: constant index_map -> single-buffered to reclaim VMEM.
                pl.BlockSpec((D_IN, D_HID_PAD), lambda i: (0, 0),
                             pipeline_mode=pl.Buffered(1)),         # W1^T
                pl.BlockSpec((1, D_HID_PAD), lambda i: (0, 0),
                             pipeline_mode=pl.Buffered(1)),         # b1
                pl.BlockSpec((D_HID_PAD, D_IN), lambda i: (0, 0),
                             pipeline_mode=pl.Buffered(1)),         # W2^T
                pl.BlockSpec((1, D_IN), lambda i: (0, 0),
                             pipeline_mode=pl.Buffered(1)),         # b2
            ],
            out_specs=pl.BlockSpec((tm, D_IN), lambda i: (i, 0)),
        ),
        compiler_params=pltpu.CompilerParams(
            dimension_semantics=("parallel",),
            vmem_limit_bytes=48 << 20,   # headroom below v7x's 64 MiB physical VMEM
        ),
    )(scales, x_in, w1p, b1p, w2p, b2p)

    return out[:N] if n_pad else out


def reference_forward(x, w1_t, b1, w2_t, b2, ratio):
    h = jnp.maximum(x @ w1_t + b1, 0.0)
    y = h @ w2_t + b2
    return ratio * y + (1.0 - ratio) * x


if __name__ == "__main__":
    key = jax.random.PRNGKey(0)
    k_x, k_w1, k_b1, k_w2, k_b2 = jax.random.split(key, 5)

    ratio = 0.2

    # Deterministic synthetic params (torch Linear shapes: W1 (1380,768), W2 (768,1380)),
    # stored pre-transposed as [in, out].
    w1_t = jax.random.normal(k_w1, (D_IN, D_HID), dtype=jnp.float32) * 0.02
    b1 = jax.random.normal(k_b1, (D_HID,), dtype=jnp.float32) * 0.02
    w2_t = jax.random.normal(k_w2, (D_HID, D_IN), dtype=jnp.float32) * 0.02
    b2 = jax.random.normal(k_b2, (D_IN,), dtype=jnp.float32) * 0.02

    params = prepare_params(w1_t, b1, w2_t, b2)

    # Small batch (feature dims 768/1380 are fixed by the module). N=16 -> tm=8, 2 grid
    # steps; N=200 -> tm=104, 2 grid steps with 8 pad rows (exercises the padding path).
    for N in (16, 200):
        x = jax.random.normal(k_x, (N, D_IN), dtype=jnp.float32)
        out = text_encoder_forward(x, *params, ratio)
        out = jax.block_until_ready(out)

        ref = reference_forward(x, w1_t, b1, w2_t, b2, ratio)
        assert out.shape == (N, D_IN)
        # bf16 MXU operands (f32 accumulation) -> small deviation vs pure-f32 reference.
        assert jnp.allclose(out, ref, atol=1e-2, rtol=1e-2), f"mismatch at N={N}"

    print("KERNEL_OK")
</pallas_src>

<mosaic_0001>
module attributes {stable_mosaic.version = 11 : i64} {
  func.func @_text_encoder_kernel(%arg0: i32, %arg1: memref<2xf32, #tpu.memory_space<smem>>, %arg2: memref<8x768xf32, #tpu.memory_space<vmem>>, %arg3: memref<768x1408xbf16, #tpu.memory_space<vmem>>, %arg4: memref<1x1408xf32, #tpu.memory_space<vmem>>, %arg5: memref<1408x768xbf16, #tpu.memory_space<vmem>>, %arg6: memref<1x768xf32, #tpu.memory_space<vmem>>, %arg7: memref<8x768xf32, #tpu.memory_space<vmem>>) attributes {dimension_semantics = [#tpu.dimension_semantics<parallel>], iteration_bounds = array<i64: 2>, scalar_prefetch = 0 : i64, scratch_operands = 0 : i64, tpu.core_type = #tpu.core_type<tc>, window_params = [{transform_indices = @transform_0, window_bounds = array<i64: 2>}, {transform_indices = @transform_1, window_bounds = array<i64: 8, 768>}, {pipeline_mode = #tpu.pipeline_mode<synchronous>, transform_indices = @transform_2, window_bounds = array<i64: 768, 1408>}, {pipeline_mode = #tpu.pipeline_mode<synchronous>, transform_indices = @transform_3, window_bounds = array<i64: 1, 1408>}, {pipeline_mode = #tpu.pipeline_mode<synchronous>, transform_indices = @transform_4, window_bounds = array<i64: 1408, 768>}, {pipeline_mode = #tpu.pipeline_mode<synchronous>, transform_indices = @transform_5, window_bounds = array<i64: 1, 768>}, {transform_indices = @transform_6, window_bounds = array<i64: 8, 768>}]} {
    %c0 = arith.constant 0 : index
    %0 = memref.load %arg1[%c0] : memref<2xf32, #tpu.memory_space<smem>>
    %c1 = arith.constant 1 : index
    %1 = memref.load %arg1[%c1] : memref<2xf32, #tpu.memory_space<smem>>
    %c0_0 = arith.constant 0 : index
    %c0_1 = arith.constant 0 : index
    %2 = vector.load %arg2[%c0_0, %c0_1] : memref<8x768xf32, #tpu.memory_space<vmem>>, vector<8x768xf32>
    %3 = arith.truncf %2 : vector<8x768xf32> to vector<8x768xbf16>
    %c0_2 = arith.constant 0 : index
    %c0_3 = arith.constant 0 : index
    %4 = vector.load %arg3[%c0_2, %c0_3] : memref<768x1408xbf16, #tpu.memory_space<vmem>>, vector<768x1408xbf16>
    %cst = arith.constant dense<0.000000e+00> : vector<8x1408xf32>
    %5 = tpu.matmul %3, %4, %cst {dimension_numbers = #tpu.dot_dimension_numbers<[1], [0], [0], [1], [0, 0, 1, 1], [], []>} : vector<8x768xbf16>, vector<768x1408xbf16>, vector<8x1408xf32> -> vector<8x1408xf32>
    %c0_4 = arith.constant 0 : index
    %c0_5 = arith.constant 0 : index
    %6 = vector.load %arg4[%c0_4, %c0_5] : memref<1x1408xf32, #tpu.memory_space<vmem>>, vector<1x1408xf32>
    %7 = vector.broadcast %6 : vector<1x1408xf32> to vector<8x1408xf32>
    %8 = arith.addf %5, %7 : vector<8x1408xf32>
    %cst_6 = arith.constant 0.000000e+00 : f32
    %9 = vector.broadcast %cst_6 : f32 to vector<8x1408xf32>
    %10 = arith.maximumf %8, %9 : vector<8x1408xf32>
    %11 = arith.truncf %10 : vector<8x1408xf32> to vector<8x1408xbf16>
    %c0_7 = arith.constant 0 : index
    %c0_8 = arith.constant 0 : index
    %12 = vector.load %arg5[%c0_7, %c0_8] : memref<1408x768xbf16, #tpu.memory_space<vmem>>, vector<1408x768xbf16>
    %cst_9 = arith.constant dense<0.000000e+00> : vector<8x768xf32>
    %13 = tpu.matmul %11, %12, %cst_9 {dimension_numbers = #tpu.dot_dimension_numbers<[1], [0], [0], [1], [0, 0, 1, 1], [], []>} : vector<8x1408xbf16>, vector<1408x768xbf16>, vector<8x768xf32> -> vector<8x768xf32>
    %c0_10 = arith.constant 0 : index
    %c0_11 = arith.constant 0 : index
    %14 = vector.load %arg6[%c0_10, %c0_11] : memref<1x768xf32, #tpu.memory_space<vmem>>, vector<1x768xf32>
    %15 = vector.broadcast %14 : vector<1x768xf32> to vector<8x768xf32>
    %16 = arith.addf %13, %15 : vector<8x768xf32>
    %17 = vector.broadcast %0 : f32 to vector<8x768xf32>
    %18 = arith.mulf %17, %16 : vector<8x768xf32>
    %19 = vector.broadcast %1 : f32 to vector<8x768xf32>
    %20 = arith.mulf %19, %2 : vector<8x768xf32>
    %21 = arith.addf %18, %20 : vector<8x768xf32>
    %c0_12 = arith.constant 0 : index
    %c0_13 = arith.constant 0 : index
    %22 = vector.load %arg7[%c0_12, %c0_13] : memref<8x768xf32, #tpu.memory_space<vmem>>, vector<8x768xf32>
    tpu.vector_store %arg7[%c0_12, %c0_13], %21 {strides = array<i32>} : memref<8x768xf32, #tpu.memory_space<vmem>>, vector<8x768xf32>,
    return
  }
  func.func @transform_0(%arg0: i32) -> i32 {
    %c0_i32 = arith.constant 0 : i32
    %c0_i32_0 = arith.constant 0 : i32
    return %c0_i32 : i32
  }
  func.func @transform_1(%arg0: i32) -> (i32, i32) {
    %c0_i32 = arith.constant 0 : i32
    %c0_i32_0 = arith.constant 0 : i32
    return %arg0, %c0_i32 : i32, i32
  }
  func.func @transform_2(%arg0: i32) -> (i32, i32) {
    %c0_i32 = arith.constant 0 : i32
    %c0_i32_0 = arith.constant 0 : i32
    %c0_i32_1 = arith.constant 0 : i32
    return %c0_i32, %c0_i32_0 : i32, i32
  }
  func.func @transform_3(%arg0: i32) -> (i32, i32) {
    %c0_i32 = arith.constant 0 : i32
    %c0_i32_0 = arith.constant 0 : i32
    %c0_i32_1 = arith.constant 0 : i32
    return %c0_i32, %c0_i32_0 : i32, i32
  }
  func.func @transform_4(%arg0: i32) -> (i32, i32) {
    %c0_i32 = arith.constant 0 : i32
    %c0_i32_0 = arith.constant 0 : i32
    %c0_i32_1 = arith.constant 0 : i32
    return %c0_i32, %c0_i32_0 : i32, i32
  }
  func.func @transform_5(%arg0: i32) -> (i32, i32) {
    %c0_i32 = arith.constant 0 : i32
    %c0_i32_0 = arith.constant 0 : i32
    %c0_i32_1 = arith.constant 0 : i32
    return %c0_i32, %c0_i32_0 : i32, i32
  }
  func.func @transform_6(%arg0: i32) -> (i32, i32) {
    %c0_i32 = arith.constant 0 : i32
    %c0_i32_0 = arith.constant 0 : i32
    return %arg0, %c0_i32 : i32, i32
  }
}

</mosaic_0001>

<bundles_post_ra>
// kernel: tpu_custom_call.1
= control target key start
LH: loop header
LB: loop body
LE: loop exit
PB: predicated region body
PF: predicated region fallthrough
CT: control target
= control target key end

     0   :  { %s12118_s0 = inlined_call_operand.hbm [shape: f32[2], index: 0, kind: input, shape index: {}]   ;;  %s12119_s1 = inlined_call_operand.hbm [shape: f32[16,768], index: 1, kind: input, shape index: {}]   ;;  %s12120_s2 = inlined_call_operand.hbm [shape: bf16[768,1408], index: 2, kind: input, shape index: {}]   ;;  %s12121_s3 = inlined_call_operand.hbm [shape: f32[1,1408], index: 3, kind: input, shape index: {}]   ;;  %s12122_s4 = inlined_call_operand.hbm [shape: bf16[1408,768], index: 4, kind: input, shape index: {}]   ;;  %s12123_s5 = inlined_call_operand.hbm [shape: f32[1,768], index: 5, kind: input, shape index: {}]   ;;  %s12124_s6 = inlined_call_operand.hbm [shape: f32[16,768], index: 6, kind: output, shape index: {}]  }
   0x1   :  { %12129 = sst [smem:[#allocation19_spill]] %s12118_s0 }
   0x2   :  { %11 = vsyncpa [#allocation5], 0 }
   0x3   :  { %12 = vsyncpa [#allocation3], 0 }
   0x4   :  { %14 = vsyncpa [#allocation3 + $0x1], 0 }
   0x5   :  { %15 = vsyncpa [#allocation8], 0 }
   0x6   :  { %16 = vsyncpa [#allocation11], 0 }
   0x7   :  { %17 = vsyncpa [#allocation4], 0 }
   0x8   :  { %19 = vsyncpa [#allocation4 + $0x1], 0  ;;  %s11612_s21 = smov 0   ;;  %s11614_s22 = smov 0  }
   0x9   :  { %s11616_s23 = smov 0   ;;  %s11618_s24 = smov 0  }
   0xa LB: > { %s11565_s25 = smov [#allocation7]   ;;  %s11633_s27 = sadd.s32 4294967295, %s11563_s24   ;;  %s11563_s24 = sphi %s11618_s24, %s12152_s24   ;;  %s11559_s23 = sphi %s11616_s23, %s12151_s23   ;;  %s11555_s22 = sphi %s11614_s22, %s12150_s22   ;;  %s11551_s21 = sphi %s11612_s21, %s12149_s21  }
   0xb   : > { %s208_s26 = sshll.u32 %s11565_s25, 4  ;;  %p8529_p0 = scmp.ge.s32.totalorder %s11563_s24, 1  ;;  %s209_s26 = int_to_ptr.vmem [resolvable:$true] %s208_s26 }
   0xc   : > { %p12125_p1 = scmp.eq.s32.totalorder %s11633_s27, 0  ;;  %p187_p2 = scmp.lt.s32.totalorder %s11563_s24, 3 }
   0xd   : > { %s11566_s29 = smov [#allocation10]   ;;  %s11355_s8 = scalar_lea.vmem %s209_s26, 67584 }
   0xe   : > { %p11638_p3 = pnand %p8529_p0, %p187_p2  ;;  %s232_s30 = sshll.u32 %s11566_s29, 4  ;;  %s233_s30 = int_to_ptr.vmem [resolvable:$true] %s232_s30 }
   0xf   : > { %p11356_p8 = scmp.ne.s32.totalorder %s209_s26, %s11355_s8  ;;  %p11363_p11 = scmp.lt.s32.totalorder %s209_s26, %s209_s26 }
  0x10   : > { %s12130_s28 = scalar_select %p11638_p3, 1, 0 }
  0x11   : > { %p9697_p5 = pneg %p11638_p3  ;;  %p11364_p12 = scmp.lt.s32.totalorder %s11355_s8, %s11355_s8 }
  0x13   : > { %p11647_p6 = pnand %p9697_p5, %p12125_p1  ;;  %p11365_p13 = por %p11364_p12, %p11363_p11 }
  0x15   : > { %p11346_p7 = pneg %p11647_p6 }
  0x17   : > { %p11358_p9 = pnand %p11356_p8, %p11346_p7 }
  0x19   : > { %p11359_p10 = pneg %p11358_p9 }
  0x1b   : > { %p11366_p0 = pnand %p11365_p13, %p11359_p10 }
  0x1d   : > { %11369 = shalt.err (!%p11366_p0)
}
  0x1e   : > { %s11567_s9 = smov 704   ;;  %s11568_s10 = smov 44  }
  0x1f   : > { %9703 = dma.hbm_to_vmem [thread:$0]  (!%p11647_p6), %s12120_s2, 67584, %s209_s26, [#allocation8], %s11567_s9, %s11567_s9, %s11568_s10  }
  0x20   : > { %s11381_s13 = scalar_lea.vmem %s233_s30, 67584  ;;  %p11389_p9 = scmp.lt.s32.totalorder %s233_s30, %s233_s30 }
  0x21   : > { %p11382_p2 = scmp.ne.s32.totalorder %s233_s30, %s11381_s13  ;;  %p11390_p4 = scmp.lt.s32.totalorder %s11381_s13, %s11381_s13 }
  0x23   : > { %p11384_p5 = pnand %p11382_p2, %p11346_p7  ;;  %p11391_p11 = por %p11390_p4, %p11389_p9 }
  0x25   : > { %p11385_p8 = pneg %p11384_p5 }
  0x27   : > { %p11392_p10 = pnand %p11391_p11, %p11385_p8 }
  0x29   : > { %11395 = shalt.err (!%p11392_p10)
}
  0x2a   : > { %s11569_s14 = smov 384   ;;  %s11570_s15 = smov 24  }
  0x2b   : > { %9709 = dma.hbm_to_vmem [thread:$0]  (!%p11647_p6), %s12122_s4, 67584, %s233_s30, [#allocation11], %s11569_s14, %s11569_s14, %s11570_s15  }
  0x2c   : > { %s11571_s18 = smov [#allocation2]   ;;  %s12132_s0 = sld [smem:[#allocation19_spill]] }
  0x2d   : > { %s11572_s25 = smov [#allocation9]   ;;  %s11573_s29 = smov [#allocation12]  }
  0x2e   : > { %s222_s26 = sshll.u32 %s11572_s25, 4  ;;  %s246_s8 = sshll.u32 %s11573_s29, 4  ;;  %s223_s26 = int_to_ptr.vmem [resolvable:$true] %s222_s26  ;;  %s247_s8 = int_to_ptr.vmem [resolvable:$true] %s246_s8 }
  0x2f   : > { %s11418_s9 = scalar_lea.vmem %s223_s26, 176  ;;  %s11425_s10 = scalar_lea.vmem %s223_s26, 192 }
  0x30   : > { %p11419_p4 = scmp.ne.s32.totalorder %s223_s26, %s11418_s9  ;;  %p11426_p0 = scmp.lt.s32.totalorder %s223_s26, %s223_s26 }
  0x31   : > { %p11427_p2 = scmp.lt.s32.totalorder %s11425_s10, %s11418_s9 }
  0x32   : > { %9700 = dma.hbm_to_smem (!%p11647_p6), %s12132_s0, 16, %s11571_s18, [#allocation5]  }
  0x33   : > { %p11421_p12 = pnand %p11419_p4, %p11346_p7  ;;  %p11428_p5 = por %p11427_p2, %p11426_p0 }
  0x35   : > { %p11422_p13 = pneg %p11421_p12 }
  0x37   : > { %p11429_p8 = pnand %p11428_p5, %p11422_p13 }
  0x39   : > { %11432 = shalt.err (!%p11429_p8)
}
  0x3a   : > { %9706 = dma.hbm_to_vmem [thread:$0]  (!%p11647_p6), %s12121_s3, 176, %s223_s26, [#allocation8]  }
  0x3b   : > { %s11444_s12 = scalar_lea.vmem %s247_s8, 96  ;;  %p11452_p4 = scmp.lt.s32.totalorder %s247_s8, %s247_s8 }
  0x3c   : > { %p11445_p9 = scmp.ne.s32.totalorder %s247_s8, %s11444_s12  ;;  %p11453_p12 = scmp.lt.s32.totalorder %s11444_s12, %s11444_s12 }
  0x3e   : > { %p11447_p11 = pnand %p11445_p9, %p11346_p7  ;;  %p11454_p1 = por %p11453_p12, %p11452_p4 }
  0x40   : > { %p11448_p10 = pneg %p11447_p11 }
  0x42   : > { %p11455_p0 = pnand %p11454_p1, %p11448_p10 }
  0x44   : > { %11458 = shalt.err (!%p11455_p0)
}
  0x45   : > { %9712 = dma.hbm_to_vmem [thread:$0]  (!%p11647_p6), %s12123_s5, 96, %s247_s8, [#allocation11]  }
  0x46   : > { %s8528_s15 = sadd.s32 4294967294, %s11563_s24   ;;  %s11692_s7 = sadd.s32 1, %s11563_s24  }
  0x47   : > { %s53_s16 = sadd.s32 1, %s11559_s23  ;;  %s50_s17 = ssub.s32 %s11563_s24, %s11692_s7 }
  0x48   : > { %p60_p1 = scmp.ne.s32.totalorder %s11559_s23, %s11555_s22  ;;  %p51_p7 = scmp.eq.s32.totalorder %s50_s17, 0 }
  0x49   : > { %p61_p13 = scmp.eq.s32.totalorder %s11563_s24, 0  ;;  %p66_p2 = scmp.ne.s32.totalorder %s11555_s22, %s11551_s21 }
  0x4a   : > { %p174_p5 = scmp.eq.s32.totalorder %s11633_s27, 1  ;;  %p12133_p9 = scmp.eq.s32.totalorder %s11633_s27, 0 }
  0x4b   : > { %s11704_s18 = scalar_select %p51_p7, %s11559_s23, %s53_s16  }
  0x4c   : > { %p62_p8 = por %p61_p13, %p60_p1  ;;  %p11708_p11 = por %p12133_p9, %p66_p2 }
  0x4d   : > { %p11712_p6 = por %p174_p5, %p60_p1  ;;  %p180_p10 = scmp.eq.s32.totalorder %s8528_s15, 1 }
  0x4e   : > { %s12134_s19 = scalar_select %p11708_p11, 1, 0 }
  0x4f   : > { %s12135_s20 = scalar_select %p11712_p6, 1, 0 }
  0x50   : > { %p9726_p4 = scmp.lt.s32.totalorder %s11563_s24, 2  ;;  %s257_s25 = sand.u32 1, %s11559_s23  }
  0x51   : > { %p11718_p12 = por %p180_p10, %p66_p2  ;;  %s9669_s29 = smul.u32 48, %s257_s25 }
  0x52   : > { %p11722_p0 = pnand %p9726_p4, %p62_p8  ;;  %s9670_s9 = smul.u32 768, %s11563_s24 }
  0x53   : > { %s12136_s26 = scalar_select %p11718_p12, 1, 0 }
  0x54   : > { %s11730_s11 = scalar_lea.hbm %s12119_s1, %s9670_s9  ;;  %s261_s12 = scalar_lea.vmem [#allocation6], %s9669_s29 }
  0x55   : > { %s269_s13 = sshll.u32 %s261_s12, 4  ;;  %s258_s14 = scalar_lea.sflag [#allocation3], %s257_s25  ;;  %s270_s13 = int_to_ptr.vmem [resolvable:$true] %s269_s13 }
  0x56   : > { %s11459_s15 = scalar_lea.hbm %s11730_s11, 768  ;;  %p11461_p7 = pneg %p11722_p0 }
  0x57   : > { %p11460_p1 = scmp.ne.s32.totalorder %s11730_s11, %s11459_s15  ;;  %s11464_s0 = scalar_lea.hbm %s12119_s1, 1536 }
  0x58   : > { %p11465_p5 = scmp.lt.s32.totalorder %s11730_s11, %s12119_s1  ;;  %p11466_p8 = scmp.lt.s32.totalorder %s11464_s0, %s11459_s15 }
  0x59   : > { %p11462_p13 = pnand %p11461_p7, %p11460_p1 }
  0x5a   : > { %p11467_p9 = por %p11466_p8, %p11465_p5 }
  0x5b   : > { %p11463_p2 = pneg %p11462_p13 }
  0x5d   : > { %p11468_p10 = pnand %p11467_p9, %p11463_p2 }
  0x5f   : > { %11471 = shalt.err (!%p11468_p10)
}
  0x60   : > { %s11472_s29 = scalar_lea.vmem %s270_s13, 768  ;;  %s11574_s25 = smov [#allocation6]  }
  0x61   : > { %p11473_p4 = scmp.ne.s32.totalorder %s270_s13, %s11472_s29  ;;  %s11477_s30 = sshll.u32 %s11574_s25, 4  ;;  %s11478_s30 = int_to_ptr.vmem [resolvable:$false] %s11477_s30 }
  0x62   : > { %s11479_s12 = scalar_lea.vmem %s11478_s30, 1536  ;;  %p11480_p1 = scmp.lt.s32.totalorder %s270_s13, %s11478_s30 }
  0x63   : > { %p11475_p12 = pnand %p11473_p4, %p11461_p7  ;;  %p11481_p13 = scmp.lt.s32.totalorder %s11479_s12, %s11472_s29 }
  0x65   : > { %p11476_p6 = pneg %p11475_p12  ;;  %p11482_p11 = por %p11481_p13, %p11480_p1 }
  0x67   : > { %p11483_p3 = pnand %p11482_p11, %p11476_p6 }
  0x69   : > { %11486 = shalt.err (!%p11483_p3)
}
  0x6a   : > { %9716 = dma.hbm_to_vmem [thread:$0]  (!%p11722_p0), %s11730_s11, 768, %s270_s13, %s258_s14  }
  0x6b   : > { %p12138_p2 = scmp.ne.s32.totalorder %s12130_s28, 0 }
  0x6c   : > { %p12139_p5 = scmp.eq.s32.totalorder (!%p12138_p2), %s11633_s27, 0 }
  0x6d   : > { %278 = sbr.rel (%p12138_p2) target bundleno = 1443 (0x5a3), region = 44 }
  0x72   : > { %11530 = dma.done.wait (%p12139_p5), [#allocation5], 16   ;;  %p12140_p12 = pmov %p12139_p5 }
  0x73   : > { %s11753_s0 = sand.u32 1, %s11555_s22   ;;  %p12141_p3 = scmp.ne.s32.totalorder %s12134_s19, 0 }
  0x74   : > { %11532 = vsyncadd (%p12140_p12), [#allocation5], 4294967280  ;;  %s9671_s15 = smul.u32 48, %s11753_s0  ;;  %s285_s8 = scalar_lea.sflag [#allocation3], %s11753_s0 }
  0x76   : > { %s11759_s11 = scalar_lea.vmem [#allocation6], %s9671_s15 }
  0x77   : > { %11534 = dma.done.wait (%p12141_p3), %s285_s8, 768  }
  0x78   : > { %11536 = vsyncadd (%p12141_p3), %s285_s8, 4294966528  ;;  %p12142_p11 = pmov %p12139_p5 }
  0x79   : > { %p12143_p6 = pmov %p12139_p5 }
  0x7a   : > { %11538 = dma.done.wait (%p12142_p11), [#allocation8], 67760  }
  0x7b   : > { %11540 = vsyncadd (%p12143_p6), [#allocation8], 4294899536  ;;  %p12144_p0 = pmov %p12139_p5 }
  0x7d   : > { %11542 = dma.done.wait (%p12144_p0), [#allocation11], 67680   ;;  %p12145_p7 = pmov %p12144_p0 }
  0x7f   : > { %11544 = vsyncadd (%p12145_p7), [#allocation11], 4294899616 }
  0x80   : > { %309 = sfence }
  0x81   : > { %v9775_v0 = vld [vmem:[#allocation7 + $0x26c] ss:$44 sps:$4 sm:$0xff]   ;;  %v9779_v2 = vld [vmem:[#allocation7 + $0x268] ss:$44 sps:$4 sm:$0xff]   ;;  %v9785_v6 = vld [vmem:[#allocation7 + $0x210] ss:$44 sps:$4 sm:$0xff]  }
  0x82   : > { %v9777_v1 = vld [vmem:[#allocation7 + $0x7ec] ss:$44 sps:$4 sm:$0xff]   ;;  %3672 = vmatprep.subr.bf16.mxu0 %v9775_v0  ;;  %v9780_v3 = vld [vmem:[#allocation7 + $0x7e8] ss:$44 sps:$4 sm:$0xff]   ;;  %v9786_v7 = vld [vmem:[#allocation7 + $0x790] ss:$44 sps:$4 sm:$0xff]  }
  0x83   : > { %3713 = vmatprep.subr.bf16.mxu1 %v9777_v1  ;;  %v9781_v4 = vld [vmem:[#allocation7 + $0x214] ss:$44 sps:$4 sm:$0xff]   ;;  %3673 = vmatpush1.bf16.msra.mxu0 %v9779_v2  ;;  %v9787_v8 = vld [vmem:[#allocation7 + $0x1bc] ss:$44 sps:$4 sm:$0xff]   ;;  %v9791_v10 = vld [vmem:[#allocation7 + $0x1b8] ss:$44 sps:$4 sm:$0xff]  }
  0x84   : > { %3714 = vmatpush1.bf16.msra.mxu1 %v9780_v3  ;;  %v9783_v5 = vld [vmem:[#allocation7 + $0x794] ss:$44 sps:$4 sm:$0xff]   ;;  %3674 = vmatprep.subr.bf16.mxu0 %v9781_v4  ;;  %v9789_v9 = vld [vmem:[#allocation7 + $0x73c] ss:$44 sps:$4 sm:$0xff]   ;;  %v9792_v11 = vld [vmem:[#allocation7 + $0x738] ss:$44 sps:$4 sm:$0xff]  }
  0x85   : > { %3715 = vmatprep.subr.bf16.mxu1 %v9783_v5  ;;  %v9793_v12 = vld [vmem:[#allocation7 + $0x164] ss:$44 sps:$4 sm:$0xff]   ;;  %v9797_v14 = vld [vmem:[#allocation7 + $0x160] ss:$44 sps:$4 sm:$0xff]   ;;  %v9803_v18 = vld [vmem:[#allocation7 + $0x108] ss:$44 sps:$4 sm:$0xff]  }
  0x86   : > { %v9795_v13 = vld [vmem:[#allocation7 + $0x6e4] ss:$44 sps:$4 sm:$0xff]   ;;  %v9798_v15 = vld [vmem:[#allocation7 + $0x6e0] ss:$44 sps:$4 sm:$0xff]   ;;  %v9804_v19 = vld [vmem:[#allocation7 + $0x688] ss:$44 sps:$4 sm:$0xff]  }
  0x87   : > { %3675 = vmatpush1.bf16.msra.mxu0 %v9785_v6  ;;  %v9799_v16 = vld [vmem:[#allocation7 + $0x10c] ss:$44 sps:$4 sm:$0xff]   ;;  %v9805_v20 = vld [vmem:[#allocation7 + $0xb4] ss:$44 sps:$4 sm:$0xff]   ;;  %v9809_v22 = vld [vmem:[#allocation7 + $0xb0] ss:$44 sps:$4 sm:$0xff]  }
  0x88   : > { %3716 = vmatpush1.bf16.msra.mxu1 %v9786_v7  ;;  %3676 = vmatprep.subr.bf16.mxu0 %v9787_v8  ;;  %v9801_v17 = vld [vmem:[#allocation7 + $0x68c] ss:$44 sps:$4 sm:$0xff]   ;;  %v9807_v21 = vld [vmem:[#allocation7 + $0x634] ss:$44 sps:$4 sm:$0xff]   ;;  %v9810_v23 = vld [vmem:[#allocation7 + $0x630] ss:$44 sps:$4 sm:$0xff]  }
  0x89   : > { %3717 = vmatprep.subr.bf16.mxu1 %v9789_v9  ;;  %v9811_v24 = vld [vmem:[#allocation7 + $0x5c] ss:$44 sps:$4 sm:$0xff]   ;;  %v9815_v26 = vld [vmem:[#allocation7 + $0x58] ss:$44 sps:$4 sm:$0xff]   ;;  %v9821_v30 = vld [vmem:[#allocation7] ss:$44 sps:$4 sm:$0xff]  }
  0x8a   : > { %v9813_v25 = vld [vmem:[#allocation7 + $0x5dc] ss:$44 sps:$4 sm:$0xff]   ;;  %v9816_v27 = vld [vmem:[#allocation7 + $0x5d8] ss:$44 sps:$4 sm:$0xff]   ;;  %v9822_v31 = vld [vmem:[#allocation7 + $0x580] ss:$44 sps:$4 sm:$0xff]  }
  0x8b   : > { %3677 = vmatpush1.bf16.msra.mxu0 %v9791_v10  ;;  %v9817_v28 = vld [vmem:[#allocation7 + $0x4] ss:$44 sps:$4 sm:$0xff]   ;;  %v9823_v32 = vld [vmem:[#allocation7 + $0x52c] ss:$44 sps:$4 sm:$0xff]   ;;  %v9827_v34 = vld [vmem:[#allocation7 + $0x528] ss:$44 sps:$4 sm:$0xff]  }
  0x8c   : > { %3718 = vmatpush1.bf16.msra.mxu1 %v9792_v11  ;;  %3678 = vmatprep.subr.bf16.mxu0 %v9793_v12  ;;  %v9819_v29 = vld [vmem:[#allocation7 + $0x584] ss:$44 sps:$4 sm:$0xff]   ;;  %v9825_v33 = vld [vmem:[#allocation7 + $0xaac] ss:$44 sps:$4 sm:$0xff]   ;;  %v9828_v35 = vld [vmem:[#allocation7 + $0xaa8] ss:$44 sps:$4 sm:$0xff]  }
  0x8d   : > { %3719 = vmatprep.subr.bf16.mxu1 %v9795_v13  ;;  %v9829_v36 = vld [vmem:[#allocation7 + $0x4d4] ss:$44 sps:$4 sm:$0xff]   ;;  %v9833_v38 = vld [vmem:[#allocation7 + $0x4d0] ss:$44 sps:$4 sm:$0xff]   ;;  %v9839_v42 = vld [vmem:[#allocation7 + $0x478] ss:$44 sps:$4 sm:$0xff]  }
  0x8e   : > { %v9831_v37 = vld [vmem:[#allocation7 + $0xa54] ss:$44 sps:$4 sm:$0xff]   ;;  %v9834_v39 = vld [vmem:[#allocation7 + $0xa50] ss:$44 sps:$4 sm:$0xff]   ;;  %v9840_v43 = vld [vmem:[#allocation7 + $0x9f8] ss:$44 sps:$4 sm:$0xff]  }
  0x8f   : > { %3679 = vmatpush1.bf16.msra.mxu0 %v9797_v14  ;;  %v9835_v40 = vld [vmem:[#allocation7 + $0x47c] ss:$44 sps:$4 sm:$0xff]   ;;  %v9841_v44 = vld [vmem:[#allocation7 + $0x424] ss:$44 sps:$4 sm:$0xff]   ;;  %v9845_v47 = vld [vmem:[#allocation7 + $0x420] ss:$44 sps:$4 sm:$0xff]  }
  0x90   : > { %3720 = vmatpush1.bf16.msra.mxu1 %v9798_v15  ;;  %3680 = vmatprep.subr.bf16.mxu0 %v9799_v16  ;;  %v9837_v41 = vld [vmem:[#allocation7 + $0x9fc] ss:$44 sps:$4 sm:$0xff]   ;;  %v9843_v45 = vld [vmem:[#allocation7 + $0x9a4] ss:$44 sps:$4 sm:$0xff]   ;;  %v9846_v50 = vld [vmem:[#allocation7 + $0x9a0] ss:$44 sps:$4 sm:$0xff]  }
  0x91   : > { %3721 = vmatprep.subr.bf16.mxu1 %v9801_v17  ;;  %v338_v46 = vld [vmem:[%s11759_s11 + $0x8] sm:$0xff]  ;;  %v340_v49 = vld [vmem:[%s11759_s11 + $0x18] sm:$0xff]  ;;  %v9853_v56 = vld [vmem:[#allocation7 + $0x374] ss:$44 sps:$4 sm:$0xff]   ;;  %s8543_s28 = sld [smem:[#allocation2 + $0x1]]  ;;  %s12027_s13 = scalar_lea.vmem [#allocation13], %s9671_s15 }
  0x92   : > { %v11774_v48 = vpack.c.bf16 %v338_v46, %v338_v46  ;;  %v9847_v51 = vld [vmem:[#allocation7 + $0x3cc] ss:$44 sps:$4 sm:$0xff]   ;;  %v11777_v52 = vpack.c.bf16 %v340_v49, %v340_v49  ;;  %v9851_v54 = vld [vmem:[#allocation7 + $0x3c8] ss:$44 sps:$4 sm:$0xff]   ;;  %v9857_v58 = vld [vmem:[#allocation7 + $0x370] ss:$44 sps:$4 sm:$0xff]  }
  0x93   : > { %3681 = vmatpush1.bf16.msra.mxu0 %v9803_v18  ;;  %v9849_v53 = vld [vmem:[#allocation7 + $0x94c] ss:$44 sps:$4 sm:$0xff]   ;;  %v9852_v55 = vld [vmem:[#allocation7 + $0x948] ss:$44 sps:$4 sm:$0xff]   ;;  %v9858_v59 = vld [vmem:[#allocation7 + $0x8f0] ss:$44 sps:$4 sm:$0xff]  }
  0x94   : > { %3722 = vmatpush1.bf16.msra.mxu1 %v9804_v19  ;;  %3682 = vmatprep.subr.bf16.mxu0 %v9805_v20  ;;  %v9855_v57 = vld [vmem:[#allocation7 + $0x8f4] ss:$44 sps:$4 sm:$0xff]   ;;  %v9859_v60 = vld [vmem:[#allocation7 + $0x31c] ss:$44 sps:$4 sm:$0xff]   ;;  %v9863_v62 = vld [vmem:[#allocation7 + $0x318] ss:$44 sps:$4 sm:$0xff]  }
  0x95   : > { %3723 = vmatprep.subr.bf16.mxu1 %v9807_v21  ;;  %3704 = vmatprep.mubr.bf16.mxu0 %v11774_v48  ;;  %v9861_v61 = vld [vmem:[#allocation7 + $0x89c] ss:$44 sps:$4 sm:$0xff]   ;;  %v9864_v63 = vld [vmem:[#allocation7 + $0x898] ss:$44 sps:$4 sm:$0xff]   ;;  %v9869_v2 = vld [vmem:[#allocation7 + $0x2c0] ss:$44 sps:$4 sm:$0xff]  }
  0x96   : > { %3745 = vmatprep.mubr.bf16.mxu1 %v11777_v52  ;;  %v9865_v0 = vld [vmem:[#allocation7 + $0x2c4] ss:$44 sps:$4 sm:$0xff]   ;;  %v9870_v3 = vld [vmem:[#allocation7 + $0x840] ss:$44 sps:$4 sm:$0xff]   ;;  %v9871_v9 = vld [vmem:[#allocation7 + $0xd68] ss:$44 sps:$4 sm:$0xff]  }
  0x97   : > { %3683 = vmatpush1.bf16.msra.mxu0 %v9809_v22  ;;  %v9867_v1 = vld [vmem:[#allocation7 + $0x844] ss:$44 sps:$4 sm:$0xff]   ;;  %v9873_v5 = vld [vmem:[#allocation7 + $0xd6c] ss:$44 sps:$4 sm:$0xff]   ;;  %v9876_v7 = vld [vmem:[#allocation7 + $0x274] ss:$44 sps:$4 sm:$0xff]  }
  0x98   : > { %3724 = vmatpush1.bf16.msra.mxu1 %v9810_v23  ;;  %3684 = vmatprep.subr.bf16.mxu0 %v9811_v24  ;;  %v337_v4 = vld [vmem:[%s11759_s11] sm:$0xff]  ;;  %v339_v6 = vld [vmem:[%s11759_s11 + $0x10] sm:$0xff]  ;;  %v9882_v13 = vld [vmem:[#allocation7 + $0x21c] ss:$44 sps:$4 sm:$0xff]   ;;  %s335_s19 = sld [smem:[#allocation2]]  ;;  %s9672_s14 = smul.u32 768, %s11633_s27 }
  0x99   : > { %3725 = vmatprep.subr.bf16.mxu1 %v9813_v25  ;;  %v11783_v8 = vpack.c.bf16 %v337_v4, %v337_v4  ;;  %v9874_v10 = vld [vmem:[#allocation7 + $0x270] ss:$44 sps:$4 sm:$0xff]   ;;  %v11785_v11 = vpack.c.bf16 %v339_v6, %v339_v6  ;;  %v9879_v12 = vld [vmem:[#allocation7 + $0xd14] ss:$44 sps:$4 sm:$0xff]   ;;  %v9880_v15 = vld [vmem:[#allocation7 + $0x218] ss:$44 sps:$4 sm:$0xff]  }
  0x9a   : > { %v9877_v14 = vld [vmem:[#allocation7 + $0xd10] ss:$44 sps:$4 sm:$0xff]   ;;  %v9883_v18 = vld [vmem:[#allocation7 + $0xcb8] ss:$44 sps:$4 sm:$0xff]   ;;  %v9886_v19 = vld [vmem:[#allocation7 + $0x1c0] ss:$44 sps:$4 sm:$0xff]   ;;  %s8406_s9 = scalar_lea.hbm %s12124_s6, %s9672_s14 }
  0x9b   : > { %3685 = vmatpush1.bf16.msra.mxu0 %v9815_v26  ;;  %v9885_v16 = vld [vmem:[#allocation7 + $0xcbc] ss:$44 sps:$4 sm:$0xff]   ;;  %v9888_v17 = vld [vmem:[#allocation7 + $0x1c4] ss:$44 sps:$4 sm:$0xff]   ;;  %v9894_v21 = vld [vmem:[#allocation7 + $0x16c] ss:$44 sps:$4 sm:$0xff]  }
  0x9c   : > { %3726 = vmatpush1.bf16.msra.mxu1 %v9816_v27  ;;  %3686 = vmatprep.subr.bf16.mxu0 %v9817_v28  ;;  %v9891_v20 = vld [vmem:[#allocation7 + $0xc64] ss:$44 sps:$4 sm:$0xff]   ;;  %v9889_v22 = vld [vmem:[#allocation7 + $0xc60] ss:$44 sps:$4 sm:$0xff]   ;;  %v9892_v23 = vld [vmem:[#allocation7 + $0x168] ss:$44 sps:$4 sm:$0xff]  }
  0x9d   : > { %3727 = vmatprep.subr.bf16.mxu1 %v9819_v29  ;;  %v9897_v24 = vld [vmem:[#allocation7 + $0xc0c] ss:$44 sps:$4 sm:$0xff]   ;;  %v9900_v25 = vld [vmem:[#allocation7 + $0x114] ss:$44 sps:$4 sm:$0xff]   ;;  %v9898_v27 = vld [vmem:[#allocation7 + $0x110] ss:$44 sps:$4 sm:$0xff]  }
  0x9e   : > { %v9895_v26 = vld [vmem:[#allocation7 + $0xc08] ss:$44 sps:$4 sm:$0xff]   ;;  %v9925_v49 = vld [vmem:[#allocation7 + $0xfd0] ss:$44 sps:$4 sm:$0xff]   ;;  %v9955_v6 = vld [vmem:[#allocation7 + $0xe18] ss:$44 sps:$4 sm:$0xff]  }
  0x9f   : > { %3687 = vmatpush1.bf16.msra.mxu0 %v9821_v30  ;;  %v9903_v28 = vld [vmem:[#allocation7 + $0xbb4] ss:$44 sps:$4 sm:$0xff]   ;;  %v9906_v29 = vld [vmem:[#allocation7 + $0xbc] ss:$44 sps:$4 sm:$0xff]   ;;  %s8408_s16 = sshll.u32 %s12027_s13, 4  ;;  %s8394_s29 = scalar_lea.sflag [#allocation4], %s11753_s0  ;;  %s8409_s16 = int_to_ptr.vmem [resolvable:$true] %s8408_s16 }
  0xa0   : > { %3728 = vmatpush1.bf16.msra.mxu1 %v9822_v31  ;;  %3688 = vmatprep.subr.bf16.mxu0 %v9823_v32  ;;  %v9901_v30 = vld [vmem:[#allocation7 + $0xbb0] ss:$44 sps:$4 sm:$0xff]   ;;  %v9904_v31 = vld [vmem:[#allocation7 + $0xb8] ss:$44 sps:$4 sm:$0xff]   ;;  %v9927_v46 = vld [vmem:[#allocation7 + $0xfd4] ss:$44 sps:$4 sm:$0xff]  }
  0xa1   : > { %3729 = vmatprep.subr.bf16.mxu1 %v9825_v33  ;;  %v9909_v32 = vld [vmem:[#allocation7 + $0xb5c] ss:$44 sps:$4 sm:$0xff]   ;;  %v9912_v33 = vld [vmem:[#allocation7 + $0x64] ss:$44 sps:$4 sm:$0xff]   ;;  %s11487_s25 = scalar_lea.vmem %s8409_s16, 768  ;;  %p12146_p9 = scmp.ne.s32.totalorder %s12135_s20, 0 }
  0xa2   : > { %v9957_v4 = vld [vmem:[#allocation7 + $0xe1c] ss:$44 sps:$4 sm:$0xff]   ;;  %p11488_p8 = scmp.ne.s32.totalorder %s8409_s16, %s11487_s25  ;;  %s11576_s27 = smov [#allocation13]  }
  0xa3   : > { %3689 = vmatpush2.bf16.msra.mxu0 %v9827_v34  ;;  %v342_v34 = vld [vmem:[%s11759_s11 + $0x28] sm:$0xff]  ;;  %s11491_s30 = sshll.u32 %s11576_s27, 4  ;;  %s11492_s30 = int_to_ptr.vmem [resolvable:$false] %s11491_s30 }
  0xa4   : > { %3730 = vmatpush2.bf16.msra.mxu1 %v9828_v35  ;;  %3690 = vmatprep.subr.bf16.mxu0 %v9829_v36  ;;  %v11791_v35 = vpack.c.bf16 %v342_v34, %v342_v34  ;;  %v9907_v36 = vld [vmem:[#allocation7 + $0xb58] ss:$44 sps:$4 sm:$0xff]   ;;  %v9991_v34 = vld [vmem:[#allocation7 + $0x690] ss:$44 sps:$4 sm:$0xff]   ;;  %p11489_p10 = pnand %p11488_p8, %p12146_p9  ;;  %s11493_s12 = scalar_lea.vmem %s11492_s30, 1536 }
  0xa5   : > { %3731 = vmatprep.subr.bf16.mxu1 %v9831_v37  ;;  %v9910_v37 = vld [vmem:[#allocation7 + $0x60] ss:$44 sps:$4 sm:$0xff]   ;;  %p11494_p1 = scmp.lt.s32.totalorder %s8409_s16, %s11492_s30  ;;  %p11495_p13 = scmp.lt.s32.totalorder %s11493_s12, %s11487_s25 }
  0xa6   : > { %p11490_p4 = pneg %p11489_p10 }
  0xa7   : > { %3691 = vmatpush2.bf16.msra.mxu0 %v9833_v38  ;;  %v9915_v38 = vld [vmem:[#allocation7 + $0xb04] ss:$44 sps:$4 sm:$0xff]   ;;  %p11496_p2 = por %p11495_p13, %p11494_p1 }
  0xa8   : > { %3732 = vmatpush2.bf16.msra.mxu1 %v9834_v39  ;;  %3692 = vmatprep.subr.bf16.mxu0 %v9835_v40  ;;  %v9918_v39 = vld [vmem:[#allocation7 + $0xc] ss:$44 sps:$4 sm:$0xff]  }
  0xa9   : > { %3733 = vmatprep.subr.bf16.mxu1 %v9837_v41  ;;  %v9913_v40 = vld [vmem:[#allocation7 + $0xb00] ss:$44 sps:$4 sm:$0xff]   ;;  %v9916_v41 = vld [vmem:[#allocation7 + $0x8] ss:$44 sps:$4 sm:$0xff]   ;;  %p11497_p5 = pnand %p11496_p2, %p11490_p4 }
  0xab   : > { %3693 = vmatpush2.bf16.msra.mxu0 %v9839_v42  ;;  %v9921_v42 = vld [vmem:[#allocation7 + $0x102c] ss:$44 sps:$4 sm:$0xff]  }
  0xac   : > { %3734 = vmatpush2.bf16.msra.mxu1 %v9840_v43  ;;  %3694 = vmatprep.subr.bf16.mxu0 %v9841_v44  ;;  %v9924_v43 = vld [vmem:[#allocation7 + $0x534] ss:$44 sps:$4 sm:$0xff]  }
  0xad   : > { %3735 = vmatprep.subr.bf16.mxu1 %v9843_v45  ;;  %v9919_v44 = vld [vmem:[#allocation7 + $0x1028] ss:$44 sps:$4 sm:$0xff]   ;;  %v9922_v45 = vld [vmem:[#allocation7 + $0x530] ss:$44 sps:$4 sm:$0xff]  }
  0xaf   : > { %3695 = vmatpush2.bf16.msra.mxu0 %v9845_v47  ;;  %v9930_v47 = vld [vmem:[#allocation7 + $0x4dc] ss:$44 sps:$4 sm:$0xff]  }
  0xb0   : > { %3736 = vmatpush2.bf16.msra.mxu1 %v9846_v50  ;;  %3696 = vmatprep.subr.bf16.mxu0 %v9847_v51  ;;  %v9928_v50 = vld [vmem:[#allocation7 + $0x4d8] ss:$44 sps:$4 sm:$0xff]   ;;  %v9933_v51 = vld [vmem:[#allocation7 + $0xf7c] ss:$44 sps:$4 sm:$0xff]  }
  0xb1   : > { %3737 = vmatprep.subr.bf16.mxu1 %v9849_v53  ;;  %v9936_v53 = vld [vmem:[#allocation7 + $0x484] ss:$44 sps:$4 sm:$0xff]  }
  0xb3   : > { %3697 = vmatpush2.bf16.msra.mxu0 %v9851_v54  ;;  %v9931_v54 = vld [vmem:[#allocation7 + $0xf78] ss:$44 sps:$4 sm:$0xff]  }
  0xb4   : > { %3738 = vmatpush2.bf16.msra.mxu1 %v9852_v55  ;;  %3698 = vmatprep.subr.bf16.mxu0 %v9853_v56  ;;  %v9934_v55 = vld [vmem:[#allocation7 + $0x480] ss:$44 sps:$4 sm:$0xff]   ;;  %v9939_v56 = vld [vmem:[#allocation7 + $0xf24] ss:$44 sps:$4 sm:$0xff]  }
  0xb5   : > { %3739 = vmatprep.subr.bf16.mxu1 %v9855_v57  ;;  %v9942_v57 = vld [vmem:[#allocation7 + $0x42c] ss:$44 sps:$4 sm:$0xff]  }
  0xb7   : > { %3699 = vmatpush2.bf16.msra.mxu0 %v9857_v58  ;;  %v9937_v58 = vld [vmem:[#allocation7 + $0xf20] ss:$44 sps:$4 sm:$0xff]  }
  0xb8   : > { %3740 = vmatpush2.bf16.msra.mxu1 %v9858_v59  ;;  %3700 = vmatprep.subr.bf16.mxu0 %v9859_v60  ;;  %v9940_v59 = vld [vmem:[#allocation7 + $0x428] ss:$44 sps:$4 sm:$0xff]   ;;  %v9945_v60 = vld [vmem:[#allocation7 + $0xecc] ss:$44 sps:$4 sm:$0xff]  }
  0xb9   : > { %3741 = vmatprep.subr.bf16.mxu1 %v9861_v61  ;;  %v9948_v61 = vld [vmem:[#allocation7 + $0x3d4] ss:$44 sps:$4 sm:$0xff]  }
  0xbb   : > { %3701 = vmatpush2.bf16.msra.mxu0 %v9863_v62  ;;  %v9943_v62 = vld [vmem:[#allocation7 + $0xec8] ss:$44 sps:$4 sm:$0xff]  }
  0xbc   : > { %3742 = vmatpush2.bf16.msra.mxu1 %v9864_v63  ;;  %3702 = vmatprep.subr.bf16.mxu0 %v9865_v0  ;;  %v9946_v63 = vld [vmem:[#allocation7 + $0x3d0] ss:$44 sps:$4 sm:$0xff]   ;;  %v9951_v0 = vld [vmem:[#allocation7 + $0xe74] ss:$44 sps:$4 sm:$0xff]  }
  0xbd   : > { %3743 = vmatprep.subr.bf16.mxu1 %v9867_v1  ;;  %v9954_v1 = vld [vmem:[#allocation7 + $0x37c] ss:$44 sps:$4 sm:$0xff]  }
  0xbf   : > { %3703 = vmatpush2.bf16.msra.mxu0 %v9869_v2  ;;  %v9949_v2 = vld [vmem:[#allocation7 + $0xe70] ss:$44 sps:$4 sm:$0xff]  }
  0xc0   : > { %3744 = vmatpush2.bf16.msra.mxu1 %v9870_v3  ;;  %3754 = vmatprep.subr.bf16.mxu0 %v9873_v5  ;;  %v9952_v3 = vld [vmem:[#allocation7 + $0x378] ss:$44 sps:$4 sm:$0xff]  }
  0xc1   : > { %3795 = vmatprep.subr.bf16.mxu1 %v9876_v7  ;;  %v9960_v5 = vld [vmem:[#allocation7 + $0x324] ss:$44 sps:$4 sm:$0xff]   ;;  %v9958_v7 = vld [vmem:[#allocation7 + $0x320] ss:$44 sps:$4 sm:$0xff]  }
  0xc2   : > { %3705 = vmatmul.mubr.bf16.vlgmr.msra.gmra.mxu0 %v11783_v8 }
  0xc3   : > { %3746 = vmatmul.mubr.bf16.vlgmr.msra.gmra.mxu1 %v11785_v11  ;;  %3755 = vmatpush1.bf16.msra.mxu0 %v9871_v9  ;;  %v9963_v9 = vld [vmem:[#allocation7 + $0xdc4] ss:$44 sps:$4 sm:$0xff]  }
  0xc4   : > { %3796 = vmatpush1.bf16.msra.mxu1 %v9874_v10  ;;  %3756 = vmatprep.subr.bf16.mxu0 %v9879_v12  ;;  %v9966_v10 = vld [vmem:[#allocation7 + $0x2cc] ss:$44 sps:$4 sm:$0xff]  }
  0xc5   : > { %3797 = vmatprep.subr.bf16.mxu1 %v9882_v13  ;;  %3827 = vmatprep.mubr.bf16.mxu1 %v11774_v48  ;;  %v9961_v12 = vld [vmem:[#allocation7 + $0xdc0] ss:$44 sps:$4 sm:$0xff]   ;;  %v9964_v13 = vld [vmem:[#allocation7 + $0x2c8] ss:$44 sps:$4 sm:$0xff]  }
  0xc6   : > { %3786 = vmatprep.mubr.bf16.mxu0 %v11791_v35 }
  0xc7   : > { %3757 = vmatpush1.bf16.msra.mxu0 %v9877_v14  ;;  %v341_v14 = vld [vmem:[%s11759_s11 + $0x20] sm:$0xff] }
  0xc8   : > { %3798 = vmatpush1.bf16.msra.mxu1 %v9880_v15  ;;  %3758 = vmatprep.subr.bf16.mxu0 %v9885_v16  ;;  %v9969_v15 = vld [vmem:[#allocation7 + $0x7f4] ss:$44 sps:$4 sm:$0xff]  }
  0xc9   : > { %3799 = vmatprep.subr.bf16.mxu1 %v9888_v17  ;;  %v9972_v16 = vld [vmem:[#allocation7 + $0xd74] ss:$44 sps:$4 sm:$0xff]   ;;  %v11795_v17 = vpack.c.bf16 %v341_v14, %v341_v14  ;;  %v10056_v14 = vld [vmem:[#allocation7 + $0xe24] ss:$44 sps:$4 sm:$0xff]  }
  0xcb   : > { %3759 = vmatpush1.bf16.msra.mxu0 %v9883_v18  ;;  %v9967_v18 = vld [vmem:[#allocation7 + $0x7f0] ss:$44 sps:$4 sm:$0xff]  }
  0xcc   : > { %3800 = vmatpush1.bf16.msra.mxu1 %v9886_v19  ;;  %3760 = vmatprep.subr.bf16.mxu0 %v9891_v20  ;;  %v9970_v19 = vld [vmem:[#allocation7 + $0xd70] ss:$44 sps:$4 sm:$0xff]  }
  0xcd   : > { %3801 = vmatprep.subr.bf16.mxu1 %v9894_v21  ;;  %v9975_v20 = vld [vmem:[#allocation7 + $0x79c] ss:$44 sps:$4 sm:$0xff]  }
  0xce   : > { %v9978_v21 = vld [vmem:[#allocation7 + $0xd1c] ss:$44 sps:$4 sm:$0xff]  }
  0xcf   : > { %3761 = vmatpush1.bf16.msra.mxu0 %v9889_v22  ;;  %v9973_v22 = vld [vmem:[#allocation7 + $0x798] ss:$44 sps:$4 sm:$0xff]  }
  0xd0   : > { %3802 = vmatpush1.bf16.msra.mxu1 %v9892_v23  ;;  %3762 = vmatprep.subr.bf16.mxu0 %v9897_v24  ;;  %v9976_v23 = vld [vmem:[#allocation7 + $0xd18] ss:$44 sps:$4 sm:$0xff]  }
  0xd1   : > { %3803 = vmatprep.subr.bf16.mxu1 %v9900_v25  ;;  %v9981_v24 = vld [vmem:[#allocation7 + $0x744] ss:$44 sps:$4 sm:$0xff]  }
  0xd2   : > { %v9984_v25 = vld [vmem:[#allocation7 + $0xcc4] ss:$44 sps:$4 sm:$0xff]  }
  0xd3   : > { %3763 = vmatpush1.bf16.msra.mxu0 %v9895_v26  ;;  %v9979_v26 = vld [vmem:[#allocation7 + $0x740] ss:$44 sps:$4 sm:$0xff]  }
  0xd4   : > { %3804 = vmatpush1.bf16.msra.mxu1 %v9898_v27  ;;  %3764 = vmatprep.subr.bf16.mxu0 %v9903_v28  ;;  %v9982_v27 = vld [vmem:[#allocation7 + $0xcc0] ss:$44 sps:$4 sm:$0xff]  }
  0xd5   : > { %3805 = vmatprep.subr.bf16.mxu1 %v9906_v29  ;;  %v9987_v28 = vld [vmem:[#allocation7 + $0x6ec] ss:$44 sps:$4 sm:$0xff]  }
  0xd6   : > { %v9990_v29 = vld [vmem:[#allocation7 + $0xc6c] ss:$44 sps:$4 sm:$0xff]  }
  0xd7   : > { %3765 = vmatpush1.bf16.msra.mxu0 %v9901_v30  ;;  %v9985_v30 = vld [vmem:[#allocation7 + $0x6e8] ss:$44 sps:$4 sm:$0xff]  }
  0xd8   : > { %3806 = vmatpush1.bf16.msra.mxu1 %v9904_v31  ;;  %3766 = vmatprep.subr.bf16.mxu0 %v9909_v32  ;;  %v9988_v31 = vld [vmem:[#allocation7 + $0xc68] ss:$44 sps:$4 sm:$0xff]  }
  0xd9   : > { %3807 = vmatprep.subr.bf16.mxu1 %v9912_v33  ;;  %v9993_v32 = vld [vmem:[#allocation7 + $0x694] ss:$44 sps:$4 sm:$0xff]  }
  0xda   : > { %v9996_v33 = vld [vmem:[#allocation7 + $0xc14] ss:$44 sps:$4 sm:$0xff]  }
  0xdb   : > { %3767 = vmatpush1.bf16.msra.mxu0 %v9907_v36  ;;  %v9994_v36 = vld [vmem:[#allocation7 + $0xc10] ss:$44 sps:$4 sm:$0xff]  }
  0xdc   : > { %3808 = vmatpush1.bf16.msra.mxu1 %v9910_v37  ;;  %3768 = vmatprep.subr.bf16.mxu0 %v9915_v38  ;;  %v9999_v37 = vld [vmem:[#allocation7 + $0x63c] ss:$44 sps:$4 sm:$0xff]  }
  0xdd   : > { %3809 = vmatprep.subr.bf16.mxu1 %v9918_v39  ;;  %v10002_v38 = vld [vmem:[#allocation7 + $0xbbc] ss:$44 sps:$4 sm:$0xff]   ;;  %v9997_v39 = vld [vmem:[#allocation7 + $0x638] ss:$44 sps:$4 sm:$0xff]  }
  0xdf   : > { %3769 = vmatpush1.bf16.msra.mxu0 %v9913_v40  ;;  %v10000_v40 = vld [vmem:[#allocation7 + $0xbb8] ss:$44 sps:$4 sm:$0xff]  }
  0xe0   : > { %3810 = vmatpush1.bf16.msra.mxu1 %v9916_v41  ;;  %3770 = vmatprep.subr.bf16.mxu0 %v9921_v42  ;;  %v10005_v41 = vld [vmem:[#allocation7 + $0x5e4] ss:$44 sps:$4 sm:$0xff]  }
  0xe1   : > { %3811 = vmatprep.subr.bf16.mxu1 %v9924_v43  ;;  %v10008_v42 = vld [vmem:[#allocation7 + $0xb64] ss:$44 sps:$4 sm:$0xff]   ;;  %v10003_v43 = vld [vmem:[#allocation7 + $0x5e0] ss:$44 sps:$4 sm:$0xff]  }
  0xe3   : > { %3771 = vmatpush2.bf16.msra.mxu0 %v9919_v44  ;;  %v10006_v44 = vld [vmem:[#allocation7 + $0xb60] ss:$44 sps:$4 sm:$0xff]  }
  0xe4   : > { %3812 = vmatpush2.bf16.msra.mxu1 %v9922_v45  ;;  %3772 = vmatprep.subr.bf16.mxu0 %v9927_v46  ;;  %v10011_v45 = vld [vmem:[#allocation7 + $0x58c] ss:$44 sps:$4 sm:$0xff]  }
  0xe5   : > { %3813 = vmatprep.subr.bf16.mxu1 %v9930_v47  ;;  %v10014_v46 = vld [vmem:[#allocation7 + $0xb0c] ss:$44 sps:$4 sm:$0xff]   ;;  %v10009_v47 = vld [vmem:[#allocation7 + $0x588] ss:$44 sps:$4 sm:$0xff]  }
  0xe7   : > { %3773 = vmatpush2.bf16.msra.mxu0 %v9925_v49  ;;  %v10012_v49 = vld [vmem:[#allocation7 + $0xb08] ss:$44 sps:$4 sm:$0xff]  }
  0xe8   : > { %3814 = vmatpush2.bf16.msra.mxu1 %v9928_v50  ;;  %3774 = vmatprep.subr.bf16.mxu0 %v9933_v51  ;;  %v10017_v50 = vld [vmem:[#allocation7 + $0xab4] ss:$44 sps:$4 sm:$0xff]  }
  0xe9   : > { %3815 = vmatprep.subr.bf16.mxu1 %v9936_v53  ;;  %v10020_v51 = vld [vmem:[#allocation7 + $0x1034] ss:$44 sps:$4 sm:$0xff]   ;;  %v10015_v53 = vld [vmem:[#allocation7 + $0xab0] ss:$44 sps:$4 sm:$0xff]  }
  0xeb   : > { %3775 = vmatpush2.bf16.msra.mxu0 %v9931_v54  ;;  %v10018_v54 = vld [vmem:[#allocation7 + $0x1030] ss:$44 sps:$4 sm:$0xff]  }
  0xec   : > { %3816 = vmatpush2.bf16.msra.mxu1 %v9934_v55  ;;  %3776 = vmatprep.subr.bf16.mxu0 %v9939_v56  ;;  %v10023_v55 = vld [vmem:[#allocation7 + $0xa5c] ss:$44 sps:$4 sm:$0xff]  }
  0xed   : > { %3817 = vmatprep.subr.bf16.mxu1 %v9942_v57  ;;  %v10026_v56 = vld [vmem:[#allocation7 + $0xfdc] ss:$44 sps:$4 sm:$0xff]   ;;  %v10021_v57 = vld [vmem:[#allocation7 + $0xa58] ss:$44 sps:$4 sm:$0xff]  }
  0xef   : > { %3777 = vmatpush2.bf16.msra.mxu0 %v9937_v58  ;;  %v10024_v58 = vld [vmem:[#allocation7 + $0xfd8] ss:$44 sps:$4 sm:$0xff]  }
  0xf0   : > { %3818 = vmatpush2.bf16.msra.mxu1 %v9940_v59  ;;  %3778 = vmatprep.subr.bf16.mxu0 %v9945_v60  ;;  %v10029_v59 = vld [vmem:[#allocation7 + $0xa04] ss:$44 sps:$4 sm:$0xff]  }
  0xf1   : > { %3819 = vmatprep.subr.bf16.mxu1 %v9948_v61  ;;  %v10032_v60 = vld [vmem:[#allocation7 + $0xf84] ss:$44 sps:$4 sm:$0xff]   ;;  %v10027_v61 = vld [vmem:[#allocation7 + $0xa00] ss:$44 sps:$4 sm:$0xff]  }
  0xf3   : > { %3779 = vmatpush2.bf16.msra.mxu0 %v9943_v62  ;;  %v10030_v62 = vld [vmem:[#allocation7 + $0xf80] ss:$44 sps:$4 sm:$0xff]  }
  0xf4   : > { %3820 = vmatpush2.bf16.msra.mxu1 %v9946_v63  ;;  %3780 = vmatprep.subr.bf16.mxu0 %v9951_v0  ;;  %v10035_v63 = vld [vmem:[#allocation7 + $0x9ac] ss:$44 sps:$4 sm:$0xff]  }
  0xf5   : > { %3821 = vmatprep.subr.bf16.mxu1 %v9954_v1  ;;  %v10038_v0 = vld [vmem:[#allocation7 + $0xf2c] ss:$44 sps:$4 sm:$0xff]   ;;  %v10033_v1 = vld [vmem:[#allocation7 + $0x9a8] ss:$44 sps:$4 sm:$0xff]  }
  0xf7   : > { %3781 = vmatpush2.bf16.msra.mxu0 %v9949_v2  ;;  %v10036_v2 = vld [vmem:[#allocation7 + $0xf28] ss:$44 sps:$4 sm:$0xff]  }
  0xf8   : > { %3822 = vmatpush2.bf16.msra.mxu1 %v9952_v3  ;;  %3782 = vmatprep.subr.bf16.mxu0 %v9957_v4  ;;  %v10041_v3 = vld [vmem:[#allocation7 + $0x954] ss:$44 sps:$4 sm:$0xff]  }
  0xf9   : > { %3823 = vmatprep.subr.bf16.mxu1 %v9960_v5  ;;  %v10044_v4 = vld [vmem:[#allocation7 + $0xed4] ss:$44 sps:$4 sm:$0xff]   ;;  %v10039_v5 = vld [vmem:[#allocation7 + $0x950] ss:$44 sps:$4 sm:$0xff]  }
  0xfb   : > { %3783 = vmatpush2.bf16.msra.mxu0 %v9955_v6  ;;  %v10042_v6 = vld [vmem:[#allocation7 + $0xed0] ss:$44 sps:$4 sm:$0xff]  }
  0xfc   : > { %3824 = vmatpush2.bf16.msra.mxu1 %v9958_v7  ;;  %3784 = vmatprep.subr.bf16.mxu0 %v9963_v9  ;;  %v10047_v7 = vld [vmem:[#allocation7 + $0x8fc] ss:$44 sps:$4 sm:$0xff]  }
  0xfd   : > { %3825 = vmatprep.subr.bf16.mxu1 %v9966_v10  ;;  %v10050_v9 = vld [vmem:[#allocation7 + $0xe7c] ss:$44 sps:$4 sm:$0xff]   ;;  %v10045_v10 = vld [vmem:[#allocation7 + $0x8f8] ss:$44 sps:$4 sm:$0xff]  }
  0xff   : > { %3785 = vmatpush2.bf16.msra.mxu0 %v9961_v12  ;;  %v10048_v12 = vld [vmem:[#allocation7 + $0xe78] ss:$44 sps:$4 sm:$0xff]  }
 0x100   : > { %3826 = vmatpush2.bf16.msra.mxu1 %v9964_v13  ;;  %3836 = vmatprep.subr.bf16.mxu0 %v9969_v15  ;;  %v10053_v13 = vld [vmem:[#allocation7 + $0x8a4] ss:$44 sps:$4 sm:$0xff]   ;;  %v10051_v15 = vld [vmem:[#allocation7 + $0x8a0] ss:$44 sps:$4 sm:$0xff]  }
 0x101   : > { %3877 = vmatprep.subr.bf16.mxu1 %v9972_v16  ;;  %v10054_v16 = vld [vmem:[#allocation7 + $0xe20] ss:$44 sps:$4 sm:$0xff]  }
 0x102   : > { %3787 = vmatmul.mubr.bf16.vlgmr.msra.gmra.mxu0 %v11795_v17 }
 0x103   : > { %3828 = vmatmul.mubr.bf16.vlgmr.msra.gmra.mxu1 %v11783_v8  ;;  %3837 = vmatpush1.bf16.msra.mxu0 %v9967_v18  ;;  %v10059_v18 = vld [vmem:[#allocation7 + $0x84c] ss:$44 sps:$4 sm:$0xff]  }
 0x104   : > { %3878 = vmatpush1.bf16.msra.mxu1 %v9970_v19  ;;  %3838 = vmatprep.subr.bf16.mxu0 %v9975_v20  ;;  %v10062_v19 = vld [vmem:[#allocation7 + $0xdcc] ss:$44 sps:$4 sm:$0xff]   ;;  %v10057_v20 = vld [vmem:[#allocation7 + $0x848] ss:$44 sps:$4 sm:$0xff]  }
 0x105   : > { %3879 = vmatprep.subr.bf16.mxu1 %v9978_v21  ;;  %3868 = vmatprep.mubr.bf16.mxu0 %v11777_v52  ;;  %v10060_v21 = vld [vmem:[#allocation7 + $0xdc8] ss:$44 sps:$4 sm:$0xff]  }
 0x106   : > { %3909 = vmatprep.mubr.bf16.mxu1 %v11791_v35 }
 0x107   : > { %3839 = vmatpush1.bf16.msra.mxu0 %v9973_v22  ;;  %v10065_v22 = vld [vmem:[#allocation7 + $0x27c] ss:$44 sps:$4 sm:$0xff]  }
 0x108   : > { %3880 = vmatpush1.bf16.msra.mxu1 %v9976_v23  ;;  %3840 = vmatprep.subr.bf16.mxu0 %v9981_v24  ;;  %v10068_v23 = vld [vmem:[#allocation7 + $0x7fc] ss:$44 sps:$4 sm:$0xff]   ;;  %v10063_v24 = vld [vmem:[#allocation7 + $0x278] ss:$44 sps:$4 sm:$0xff]  }
 0x109   : > { %3881 = vmatprep.subr.bf16.mxu1 %v9984_v25  ;;  %v10066_v25 = vld [vmem:[#allocation7 + $0x7f8] ss:$44 sps:$4 sm:$0xff]  }
 0x10b   : > { %3841 = vmatpush1.bf16.msra.mxu0 %v9979_v26  ;;  %v10071_v26 = vld [vmem:[#allocation7 + $0x224] ss:$44 sps:$4 sm:$0xff]  }
 0x10c   : > { %3882 = vmatpush1.bf16.msra.mxu1 %v9982_v27  ;;  %3842 = vmatprep.subr.bf16.mxu0 %v9987_v28  ;;  %v10074_v27 = vld [vmem:[#allocation7 + $0x7a4] ss:$44 sps:$4 sm:$0xff]   ;;  %v10069_v28 = vld [vmem:[#allocation7 + $0x220] ss:$44 sps:$4 sm:$0xff]  }
 0x10d   : > { %3883 = vmatprep.subr.bf16.mxu1 %v9990_v29  ;;  %v10072_v29 = vld [vmem:[#allocation7 + $0x7a0] ss:$44 sps:$4 sm:$0xff]  }
 0x10f   : > { %3843 = vmatpush1.bf16.msra.mxu0 %v9985_v30  ;;  %v10077_v30 = vld [vmem:[#allocation7 + $0x1cc] ss:$44 sps:$4 sm:$0xff]  }
 0x110   : > { %3884 = vmatpush1.bf16.msra.mxu1 %v9988_v31  ;;  %3844 = vmatprep.subr.bf16.mxu0 %v9993_v32  ;;  %v10080_v31 = vld [vmem:[#allocation7 + $0x74c] ss:$44 sps:$4 sm:$0xff]   ;;  %v10075_v32 = vld [vmem:[#allocation7 + $0x1c8] ss:$44 sps:$4 sm:$0xff]  }
 0x111   : > { %3885 = vmatprep.subr.bf16.mxu1 %v9996_v33  ;;  %v10078_v33 = vld [vmem:[#allocation7 + $0x748] ss:$44 sps:$4 sm:$0xff]  }
 0x113   : > { %3845 = vmatpush1.bf16.msra.mxu0 %v9991_v34  ;;  %v10083_v34 = vld [vmem:[#allocation7 + $0x174] ss:$44 sps:$4 sm:$0xff]  }
 0x114   : > { %3886 = vmatpush1.bf16.msra.mxu1 %v9994_v36  ;;  %3846 = vmatprep.subr.bf16.mxu0 %v9999_v37  ;;  %v10086_v36 = vld [vmem:[#allocation7 + $0x6f4] ss:$44 sps:$4 sm:$0xff]   ;;  %v10081_v37 = vld [vmem:[#allocation7 + $0x170] ss:$44 sps:$4 sm:$0xff]  }
 0x115   : > { %3887 = vmatprep.subr.bf16.mxu1 %v10002_v38  ;;  %v10084_v38 = vld [vmem:[#allocation7 + $0x6f0] ss:$44 sps:$4 sm:$0xff]  }
 0x117   : > { %3847 = vmatpush1.bf16.msra.mxu0 %v9997_v39  ;;  %v10089_v39 = vld [vmem:[#allocation7 + $0x11c] ss:$44 sps:$4 sm:$0xff]  }
 0x118   : > { %3888 = vmatpush1.bf16.msra.mxu1 %v10000_v40  ;;  %3848 = vmatprep.subr.bf16.mxu0 %v10005_v41  ;;  %v10092_v40 = vld [vmem:[#allocation7 + $0x69c] ss:$44 sps:$4 sm:$0xff]   ;;  %v10087_v41 = vld [vmem:[#allocation7 + $0x118] ss:$44 sps:$4 sm:$0xff]  }
 0x119   : > { %3889 = vmatprep.subr.bf16.mxu1 %v10008_v42  ;;  %v10090_v42 = vld [vmem:[#allocation7 + $0x698] ss:$44 sps:$4 sm:$0xff]  }
 0x11b   : > { %3849 = vmatpush1.bf16.msra.mxu0 %v10003_v43  ;;  %v10095_v43 = vld [vmem:[#allocation7 + $0xc4] ss:$44 sps:$4 sm:$0xff]  }
 0x11c   : > { %3890 = vmatpush1.bf16.msra.mxu1 %v10006_v44  ;;  %3850 = vmatprep.subr.bf16.mxu0 %v10011_v45  ;;  %v10098_v44 = vld [vmem:[#allocation7 + $0x644] ss:$44 sps:$4 sm:$0xff]   ;;  %v10093_v45 = vld [vmem:[#allocation7 + $0xc0] ss:$44 sps:$4 sm:$0xff]  }
 0x11d   : > { %3891 = vmatprep.subr.bf16.mxu1 %v10014_v46  ;;  %v10096_v46 = vld [vmem:[#allocation7 + $0x640] ss:$44 sps:$4 sm:$0xff]  }
 0x11f   : > { %3851 = vmatpush1.bf16.msra.mxu0 %v10009_v47  ;;  %v10101_v47 = vld [vmem:[#allocation7 + $0x6c] ss:$44 sps:$4 sm:$0xff]  }
 0x120   : > { %3892 = vmatpush1.bf16.msra.mxu1 %v10012_v49  ;;  %3852 = vmatprep.subr.bf16.mxu0 %v10017_v50  ;;  %v10104_v49 = vld [vmem:[#allocation7 + $0x5ec] ss:$44 sps:$4 sm:$0xff]   ;;  %v10099_v50 = vld [vmem:[#allocation7 + $0x68] ss:$44 sps:$4 sm:$0xff]  }
 0x121   : > { %3893 = vmatprep.subr.bf16.mxu1 %v10020_v51  ;;  %v10102_v51 = vld [vmem:[#allocation7 + $0x5e8] ss:$44 sps:$4 sm:$0xff]  }
 0x123   : > { %3853 = vmatpush2.bf16.msra.mxu0 %v10015_v53  ;;  %v10107_v53 = vld [vmem:[#allocation7 + $0x14] ss:$44 sps:$4 sm:$0xff]  }
 0x124   : > { %3894 = vmatpush2.bf16.msra.mxu1 %v10018_v54  ;;  %3854 = vmatprep.subr.bf16.mxu0 %v10023_v55  ;;  %v10110_v54 = vld [vmem:[#allocation7 + $0x594] ss:$44 sps:$4 sm:$0xff]   ;;  %v10105_v55 = vld [vmem:[#allocation7 + $0x10] ss:$44 sps:$4 sm:$0xff]  }
 0x125   : > { %3895 = vmatprep.subr.bf16.mxu1 %v10026_v56  ;;  %v10108_v56 = vld [vmem:[#allocation7 + $0x590] ss:$44 sps:$4 sm:$0xff]  }
 0x127   : > { %3855 = vmatpush2.bf16.msra.mxu0 %v10021_v57  ;;  %v10113_v57 = vld [vmem:[#allocation7 + $0x53c] ss:$44 sps:$4 sm:$0xff]  }
 0x128   : > { %3896 = vmatpush2.bf16.msra.mxu1 %v10024_v58  ;;  %3856 = vmatprep.subr.bf16.mxu0 %v10029_v59  ;;  %v10116_v58 = vld [vmem:[#allocation7 + $0xabc] ss:$44 sps:$4 sm:$0xff]   ;;  %v10111_v59 = vld [vmem:[#allocation7 + $0x538] ss:$44 sps:$4 sm:$0xff]  }
 0x129   : > { %3897 = vmatprep.subr.bf16.mxu1 %v10032_v60  ;;  %v10114_v60 = vld [vmem:[#allocation7 + $0xab8] ss:$44 sps:$4 sm:$0xff]  }
 0x12b   : > { %3857 = vmatpush2.bf16.msra.mxu0 %v10027_v61  ;;  %v10119_v61 = vld [vmem:[#allocation7 + $0x4e4] ss:$44 sps:$4 sm:$0xff]  }
 0x12c   : > { %3898 = vmatpush2.bf16.msra.mxu1 %v10030_v62  ;;  %3858 = vmatprep.subr.bf16.mxu0 %v10035_v63  ;;  %v10122_v62 = vld [vmem:[#allocation7 + $0xa64] ss:$44 sps:$4 sm:$0xff]   ;;  %v10117_v63 = vld [vmem:[#allocation7 + $0x4e0] ss:$44 sps:$4 sm:$0xff]  }
 0x12d   : > { %3899 = vmatprep.subr.bf16.mxu1 %v10038_v0  ;;  %v10120_v0 = vld [vmem:[#allocation7 + $0xa60] ss:$44 sps:$4 sm:$0xff]  }
 0x12f   : > { %3859 = vmatpush2.bf16.msra.mxu0 %v10033_v1  ;;  %v10125_v1 = vld [vmem:[#allocation7 + $0x48c] ss:$44 sps:$4 sm:$0xff]  }
 0x130   : > { %3900 = vmatpush2.bf16.msra.mxu1 %v10036_v2  ;;  %3860 = vmatprep.subr.bf16.mxu0 %v10041_v3  ;;  %v10128_v2 = vld [vmem:[#allocation7 + $0xa0c] ss:$44 sps:$4 sm:$0xff]   ;;  %v10123_v3 = vld [vmem:[#allocation7 + $0x488] ss:$44 sps:$4 sm:$0xff]  }
 0x131   : > { %3901 = vmatprep.subr.bf16.mxu1 %v10044_v4  ;;  %v10126_v4 = vld [vmem:[#allocation7 + $0xa08] ss:$44 sps:$4 sm:$0xff]  }
 0x133   : > { %3861 = vmatpush2.bf16.msra.mxu0 %v10039_v5  ;;  %v10131_v5 = vld [vmem:[#allocation7 + $0x434] ss:$44 sps:$4 sm:$0xff]  }
 0x134   : > { %3902 = vmatpush2.bf16.msra.mxu1 %v10042_v6  ;;  %3862 = vmatprep.subr.bf16.mxu0 %v10047_v7  ;;  %v10134_v6 = vld [vmem:[#allocation7 + $0x9b4] ss:$44 sps:$4 sm:$0xff]   ;;  %v10129_v7 = vld [vmem:[#allocation7 + $0x430] ss:$44 sps:$4 sm:$0xff]  }
 0x135   : > { %3903 = vmatprep.subr.bf16.mxu1 %v10050_v9  ;;  %v10132_v9 = vld [vmem:[#allocation7 + $0x9b0] ss:$44 sps:$4 sm:$0xff]  }
 0x137   : > { %3863 = vmatpush2.bf16.msra.mxu0 %v10045_v10  ;;  %v10137_v10 = vld [vmem:[#allocation7 + $0x3dc] ss:$44 sps:$4 sm:$0xff]  }
 0x138   : > { %3904 = vmatpush2.bf16.msra.mxu1 %v10048_v12  ;;  %3864 = vmatprep.subr.bf16.mxu0 %v10053_v13  ;;  %v10140_v12 = vld [vmem:[#allocation7 + $0x95c] ss:$44 sps:$4 sm:$0xff]   ;;  %v10135_v13 = vld [vmem:[#allocation7 + $0x3d8] ss:$44 sps:$4 sm:$0xff]  }
 0x139   : > { %3905 = vmatprep.subr.bf16.mxu1 %v10056_v14  ;;  %v10138_v14 = vld [vmem:[#allocation7 + $0x958] ss:$44 sps:$4 sm:$0xff]  }
 0x13b   : > { %3865 = vmatpush2.bf16.msra.mxu0 %v10051_v15  ;;  %v10143_v15 = vld [vmem:[#allocation7 + $0x384] ss:$44 sps:$4 sm:$0xff]  }
 0x13c   : > { %3906 = vmatpush2.bf16.msra.mxu1 %v10054_v16  ;;  %3866 = vmatprep.subr.bf16.mxu0 %v10059_v18  ;;  %v10146_v16 = vld [vmem:[#allocation7 + $0x904] ss:$44 sps:$4 sm:$0xff]   ;;  %v10141_v18 = vld [vmem:[#allocation7 + $0x380] ss:$44 sps:$4 sm:$0xff]  }
 0x13d   : > { %3907 = vmatprep.subr.bf16.mxu1 %v10062_v19  ;;  %v10144_v19 = vld [vmem:[#allocation7 + $0x900] ss:$44 sps:$4 sm:$0xff]  }
 0x13f   : > { %3867 = vmatpush2.bf16.msra.mxu0 %v10057_v20  ;;  %v10149_v20 = vld [vmem:[#allocation7 + $0x32c] ss:$44 sps:$4 sm:$0xff]  }
 0x140   : > { %3908 = vmatpush2.bf16.msra.mxu1 %v10060_v21  ;;  %3918 = vmatprep.subr.bf16.mxu0 %v10065_v22  ;;  %v929_v21 = vlaneseq  ;;  %v10152_v22 = vld [vmem:[#allocation7 + $0x8ac] ss:$44 sps:$4 sm:$0xff]  }
 0x141   : > { %3959 = vmatprep.subr.bf16.mxu1 %v10068_v23  ;;  %v10147_v23 = vld [vmem:[#allocation7 + $0x328] ss:$44 sps:$4 sm:$0xff]  }
 0x142   : > { %3869 = vmatmul.mubr.bf16.vlgmr.msra.gmra.mxu0 %v11785_v11 }
 0x143   : > { %3910 = vmatmul.mubr.bf16.vlgmr.msra.gmra.mxu1 %v11795_v17  ;;  %3919 = vmatpush1.bf16.msra.mxu0 %v10063_v24  ;;  %v10150_v24 = vld [vmem:[#allocation7 + $0x8a8] ss:$44 sps:$4 sm:$0xff]  }
 0x144   : > { %3960 = vmatpush1.bf16.msra.mxu1 %v10066_v25  ;;  %3920 = vmatprep.subr.bf16.mxu0 %v10071_v26  ;;  %v10155_v25 = vld [vmem:[#allocation7 + $0x2d4] ss:$44 sps:$4 sm:$0xff]   ;;  %v11805_v26 = vshrl.u32 %v929_v21, 7  ;;  %v10209_v21 = vld [vmem:[#allocation7 + $0x103c] ss:$44 sps:$4 sm:$0xff]  }
 0x145   : > { %3961 = vmatprep.subr.bf16.mxu1 %v10074_v27  ;;  %3950 = vmatprep.mubr.bf16.mxu0 %v11774_v48  ;;  %v10158_v27 = vld [vmem:[#allocation7 + $0x854] ss:$44 sps:$4 sm:$0xff]  }
 0x146   : > { %3991 = vmatprep.mubr.bf16.mxu1 %v11777_v52 }
 0x147   : > { %3921 = vmatpush1.bf16.msra.mxu0 %v10069_v28  ;;  %v10153_v28 = vld [vmem:[#allocation7 + $0x2d0] ss:$44 sps:$4 sm:$0xff]  }
 0x148   : > { %3962 = vmatpush1.bf16.msra.mxu1 %v10072_v29  ;;  %3922 = vmatprep.subr.bf16.mxu0 %v10077_v30  ;;  %v10156_v29 = vld [vmem:[#allocation7 + $0x850] ss:$44 sps:$4 sm:$0xff]   ;;  %v925_v30 = vld [vmem:[#allocation9] sm:$0xff] }
 0x149   : > { %3963 = vmatprep.subr.bf16.mxu1 %v10080_v31  ;;  %v11808_v31 = vsub.s32 0, %v11805_v26 }
 0x14b   : > { %3923 = vmatpush1.bf16.msra.mxu0 %v10075_v32  ;;  %v10161_v32 = vld [vmem:[#allocation7 + $0xd7c] ss:$44 sps:$4 sm:$0xff]  }
 0x14c   : > { %3964 = vmatpush1.bf16.msra.mxu1 %v10078_v33  ;;  %3924 = vmatprep.subr.bf16.mxu0 %v10083_v34  ;;  %v10164_v33 = vld [vmem:[#allocation7 + $0x284] ss:$44 sps:$4 sm:$0xff]   ;;  %v11811_v34 = vsub.s32 1, %v11805_v26 }
 0x14d   : > { %3965 = vmatprep.subr.bf16.mxu1 %v10086_v36  ;;  %v10159_v36 = vld [vmem:[#allocation7 + $0xd78] ss:$44 sps:$4 sm:$0xff]  }
 0x14f   : > { %3925 = vmatpush1.bf16.msra.mxu0 %v10081_v37  ;;  %v932_v37 = vrot.slane %v925_v30, %v11808_v31 }
 0x150   : > { %3966 = vmatpush1.bf16.msra.mxu1 %v10084_v38  ;;  %3926 = vmatprep.subr.bf16.mxu0 %v10089_v39  ;;  %v10162_v38 = vld [vmem:[#allocation7 + $0x280] ss:$44 sps:$4 sm:$0xff]   ;;  %v10167_v39 = vld [vmem:[#allocation7 + $0xd24] ss:$44 sps:$4 sm:$0xff]  }
 0x151   : > { %3967 = vmatprep.subr.bf16.mxu1 %v10092_v40  ;;  %v10170_v40 = vld [vmem:[#allocation7 + $0x22c] ss:$44 sps:$4 sm:$0xff]  }
 0x153   : > { %3927 = vmatpush1.bf16.msra.mxu0 %v10087_v41  ;;  %v936_v41 = vrot.slane %v925_v30, %v11811_v34  ;;  %v10221_v30 = vld [vmem:[#allocation7 + $0xf8c] ss:$44 sps:$4 sm:$0xff]  }
 0x154   : > { %3968 = vmatpush1.bf16.msra.mxu1 %v10090_v42  ;;  %3928 = vmatprep.subr.bf16.mxu0 %v10095_v43 }
 0x155   : > { %3969 = vmatprep.subr.bf16.mxu1 %v10098_v44  ;;  %v10165_v44 = vld [vmem:[#allocation7 + $0xd20] ss:$44 sps:$4 sm:$0xff]  }
 0x157   : > { %3929 = vmatpush1.bf16.msra.mxu0 %v10093_v45 }
 0x158   : > { %3970 = vmatpush1.bf16.msra.mxu1 %v10096_v46  ;;  %3930 = vmatprep.subr.bf16.mxu0 %v10101_v47  ;;  %v10168_v46 = vld [vmem:[#allocation7 + $0x228] ss:$44 sps:$4 sm:$0xff]   ;;  %v10173_v47 = vld [vmem:[#allocation7 + $0xccc] ss:$44 sps:$4 sm:$0xff]  }
 0x159   : > { %3971 = vmatprep.subr.bf16.mxu1 %v10104_v49 }
 0x15b   : > { %3931 = vmatpush1.bf16.msra.mxu0 %v10099_v50 }
 0x15c   : > { %3972 = vmatpush1.bf16.msra.mxu1 %v10102_v51  ;;  %3932 = vmatprep.subr.bf16.mxu0 %v10107_v53  ;;  %v10176_v51 = vld [vmem:[#allocation7 + $0x1d4] ss:$44 sps:$4 sm:$0xff]  }
 0x15d   : > { %3973 = vmatprep.subr.bf16.mxu1 %v10110_v54 }
 0x15f   : > { %3933 = vmatpush1.bf16.msra.mxu0 %v10105_v55 }
 0x160   : > { %3974 = vmatpush1.bf16.msra.mxu1 %v10108_v56  ;;  %3934 = vmatprep.subr.bf16.mxu0 %v10113_v57  ;;  %v10171_v56 = vld [vmem:[#allocation7 + $0xcc8] ss:$44 sps:$4 sm:$0xff]   ;;  %v10174_v57 = vld [vmem:[#allocation7 + $0x1d0] ss:$44 sps:$4 sm:$0xff]  }
 0x161   : > { %3975 = vmatprep.subr.bf16.mxu1 %v10116_v58 }
 0x163   : > { %3935 = vmatpush2.bf16.msra.mxu0 %v10111_v59 }
 0x164   : > { %3976 = vmatpush2.bf16.msra.mxu1 %v10114_v60  ;;  %3936 = vmatprep.subr.bf16.mxu0 %v10119_v61  ;;  %v10179_v61 = vld [vmem:[#allocation7 + $0xc74] ss:$44 sps:$4 sm:$0xff]  }
 0x165   : > { %3977 = vmatprep.subr.bf16.mxu1 %v10122_v62  ;;  %v10182_v62 = vld [vmem:[#allocation7 + $0x17c] ss:$44 sps:$4 sm:$0xff]  }
 0x167   : > { %3937 = vmatpush2.bf16.msra.mxu0 %v10117_v63 }
 0x168   : > { %3978 = vmatpush2.bf16.msra.mxu1 %v10120_v0  ;;  %3938 = vmatprep.subr.bf16.mxu0 %v10125_v1  ;;  %v10177_v0 = vld [vmem:[#allocation7 + $0xc70] ss:$44 sps:$4 sm:$0xff]   ;;  %v10180_v1 = vld [vmem:[#allocation7 + $0x178] ss:$44 sps:$4 sm:$0xff]  }
 0x169   : > { %3979 = vmatprep.subr.bf16.mxu1 %v10128_v2  ;;  %v10185_v2 = vld [vmem:[#allocation7 + $0xc1c] ss:$44 sps:$4 sm:$0xff]  }
 0x16b   : > { %3939 = vmatpush2.bf16.msra.mxu0 %v10123_v3  ;;  %v10188_v3 = vld [vmem:[#allocation7 + $0x124] ss:$44 sps:$4 sm:$0xff]  }
 0x16c   : > { %3980 = vmatpush2.bf16.msra.mxu1 %v10126_v4  ;;  %3940 = vmatprep.subr.bf16.mxu0 %v10131_v5  ;;  %v10183_v4 = vld [vmem:[#allocation7 + $0xc18] ss:$44 sps:$4 sm:$0xff]   ;;  %v10186_v5 = vld [vmem:[#allocation7 + $0x120] ss:$44 sps:$4 sm:$0xff]  }
 0x16d   : > { %3981 = vmatprep.subr.bf16.mxu1 %v10134_v6  ;;  %v10191_v6 = vld [vmem:[#allocation7 + $0xbc4] ss:$44 sps:$4 sm:$0xff]  }
 0x16f   : > { %3941 = vmatpush2.bf16.msra.mxu0 %v10129_v7  ;;  %v10194_v7 = vld [vmem:[#allocation7 + $0xcc] ss:$44 sps:$4 sm:$0xff]  }
 0x170   : > { %3982 = vmatpush2.bf16.msra.mxu1 %v10132_v9  ;;  %3942 = vmatprep.subr.bf16.mxu0 %v10137_v10  ;;  %v10189_v9 = vld [vmem:[#allocation7 + $0xbc0] ss:$44 sps:$4 sm:$0xff]   ;;  %v10192_v10 = vld [vmem:[#allocation7 + $0xc8] ss:$44 sps:$4 sm:$0xff]  }
 0x171   : > { %3983 = vmatprep.subr.bf16.mxu1 %v10140_v12  ;;  %v10197_v12 = vld [vmem:[#allocation7 + $0xb6c] ss:$44 sps:$4 sm:$0xff]  }
 0x173   : > { %3943 = vmatpush2.bf16.msra.mxu0 %v10135_v13  ;;  %v10200_v13 = vld [vmem:[#allocation7 + $0x74] ss:$44 sps:$4 sm:$0xff]  }
 0x174   : > { %3984 = vmatpush2.bf16.msra.mxu1 %v10138_v14  ;;  %3944 = vmatprep.subr.bf16.mxu0 %v10143_v15  ;;  %v10195_v14 = vld [vmem:[#allocation7 + $0xb68] ss:$44 sps:$4 sm:$0xff]   ;;  %v10198_v15 = vld [vmem:[#allocation7 + $0x70] ss:$44 sps:$4 sm:$0xff]  }
 0x175   : > { %3985 = vmatprep.subr.bf16.mxu1 %v10146_v16  ;;  %v10203_v16 = vld [vmem:[#allocation7 + $0xb14] ss:$44 sps:$4 sm:$0xff]  }
 0x177   : > { %3945 = vmatpush2.bf16.msra.mxu0 %v10141_v18  ;;  %v10206_v18 = vld [vmem:[#allocation7 + $0x1c] ss:$44 sps:$4 sm:$0xff]  }
 0x178   : > { %3986 = vmatpush2.bf16.msra.mxu1 %v10144_v19  ;;  %3946 = vmatprep.subr.bf16.mxu0 %v10149_v20  ;;  %v10201_v19 = vld [vmem:[#allocation7 + $0xb10] ss:$44 sps:$4 sm:$0xff]   ;;  %v10204_v20 = vld [vmem:[#allocation7 + $0x18] ss:$44 sps:$4 sm:$0xff]  }
 0x179   : > { %3987 = vmatprep.subr.bf16.mxu1 %v10152_v22  ;;  %v10212_v22 = vld [vmem:[#allocation7 + $0x544] ss:$44 sps:$4 sm:$0xff]  }
 0x17b   : > { %3947 = vmatpush2.bf16.msra.mxu0 %v10147_v23  ;;  %v10207_v23 = vld [vmem:[#allocation7 + $0x1038] ss:$44 sps:$4 sm:$0xff]  }
 0x17c   : > { %3988 = vmatpush2.bf16.msra.mxu1 %v10150_v24  ;;  %3948 = vmatprep.subr.bf16.mxu0 %v10155_v25  ;;  %v10210_v24 = vld [vmem:[#allocation7 + $0x540] ss:$44 sps:$4 sm:$0xff]   ;;  %v10215_v25 = vld [vmem:[#allocation7 + $0xfe4] ss:$44 sps:$4 sm:$0xff]  }
 0x17d   : > { %3989 = vmatprep.subr.bf16.mxu1 %v10158_v27  ;;  %v10218_v27 = vld [vmem:[#allocation7 + $0x4ec] ss:$44 sps:$4 sm:$0xff]  }
 0x17f   : > { %3949 = vmatpush2.bf16.msra.mxu0 %v10153_v28  ;;  %v10213_v28 = vld [vmem:[#allocation7 + $0xfe0] ss:$44 sps:$4 sm:$0xff]  }
 0x180   : > { %3990 = vmatpush2.bf16.msra.mxu1 %v10156_v29  ;;  %4000 = vmatprep.subr.bf16.mxu0 %v10161_v32  ;;  %v10216_v29 = vld [vmem:[#allocation7 + $0x4e8] ss:$44 sps:$4 sm:$0xff]  }
 0x181   : > { %4041 = vmatprep.subr.bf16.mxu1 %v10164_v33  ;;  %v10224_v32 = vld [vmem:[#allocation7 + $0x494] ss:$44 sps:$4 sm:$0xff]  }
 0x182   : > { %v3706_v42 = vpop.f32.mrf.mxu0  ;;  %3951 = vmatmul.mubr.bf16.vlgmr.msra.gmra.mxu0 %v11783_v8  ;;  %v10219_v33 = vld [vmem:[#allocation7 + $0xf88] ss:$44 sps:$4 sm:$0xff]  }
 0x183   : > { %3992 = vmatmul.mubr.bf16.vlgmr.msra.gmra.mxu1 %v11785_v11  ;;  %v3747_v43 = vpop.f32.mrf.mxu1  ;;  %v3707_v45 = vadd.f32 %v3706_v42, %v932_v37  ;;  %4001 = vmatpush1.bf16.msra.mxu0 %v10159_v36  ;;  %v10222_v36 = vld [vmem:[#allocation7 + $0x490] ss:$44 sps:$4 sm:$0xff]   ;;  %v10227_v37 = vld [vmem:[#allocation7 + $0xf34] ss:$44 sps:$4 sm:$0xff]  }
 0x184   : > { %4042 = vmatpush1.bf16.msra.mxu1 %v10162_v38  ;;  %v3708_v49 = vpop.f32.mrf.mxu0  ;;  %4002 = vmatprep.subr.bf16.mxu0 %v10167_v39  ;;  %v10230_v38 = vld [vmem:[#allocation7 + $0x43c] ss:$44 sps:$4 sm:$0xff]   ;;  %v10236_v42 = vld [vmem:[#allocation7 + $0x3e4] ss:$44 sps:$4 sm:$0xff]  }
 0x185   : > { %v3749_v50 = vpop.f32.mrf.mxu1  ;;  %4043 = vmatprep.subr.bf16.mxu1 %v10170_v40  ;;  %v3709_v53 = vadd.f32 %v3708_v49, %v936_v41  ;;  %v11817_v54 = vadd.f32 %v3747_v43, %v3707_v45  ;;  %4032 = vmatprep.mubr.bf16.mxu0 %v11791_v35  ;;  %v10225_v39 = vld [vmem:[#allocation7 + $0xf30] ss:$44 sps:$4 sm:$0xff]   ;;  %v10228_v40 = vld [vmem:[#allocation7 + $0x438] ss:$44 sps:$4 sm:$0xff]   ;;  %v10240_v49 = vld [vmem:[#allocation7 + $0x388] ss:$44 sps:$4 sm:$0xff]  }
 0x186   : > { %4073 = vmatprep.mubr.bf16.mxu1 %v11774_v48  ;;  %v3710_v55 = vpop.f32.mrf.mxu0  ;;  %v10233_v41 = vld [vmem:[#allocation7 + $0xedc] ss:$44 sps:$4 sm:$0xff]   ;;  %v10231_v43 = vld [vmem:[#allocation7 + $0xed8] ss:$44 sps:$4 sm:$0xff]  }
 0x187   : > { %v3751_v58 = vpop.f32.mrf.mxu1  ;;  %v11821_v59 = vadd.f32 %v3749_v50, %v3709_v53  ;;  %4003 = vmatpush1.bf16.msra.mxu0 %v10165_v44  ;;  %v10234_v44 = vld [vmem:[#allocation7 + $0x3e0] ss:$44 sps:$4 sm:$0xff]   ;;  %v10239_v45 = vld [vmem:[#allocation7 + $0xe84] ss:$44 sps:$4 sm:$0xff]   ;;  %v10243_v53 = vld [vmem:[#allocation7 + $0xe28] ss:$44 sps:$4 sm:$0xff]  }
 0x188   : > { %4044 = vmatpush1.bf16.msra.mxu1 %v10168_v46  ;;  %v3711_v60 = vpop.f32.mrf.mxu0  ;;  %4004 = vmatprep.subr.bf16.mxu0 %v10173_v47  ;;  %v10242_v46 = vld [vmem:[#allocation7 + $0x38c] ss:$44 sps:$4 sm:$0xff]   ;;  %v10246_v55 = vld [vmem:[#allocation7 + $0x330] ss:$44 sps:$4 sm:$0xff]  }
 0x189   : > { %4045 = vmatprep.subr.bf16.mxu1 %v10176_v51  ;;  %v3752_v63 = vpop.f32.mrf.mxu1  ;;  %v10237_v47 = vld [vmem:[#allocation7 + $0xe80] ss:$44 sps:$4 sm:$0xff]   ;;  %v10249_v58 = vld [vmem:[#allocation7 + $0xdd0] ss:$44 sps:$4 sm:$0xff]   ;;  %v10252_v60 = vld [vmem:[#allocation7 + $0x2d8] ss:$44 sps:$4 sm:$0xff]  }
 0x18a   : > { %v10245_v50 = vld [vmem:[#allocation7 + $0xe2c] ss:$44 sps:$4 sm:$0xff]   ;;  %v10248_v51 = vld [vmem:[#allocation7 + $0x334] ss:$44 sps:$4 sm:$0xff]  }
 0x18b   : > { %4005 = vmatpush1.bf16.msra.mxu0 %v10171_v56  ;;  %v10251_v56 = vld [vmem:[#allocation7 + $0xdd4] ss:$44 sps:$4 sm:$0xff]  }
 0x18c   : > { %4046 = vmatpush1.bf16.msra.mxu1 %v10174_v57  ;;  %4006 = vmatprep.subr.bf16.mxu0 %v10179_v61  ;;  %v10254_v57 = vld [vmem:[#allocation7 + $0x2dc] ss:$44 sps:$4 sm:$0xff]   ;;  %v10257_v61 = vld [vmem:[#allocation7 + $0x804] ss:$44 sps:$4 sm:$0xff]   ;;  %v10255_v63 = vld [vmem:[#allocation7 + $0x800] ss:$44 sps:$4 sm:$0xff]  }
 0x18d   : > { %4047 = vmatprep.subr.bf16.mxu1 %v10182_v62  ;;  %v10260_v62 = vld [vmem:[#allocation7 + $0xd84] ss:$44 sps:$4 sm:$0xff]  }
 0x18f   : > { %4007 = vmatpush1.bf16.msra.mxu0 %v10177_v0  ;;  %v10258_v0 = vld [vmem:[#allocation7 + $0xd80] ss:$44 sps:$4 sm:$0xff]  }
 0x190   : > { %4048 = vmatpush1.bf16.msra.mxu1 %v10180_v1  ;;  %4008 = vmatprep.subr.bf16.mxu0 %v10185_v2  ;;  %v10263_v1 = vld [vmem:[#allocation7 + $0x7ac] ss:$44 sps:$4 sm:$0xff]  }
 0x191   : > { %4049 = vmatprep.subr.bf16.mxu1 %v10188_v3  ;;  %v10266_v2 = vld [vmem:[#allocation7 + $0xd2c] ss:$44 sps:$4 sm:$0xff]   ;;  %v10261_v3 = vld [vmem:[#allocation7 + $0x7a8] ss:$44 sps:$4 sm:$0xff]  }
 0x193   : > { %4009 = vmatpush1.bf16.msra.mxu0 %v10183_v4  ;;  %v10264_v4 = vld [vmem:[#allocation7 + $0xd28] ss:$44 sps:$4 sm:$0xff]  }
 0x194   : > { %4050 = vmatpush1.bf16.msra.mxu1 %v10186_v5  ;;  %4010 = vmatprep.subr.bf16.mxu0 %v10191_v6 }
 0x195   : > { %4051 = vmatprep.subr.bf16.mxu1 %v10194_v7 }
 0x197   : > { %4011 = vmatpush1.bf16.msra.mxu0 %v10189_v9 }
 0x198   : > { %4052 = vmatpush1.bf16.msra.mxu1 %v10192_v10  ;;  %4012 = vmatprep.subr.bf16.mxu0 %v10197_v12  ;;  %v10269_v10 = vld [vmem:[#allocation7 + $0x754] ss:$44 sps:$4 sm:$0xff]  }
 0x199   : > { %4053 = vmatprep.subr.bf16.mxu1 %v10200_v13  ;;  %v10272_v12 = vld [vmem:[#allocation7 + $0xcd4] ss:$44 sps:$4 sm:$0xff]  }
 0x19b   : > { %4013 = vmatpush1.bf16.msra.mxu0 %v10195_v14 }
 0x19c   : > { %4054 = vmatpush1.bf16.msra.mxu1 %v10198_v15  ;;  %4014 = vmatprep.subr.bf16.mxu0 %v10203_v16  ;;  %v10267_v15 = vld [vmem:[#allocation7 + $0x750] ss:$44 sps:$4 sm:$0xff]  }
 0x19d   : > { %4055 = vmatprep.subr.bf16.mxu1 %v10206_v18  ;;  %v10270_v16 = vld [vmem:[#allocation7 + $0xcd0] ss:$44 sps:$4 sm:$0xff]  }
 0x19f   : > { %4015 = vmatpush1.bf16.msra.mxu0 %v10201_v19 }
 0x1a0   : > { %4056 = vmatpush1.bf16.msra.mxu1 %v10204_v20  ;;  %4016 = vmatprep.subr.bf16.mxu0 %v10209_v21  ;;  %v10275_v20 = vld [vmem:[#allocation7 + $0x6fc] ss:$44 sps:$4 sm:$0xff]  }
 0x1a1   : > { %4057 = vmatprep.subr.bf16.mxu1 %v10212_v22  ;;  %v10278_v21 = vld [vmem:[#allocation7 + $0xc7c] ss:$44 sps:$4 sm:$0xff]  }
 0x1a3   : > { %4017 = vmatpush2.bf16.msra.mxu0 %v10207_v23  ;;  %v10273_v23 = vld [vmem:[#allocation7 + $0x6f8] ss:$44 sps:$4 sm:$0xff]  }
 0x1a4   : > { %4058 = vmatpush2.bf16.msra.mxu1 %v10210_v24  ;;  %4018 = vmatprep.subr.bf16.mxu0 %v10215_v25  ;;  %v10281_v24 = vld [vmem:[#allocation7 + $0x6a4] ss:$44 sps:$4 sm:$0xff]  }
 0x1a5   : > { %4059 = vmatprep.subr.bf16.mxu1 %v10218_v27  ;;  %v10284_v25 = vld [vmem:[#allocation7 + $0xc24] ss:$44 sps:$4 sm:$0xff]   ;;  %v10279_v27 = vld [vmem:[#allocation7 + $0x6a0] ss:$44 sps:$4 sm:$0xff]  }
 0x1a7   : > { %4019 = vmatpush2.bf16.msra.mxu0 %v10213_v28  ;;  %v10282_v28 = vld [vmem:[#allocation7 + $0xc20] ss:$44 sps:$4 sm:$0xff]  }
 0x1a8   : > { %4060 = vmatpush2.bf16.msra.mxu1 %v10216_v29  ;;  %4020 = vmatprep.subr.bf16.mxu0 %v10221_v30  ;;  %v10287_v29 = vld [vmem:[#allocation7 + $0x64c] ss:$44 sps:$4 sm:$0xff]  }
 0x1a9   : > { %4061 = vmatprep.subr.bf16.mxu1 %v10224_v32  ;;  %v10290_v30 = vld [vmem:[#allocation7 + $0xbcc] ss:$44 sps:$4 sm:$0xff]   ;;  %v10285_v32 = vld [vmem:[#allocation7 + $0x648] ss:$44 sps:$4 sm:$0xff]  }
 0x1ab   : > { %4021 = vmatpush2.bf16.msra.mxu0 %v10219_v33  ;;  %v10288_v33 = vld [vmem:[#allocation7 + $0xbc8] ss:$44 sps:$4 sm:$0xff]  }
 0x1ac   : > { %4062 = vmatpush2.bf16.msra.mxu1 %v10222_v36  ;;  %4022 = vmatprep.subr.bf16.mxu0 %v10227_v37  ;;  %v10293_v36 = vld [vmem:[#allocation7 + $0x5f4] ss:$44 sps:$4 sm:$0xff]  }
 0x1ad   : > { %4063 = vmatprep.subr.bf16.mxu1 %v10230_v38  ;;  %v10296_v37 = vld [vmem:[#allocation7 + $0xb74] ss:$44 sps:$4 sm:$0xff]   ;;  %v10291_v38 = vld [vmem:[#allocation7 + $0x5f0] ss:$44 sps:$4 sm:$0xff]  }
 0x1af   : > { %4023 = vmatpush2.bf16.msra.mxu0 %v10225_v39  ;;  %v10294_v39 = vld [vmem:[#allocation7 + $0xb70] ss:$44 sps:$4 sm:$0xff]  }
 0x1b0   : > { %4064 = vmatpush2.bf16.msra.mxu1 %v10228_v40  ;;  %4024 = vmatprep.subr.bf16.mxu0 %v10233_v41  ;;  %v10299_v40 = vld [vmem:[#allocation7 + $0x59c] ss:$44 sps:$4 sm:$0xff]  }
 0x1b1   : > { %4065 = vmatprep.subr.bf16.mxu1 %v10236_v42  ;;  %v10302_v41 = vld [vmem:[#allocation7 + $0xb1c] ss:$44 sps:$4 sm:$0xff]   ;;  %v10297_v42 = vld [vmem:[#allocation7 + $0x598] ss:$44 sps:$4 sm:$0xff]  }
 0x1b3   : > { %4025 = vmatpush2.bf16.msra.mxu0 %v10231_v43  ;;  %v10300_v43 = vld [vmem:[#allocation7 + $0xb18] ss:$44 sps:$4 sm:$0xff]  }
 0x1b4   : > { %4066 = vmatpush2.bf16.msra.mxu1 %v10234_v44  ;;  %4026 = vmatprep.subr.bf16.mxu0 %v10239_v45  ;;  %v10305_v44 = vld [vmem:[#allocation7 + $0xac4] ss:$44 sps:$4 sm:$0xff]  }
 0x1b5   : > { %4067 = vmatprep.subr.bf16.mxu1 %v10242_v46  ;;  %v10308_v45 = vld [vmem:[#allocation7 + $0x1044] ss:$44 sps:$4 sm:$0xff]   ;;  %v10303_v46 = vld [vmem:[#allocation7 + $0xac0] ss:$44 sps:$4 sm:$0xff]  }
 0x1b7   : > { %4027 = vmatpush2.bf16.msra.mxu0 %v10237_v47  ;;  %v10306_v47 = vld [vmem:[#allocation7 + $0x1040] ss:$44 sps:$4 sm:$0xff]  }
 0x1b8   : > { %4068 = vmatpush2.bf16.msra.mxu1 %v10240_v49  ;;  %4028 = vmatprep.subr.bf16.mxu0 %v10245_v50  ;;  %v10311_v49 = vld [vmem:[#allocation7 + $0xa6c] ss:$44 sps:$4 sm:$0xff]  }
 0x1b9   : > { %4069 = vmatprep.subr.bf16.mxu1 %v10248_v51  ;;  %v10314_v50 = vld [vmem:[#allocation7 + $0xfec] ss:$44 sps:$4 sm:$0xff]   ;;  %v10309_v51 = vld [vmem:[#allocation7 + $0xa68] ss:$44 sps:$4 sm:$0xff]  }
 0x1bb   : > { %4029 = vmatpush2.bf16.msra.mxu0 %v10243_v53  ;;  %v10312_v53 = vld [vmem:[#allocation7 + $0xfe8] ss:$44 sps:$4 sm:$0xff]  }
 0x1bc   : > { %4070 = vmatpush2.bf16.msra.mxu1 %v10246_v55  ;;  %4030 = vmatprep.subr.bf16.mxu0 %v10251_v56  ;;  %v10317_v55 = vld [vmem:[#allocation7 + $0xa14] ss:$44 sps:$4 sm:$0xff]  }
 0x1bd   : > { %4071 = vmatprep.subr.bf16.mxu1 %v10254_v57  ;;  %v10320_v56 = vld [vmem:[#allocation7 + $0xf94] ss:$44 sps:$4 sm:$0xff]   ;;  %v10315_v57 = vld [vmem:[#allocation7 + $0xa10] ss:$44 sps:$4 sm:$0xff]  }
 0x1bf   : > { %4031 = vmatpush2.bf16.msra.mxu0 %v10249_v58  ;;  %v10318_v58 = vld [vmem:[#allocation7 + $0xf90] ss:$44 sps:$4 sm:$0xff]  }
 0x1c0   : > { %4072 = vmatpush2.bf16.msra.mxu1 %v10252_v60  ;;  %4082 = vmatprep.subr.bf16.mxu0 %v10257_v61  ;;  %v10323_v60 = vld [vmem:[#allocation7 + $0x9bc] ss:$44 sps:$4 sm:$0xff]  }
 0x1c1   : > { %4123 = vmatprep.subr.bf16.mxu1 %v10260_v62  ;;  %v10326_v61 = vld [vmem:[#allocation7 + $0xf3c] ss:$44 sps:$4 sm:$0xff]   ;;  %v10321_v62 = vld [vmem:[#allocation7 + $0x9b8] ss:$44 sps:$4 sm:$0xff]  }
 0x1c2   : > { %v3788_v5 = vpop.f32.mrf.mxu0  ;;  %4033 = vmatmul.mubr.bf16.vlgmr.msra.gmra.mxu0 %v11795_v17 }
 0x1c3   : > { %4074 = vmatmul.mubr.bf16.vlgmr.msra.gmra.mxu1 %v11783_v8  ;;  %v11825_v6 = vpop.f32.mrf.mxu1  ;;  %v11828_v7 = vadd.f32 %v3788_v5, %v11817_v54  ;;  %4083 = vmatpush1.bf16.msra.mxu0 %v10255_v63  ;;  %v10324_v63 = vld [vmem:[#allocation7 + $0xf38] ss:$44 sps:$4 sm:$0xff]  }
 0x1c4   : > { %4124 = vmatpush1.bf16.msra.mxu1 %v10258_v0  ;;  %v3790_v9 = vpop.f32.mrf.mxu0  ;;  %4084 = vmatprep.subr.bf16.mxu0 %v10263_v1  ;;  %v10329_v0 = vld [vmem:[#allocation7 + $0x964] ss:$44 sps:$4 sm:$0xff]   ;;  %v10338_v5 = vld [vmem:[#allocation7 + $0xe8c] ss:$44 sps:$4 sm:$0xff]  }
 0x1c5   : > { %4125 = vmatprep.subr.bf16.mxu1 %v10266_v2  ;;  %v11830_v13 = vpop.f32.mrf.mxu1  ;;  %v11833_v14 = vadd.f32 %v3790_v9, %v11821_v59  ;;  %4114 = vmatprep.mubr.bf16.mxu0 %v11777_v52  ;;  %v10276_v59 = vld [vmem:[#allocation7 + $0xc78] ss:$44 sps:$4 sm:$0xff]   ;;  %v10327_v2 = vld [vmem:[#allocation7 + $0x960] ss:$44 sps:$4 sm:$0xff]   ;;  %v10333_v9 = vld [vmem:[#allocation7 + $0x908] ss:$44 sps:$4 sm:$0xff]  }
 0x1c6   : > { %4155 = vmatprep.mubr.bf16.mxu1 %v11791_v35  ;;  %v3792_v54 = vpop.f32.mrf.mxu0  ;;  %v10332_v1 = vld [vmem:[#allocation7 + $0xee4] ss:$44 sps:$4 sm:$0xff]  }
 0x1c7   : > { %v3833_v18 = vpop.f32.mrf.mxu1  ;;  %4085 = vmatpush1.bf16.msra.mxu0 %v10261_v3  ;;  %v10330_v3 = vld [vmem:[#allocation7 + $0xee0] ss:$44 sps:$4 sm:$0xff]   ;;  %v10342_v54 = vld [vmem:[#allocation7 + $0xe30] ss:$44 sps:$4 sm:$0xff]  }
 0x1c8   : > { %4126 = vmatpush1.bf16.msra.mxu1 %v10264_v4  ;;  %v3793_v19 = vpop.f32.mrf.mxu0  ;;  %4086 = vmatprep.subr.bf16.mxu0 %v10269_v10  ;;  %v10335_v4 = vld [vmem:[#allocation7 + $0x90c] ss:$44 sps:$4 sm:$0xff]   ;;  %v10336_v10 = vld [vmem:[#allocation7 + $0xe88] ss:$44 sps:$4 sm:$0xff]  }
 0x1c9   : > { %4127 = vmatprep.subr.bf16.mxu1 %v10272_v12  ;;  %v3834_v22 = vpop.f32.mrf.mxu1  ;;  %v10341_v12 = vld [vmem:[#allocation7 + $0x8b4] ss:$44 sps:$4 sm:$0xff]   ;;  %v10347_v18 = vld [vmem:[#allocation7 + $0x85c] ss:$44 sps:$4 sm:$0xff]  }
 0x1ca   : > { %v10350_v19 = vld [vmem:[#allocation7 + $0xddc] ss:$44 sps:$4 sm:$0xff]   ;;  %v943_v22 = vsub.s32 3, %v11805_v26 }
 0x1cb   : > { %4087 = vmatpush1.bf16.msra.mxu0 %v10267_v15  ;;  %v10344_v15 = vld [vmem:[#allocation7 + $0xe34] ss:$44 sps:$4 sm:$0xff]  }
 0x1cc   : > { %4128 = vmatpush1.bf16.msra.mxu1 %v10270_v16  ;;  %4088 = vmatprep.subr.bf16.mxu0 %v10275_v20  ;;  %v10339_v16 = vld [vmem:[#allocation7 + $0x8b0] ss:$44 sps:$4 sm:$0xff]   ;;  %v11838_v20 = vsub.s32 2, %v11805_v26 }
 0x1cd   : > { %4129 = vmatprep.subr.bf16.mxu1 %v10278_v21  ;;  %v10345_v21 = vld [vmem:[#allocation7 + $0x858] ss:$44 sps:$4 sm:$0xff]  }
 0x1cf   : > { %4089 = vmatpush1.bf16.msra.mxu0 %v10273_v23  ;;  %v10348_v23 = vld [vmem:[#allocation7 + $0xdd8] ss:$44 sps:$4 sm:$0xff]  }
 0x1d0   : > { %4130 = vmatpush1.bf16.msra.mxu1 %v10276_v59  ;;  %4090 = vmatprep.subr.bf16.mxu0 %v10281_v24  ;;  %v10353_v59 = vld [vmem:[#allocation7 + $0x28c] ss:$44 sps:$4 sm:$0xff]  }
 0x1d1   : > { %4131 = vmatprep.subr.bf16.mxu1 %v10284_v25  ;;  %v10356_v24 = vld [vmem:[#allocation7 + $0x80c] ss:$44 sps:$4 sm:$0xff]   ;;  %v11841_v25 = vld [vmem:[#allocation9] sm:$0xff] }
 0x1d3   : > { %4091 = vmatpush1.bf16.msra.mxu0 %v10279_v27  ;;  %v940_v27 = vrot.slane %v11841_v25, %v11838_v20 }
 0x1d4   : > { %4132 = vmatpush1.bf16.msra.mxu1 %v10282_v28  ;;  %4092 = vmatprep.subr.bf16.mxu0 %v10287_v29  ;;  %v10351_v28 = vld [vmem:[#allocation7 + $0x288] ss:$44 sps:$4 sm:$0xff]  }
 0x1d5   : > { %4133 = vmatprep.subr.bf16.mxu1 %v10290_v30  ;;  %v10354_v29 = vld [vmem:[#allocation7 + $0x808] ss:$44 sps:$4 sm:$0xff]   ;;  %v944_v30 = vrot.slane %v11841_v25, %v943_v22 }
 0x1d7   : > { %4093 = vmatpush1.bf16.msra.mxu0 %v10285_v32  ;;  %v10359_v32 = vld [vmem:[#allocation7 + $0x234] ss:$44 sps:$4 sm:$0xff]  }
 0x1d8   : > { %4134 = vmatpush1.bf16.msra.mxu1 %v10288_v33  ;;  %4094 = vmatprep.subr.bf16.mxu0 %v10293_v36  ;;  %v10362_v33 = vld [vmem:[#allocation7 + $0x7b4] ss:$44 sps:$4 sm:$0xff]   ;;  %v3830_v36 = vadd.f32 %v11825_v6, %v940_v27 }
 0x1d9   : > { %4135 = vmatprep.subr.bf16.mxu1 %v10296_v37  ;;  %v10357_v37 = vld [vmem:[#allocation7 + $0x230] ss:$44 sps:$4 sm:$0xff]   ;;  %v10407_v27 = vld [vmem:[#allocation7 + $0x4f4] ss:$44 sps:$4 sm:$0xff]  }
 0x1db   : > { %4095 = vmatpush1.bf16.msra.mxu0 %v10291_v38  ;;  %v10360_v38 = vld [vmem:[#allocation7 + $0x7b0] ss:$44 sps:$4 sm:$0xff]  }
 0x1dc   : > { %4136 = vmatpush1.bf16.msra.mxu1 %v10294_v39  ;;  %4096 = vmatprep.subr.bf16.mxu0 %v10299_v40 }
 0x1dd   : > { %4137 = vmatprep.subr.bf16.mxu1 %v10302_v41  ;;  %v10365_v41 = vld [vmem:[#allocation7 + $0x1dc] ss:$44 sps:$4 sm:$0xff]  }
 0x1df   : > { %4097 = vmatpush1.bf16.msra.mxu0 %v10297_v42  ;;  %v10368_v42 = vld [vmem:[#allocation7 + $0x75c] ss:$44 sps:$4 sm:$0xff]  }
 0x1e0   : > { %4138 = vmatpush1.bf16.msra.mxu1 %v10300_v43  ;;  %4098 = vmatprep.subr.bf16.mxu0 %v10305_v44  ;;  %v3832_v43 = vadd.f32 %v11830_v13, %v944_v30  ;;  %v10408_v30 = vld [vmem:[#allocation7 + $0xa70] ss:$44 sps:$4 sm:$0xff]  }
 0x1e1   : > { %4139 = vmatprep.subr.bf16.mxu1 %v10308_v45 }
 0x1e3   : > { %4099 = vmatpush2.bf16.msra.mxu0 %v10303_v46 }
 0x1e4   : > { %4140 = vmatpush2.bf16.msra.mxu1 %v10306_v47  ;;  %4100 = vmatprep.subr.bf16.mxu0 %v10311_v49  ;;  %v10363_v49 = vld [vmem:[#allocation7 + $0x1d8] ss:$44 sps:$4 sm:$0xff]  }
 0x1e5   : > { %4141 = vmatprep.subr.bf16.mxu1 %v10314_v50  ;;  %v10366_v50 = vld [vmem:[#allocation7 + $0x758] ss:$44 sps:$4 sm:$0xff]  }
 0x1e7   : > { %4101 = vmatpush2.bf16.msra.mxu0 %v10309_v51 }
 0x1e8   : > { %4142 = vmatpush2.bf16.msra.mxu1 %v10312_v53  ;;  %4102 = vmatprep.subr.bf16.mxu0 %v10317_v55  ;;  %v10371_v53 = vld [vmem:[#allocation7 + $0x184] ss:$44 sps:$4 sm:$0xff]  }
 0x1e9   : > { %4143 = vmatprep.subr.bf16.mxu1 %v10320_v56  ;;  %v10374_v55 = vld [vmem:[#allocation7 + $0x704] ss:$44 sps:$4 sm:$0xff]  }
 0x1eb   : > { %4103 = vmatpush2.bf16.msra.mxu0 %v10315_v57 }
 0x1ec   : > { %4144 = vmatpush2.bf16.msra.mxu1 %v10318_v58  ;;  %4104 = vmatprep.subr.bf16.mxu0 %v10323_v60  ;;  %v10369_v60 = vld [vmem:[#allocation7 + $0x180] ss:$44 sps:$4 sm:$0xff]  }
 0x1ed   : > { %4145 = vmatprep.subr.bf16.mxu1 %v10326_v61  ;;  %v10372_v61 = vld [vmem:[#allocation7 + $0x700] ss:$44 sps:$4 sm:$0xff]  }
 0x1ef   : > { %4105 = vmatpush2.bf16.msra.mxu0 %v10321_v62  ;;  %v10377_v62 = vld [vmem:[#allocation7 + $0x12c] ss:$44 sps:$4 sm:$0xff]  }
 0x1f0   : > { %4146 = vmatpush2.bf16.msra.mxu1 %v10324_v63  ;;  %4106 = vmatprep.subr.bf16.mxu0 %v10329_v0  ;;  %v10380_v63 = vld [vmem:[#allocation7 + $0x6ac] ss:$44 sps:$4 sm:$0xff]   ;;  %v10375_v0 = vld [vmem:[#allocation7 + $0x128] ss:$44 sps:$4 sm:$0xff]  }
 0x1f1   : > { %4147 = vmatprep.subr.bf16.mxu1 %v10332_v1  ;;  %v10378_v1 = vld [vmem:[#allocation7 + $0x6a8] ss:$44 sps:$4 sm:$0xff]  }
 0x1f3   : > { %4107 = vmatpush2.bf16.msra.mxu0 %v10327_v2  ;;  %v10383_v2 = vld [vmem:[#allocation7 + $0xd4] ss:$44 sps:$4 sm:$0xff]  }
 0x1f4   : > { %4148 = vmatpush2.bf16.msra.mxu1 %v10330_v3  ;;  %4108 = vmatprep.subr.bf16.mxu0 %v10335_v4  ;;  %v10386_v3 = vld [vmem:[#allocation7 + $0x654] ss:$44 sps:$4 sm:$0xff]   ;;  %v10381_v4 = vld [vmem:[#allocation7 + $0xd0] ss:$44 sps:$4 sm:$0xff]  }
 0x1f5   : > { %4149 = vmatprep.subr.bf16.mxu1 %v10338_v5  ;;  %v10384_v5 = vld [vmem:[#allocation7 + $0x650] ss:$44 sps:$4 sm:$0xff]  }
 0x1f7   : > { %4109 = vmatpush2.bf16.msra.mxu0 %v10333_v9  ;;  %v10389_v9 = vld [vmem:[#allocation7 + $0x7c] ss:$44 sps:$4 sm:$0xff]  }
 0x1f8   : > { %4150 = vmatpush2.bf16.msra.mxu1 %v10336_v10  ;;  %4110 = vmatprep.subr.bf16.mxu0 %v10341_v12  ;;  %v10392_v10 = vld [vmem:[#allocation7 + $0x5fc] ss:$44 sps:$4 sm:$0xff]   ;;  %v10387_v12 = vld [vmem:[#allocation7 + $0x78] ss:$44 sps:$4 sm:$0xff]  }
 0x1f9   : > { %4151 = vmatprep.subr.bf16.mxu1 %v10344_v15  ;;  %v10390_v15 = vld [vmem:[#allocation7 + $0x5f8] ss:$44 sps:$4 sm:$0xff]  }
 0x1fb   : > { %4111 = vmatpush2.bf16.msra.mxu0 %v10339_v16  ;;  %v10395_v16 = vld [vmem:[#allocation7 + $0x24] ss:$44 sps:$4 sm:$0xff]  }
 0x1fc   : > { %4152 = vmatpush2.bf16.msra.mxu1 %v10342_v54  ;;  %4112 = vmatprep.subr.bf16.mxu0 %v10347_v18  ;;  %v10398_v54 = vld [vmem:[#allocation7 + $0x5a4] ss:$44 sps:$4 sm:$0xff]   ;;  %v10393_v18 = vld [vmem:[#allocation7 + $0x20] ss:$44 sps:$4 sm:$0xff]  }
 0x1fd   : > { %4153 = vmatprep.subr.bf16.mxu1 %v10350_v19  ;;  %v10396_v19 = vld [vmem:[#allocation7 + $0x5a0] ss:$44 sps:$4 sm:$0xff]  }
 0x1ff   : > { %4113 = vmatpush2.bf16.msra.mxu0 %v10345_v21  ;;  %v10401_v21 = vld [vmem:[#allocation7 + $0x54c] ss:$44 sps:$4 sm:$0xff]  }
 0x200   : > { %4154 = vmatpush2.bf16.msra.mxu1 %v10348_v23  ;;  %4164 = vmatprep.subr.bf16.mxu0 %v10353_v59  ;;  %v10404_v23 = vld [vmem:[#allocation7 + $0xacc] ss:$44 sps:$4 sm:$0xff]   ;;  %v10399_v59 = vld [vmem:[#allocation7 + $0x548] ss:$44 sps:$4 sm:$0xff]  }
 0x201   : > { %4205 = vmatprep.subr.bf16.mxu1 %v10356_v24  ;;  %v10402_v24 = vld [vmem:[#allocation7 + $0xac8] ss:$44 sps:$4 sm:$0xff]  }
 0x202   : > { %v3870_v39 = vpop.f32.mrf.mxu0  ;;  %4115 = vmatmul.mubr.bf16.vlgmr.msra.gmra.mxu0 %v11785_v11 }
 0x203   : > { %4156 = vmatmul.mubr.bf16.vlgmr.msra.gmra.mxu1 %v11795_v17  ;;  %v3911_v40 = vpop.f32.mrf.mxu1  ;;  %v3871_v44 = vadd.f32 %v3870_v39, %v3830_v36  ;;  %4165 = vmatpush1.bf16.msra.mxu0 %v10351_v28  ;;  %v10410_v28 = vld [vmem:[#allocation7 + $0xa74] ss:$44 sps:$4 sm:$0xff]   ;;  %v10411_v36 = vld [vmem:[#allocation7 + $0x498] ss:$44 sps:$4 sm:$0xff]  }
 0x204   : > { %4206 = vmatpush1.bf16.msra.mxu1 %v10354_v29  ;;  %v3872_v45 = vpop.f32.mrf.mxu0  ;;  %4166 = vmatprep.subr.bf16.mxu0 %v10359_v32  ;;  %v10405_v29 = vld [vmem:[#allocation7 + $0x4f0] ss:$44 sps:$4 sm:$0xff]  }
 0x205   : > { %v3913_v46 = vpop.f32.mrf.mxu1  ;;  %4207 = vmatprep.subr.bf16.mxu1 %v10362_v33  ;;  %v3873_v6 = vadd.f32 %v3872_v45, %v3832_v43  ;;  %v11852_v47 = vadd.f32 %v3911_v40, %v3871_v44  ;;  %4196 = vmatprep.mubr.bf16.mxu0 %v11774_v48  ;;  %v10413_v32 = vld [vmem:[#allocation7 + $0x49c] ss:$44 sps:$4 sm:$0xff]   ;;  %v10422_v39 = vld [vmem:[#allocation7 + $0x9c4] ss:$44 sps:$4 sm:$0xff]   ;;  %v10417_v40 = vld [vmem:[#allocation7 + $0x440] ss:$44 sps:$4 sm:$0xff]  }
 0x206   : > { %4237 = vmatprep.mubr.bf16.mxu1 %v11777_v52  ;;  %v3874_v51 = vpop.f32.mrf.mxu0  ;;  %v10416_v33 = vld [vmem:[#allocation7 + $0xa1c] ss:$44 sps:$4 sm:$0xff]   ;;  %v10428_v43 = vld [vmem:[#allocation7 + $0x96c] ss:$44 sps:$4 sm:$0xff]  }
 0x207   : > { %v3915_v13 = vpop.f32.mrf.mxu1  ;;  %v11856_v56 = vadd.f32 %v3913_v46, %v3873_v6  ;;  %4167 = vmatpush1.bf16.msra.mxu0 %v10357_v37  ;;  %v10414_v37 = vld [vmem:[#allocation7 + $0xa18] ss:$44 sps:$4 sm:$0xff]   ;;  %v10423_v44 = vld [vmem:[#allocation7 + $0x3e8] ss:$44 sps:$4 sm:$0xff]  }
 0x208   : > { %4208 = vmatpush1.bf16.msra.mxu1 %v10360_v38  ;;  %v3875_v57 = vpop.f32.mrf.mxu0  ;;  %4168 = vmatprep.subr.bf16.mxu0 %v10365_v41  ;;  %v10419_v38 = vld [vmem:[#allocation7 + $0x444] ss:$44 sps:$4 sm:$0xff]   ;;  %v10420_v41 = vld [vmem:[#allocation7 + $0x9c0] ss:$44 sps:$4 sm:$0xff]   ;;  %v10426_v45 = vld [vmem:[#allocation7 + $0x968] ss:$44 sps:$4 sm:$0xff]  }
 0x209   : > { %4209 = vmatprep.subr.bf16.mxu1 %v10368_v42  ;;  %v3916_v58 = vpop.f32.mrf.mxu1  ;;  %v10425_v42 = vld [vmem:[#allocation7 + $0x3ec] ss:$44 sps:$4 sm:$0xff]   ;;  %v10431_v46 = vld [vmem:[#allocation7 + $0x394] ss:$44 sps:$4 sm:$0xff]   ;;  %v10437_v51 = vld [vmem:[#allocation7 + $0x33c] ss:$44 sps:$4 sm:$0xff]  }
 0x20a   : > { %v10434_v6 = vld [vmem:[#allocation7 + $0x914] ss:$44 sps:$4 sm:$0xff]   ;;  %v10438_v13 = vld [vmem:[#allocation7 + $0x8b8] ss:$44 sps:$4 sm:$0xff]  }
 0x20b   : > { %4169 = vmatpush1.bf16.msra.mxu0 %v10363_v49  ;;  %v10429_v49 = vld [vmem:[#allocation7 + $0x390] ss:$44 sps:$4 sm:$0xff]  }
 0x20c   : > { %4210 = vmatpush1.bf16.msra.mxu1 %v10366_v50  ;;  %4170 = vmatprep.subr.bf16.mxu0 %v10371_v53  ;;  %v10432_v50 = vld [vmem:[#allocation7 + $0x910] ss:$44 sps:$4 sm:$0xff]  }
 0x20d   : > { %4211 = vmatprep.subr.bf16.mxu1 %v10374_v55  ;;  %v10440_v53 = vld [vmem:[#allocation7 + $0x8bc] ss:$44 sps:$4 sm:$0xff]   ;;  %v10435_v55 = vld [vmem:[#allocation7 + $0x338] ss:$44 sps:$4 sm:$0xff]  }
 0x20e   : > { %v10443_v57 = vld [vmem:[#allocation7 + $0x2e4] ss:$44 sps:$4 sm:$0xff]  }
 0x20f   : > { %4171 = vmatpush1.bf16.msra.mxu0 %v10369_v60  ;;  %v10446_v58 = vld [vmem:[#allocation7 + $0x864] ss:$44 sps:$4 sm:$0xff]   ;;  %v10441_v60 = vld [vmem:[#allocation7 + $0x2e0] ss:$44 sps:$4 sm:$0xff]  }
 0x210   : > { %4212 = vmatpush1.bf16.msra.mxu1 %v10372_v61  ;;  %4172 = vmatprep.subr.bf16.mxu0 %v10377_v62  ;;  %v10444_v61 = vld [vmem:[#allocation7 + $0x860] ss:$44 sps:$4 sm:$0xff]   ;;  %v947_v62 = vsub.s32 4, %v11805_v26 }
 0x211   : > { %4213 = vmatprep.subr.bf16.mxu1 %v10380_v63  ;;  %v10449_v63 = vld [vmem:[#allocation7 + $0xd8c] ss:$44 sps:$4 sm:$0xff]  }
 0x213   : > { %4173 = vmatpush1.bf16.msra.mxu0 %v10375_v0  ;;  %v10450_v0 = vld [vmem:[#allocation7 + $0x550] ss:$44 sps:$4 sm:$0xff]  }
 0x214   : > { %4214 = vmatpush1.bf16.msra.mxu1 %v10378_v1  ;;  %4174 = vmatprep.subr.bf16.mxu0 %v10383_v2  ;;  %v10447_v1 = vld [vmem:[#allocation7 + $0xd88] ss:$44 sps:$4 sm:$0xff]   ;;  %v10451_v2 = vld [vmem:[#allocation7 + $0x290] ss:$44 sps:$4 sm:$0xff]  }
 0x215   : > { %4215 = vmatprep.subr.bf16.mxu1 %v10386_v3  ;;  %v951_v3 = vsub.s32 5, %v11805_v26 }
 0x217   : > { %4175 = vmatpush1.bf16.msra.mxu0 %v10381_v4  ;;  %v10454_v4 = vld [vmem:[#allocation7 + $0xd34] ss:$44 sps:$4 sm:$0xff]  }
 0x218   : > { %4216 = vmatpush1.bf16.msra.mxu1 %v10384_v5  ;;  %4176 = vmatprep.subr.bf16.mxu0 %v10389_v9  ;;  %v10455_v5 = vld [vmem:[#allocation7 + $0x4f8] ss:$44 sps:$4 sm:$0xff]   ;;  %v948_v9 = vrot.slane %v11841_v25, %v947_v62 }
 0x219   : > { %4217 = vmatprep.subr.bf16.mxu1 %v10392_v10  ;;  %v952_v10 = vrot.slane %v11841_v25, %v951_v3  ;;  %v10457_v25 = vld [vmem:[#allocation7 + $0xcd8] ss:$44 sps:$4 sm:$0xff]  }
 0x21b   : > { %4177 = vmatpush1.bf16.msra.mxu0 %v10387_v12  ;;  %v10452_v12 = vld [vmem:[#allocation7 + $0xd30] ss:$44 sps:$4 sm:$0xff]  }
 0x21c   : > { %4218 = vmatpush1.bf16.msra.mxu1 %v10390_v15  ;;  %4178 = vmatprep.subr.bf16.mxu0 %v10395_v16  ;;  %v10456_v15 = vld [vmem:[#allocation7 + $0x238] ss:$44 sps:$4 sm:$0xff]  }
 0x21d   : > { %4219 = vmatprep.subr.bf16.mxu1 %v10398_v54 }
 0x21f   : > { %4179 = vmatpush1.bf16.msra.mxu0 %v10393_v18  ;;  %v10459_v18 = vld [vmem:[#allocation7 + $0xcdc] ss:$44 sps:$4 sm:$0xff]  }
 0x220   : > { %4220 = vmatpush1.bf16.msra.mxu1 %v10396_v19  ;;  %4180 = vmatprep.subr.bf16.mxu0 %v10401_v21  ;;  %v10460_v19 = vld [vmem:[#allocation7 + $0x4a0] ss:$44 sps:$4 sm:$0xff]  }
 0x221   : > { %4221 = vmatprep.subr.bf16.mxu1 %v10404_v23 }
 0x223   : > { %4181 = vmatpush2.bf16.msra.mxu0 %v10399_v59 }
 0x224   : > { %4222 = vmatpush2.bf16.msra.mxu1 %v10402_v24  ;;  %4182 = vmatprep.subr.bf16.mxu0 %v10407_v27 }
 0x225   : > { %4223 = vmatprep.subr.bf16.mxu1 %v10410_v28  ;;  %v10461_v28 = vld [vmem:[#allocation7 + $0x1e0] ss:$44 sps:$4 sm:$0xff]  }
 0x227   : > { %4183 = vmatpush2.bf16.msra.mxu0 %v10405_v29 }
 0x228   : > { %4224 = vmatpush2.bf16.msra.mxu1 %v10408_v30  ;;  %4184 = vmatprep.subr.bf16.mxu0 %v10413_v32  ;;  %v10464_v30 = vld [vmem:[#allocation7 + $0xc84] ss:$44 sps:$4 sm:$0xff]   ;;  %v10465_v32 = vld [vmem:[#allocation7 + $0x448] ss:$44 sps:$4 sm:$0xff]  }
 0x229   : > { %4225 = vmatprep.subr.bf16.mxu1 %v10416_v33 }
 0x22b   : > { %4185 = vmatpush2.bf16.msra.mxu0 %v10411_v36 }
 0x22c   : > { %4226 = vmatpush2.bf16.msra.mxu1 %v10414_v37  ;;  %4186 = vmatprep.subr.bf16.mxu0 %v10419_v38 }
 0x22d   : > { %4227 = vmatprep.subr.bf16.mxu1 %v10422_v39  ;;  %v10462_v39 = vld [vmem:[#allocation7 + $0xc80] ss:$44 sps:$4 sm:$0xff]  }
 0x22f   : > { %4187 = vmatpush2.bf16.msra.mxu0 %v10417_v40  ;;  %v10466_v40 = vld [vmem:[#allocation7 + $0x188] ss:$44 sps:$4 sm:$0xff]  }
 0x230   : > { %4228 = vmatpush2.bf16.msra.mxu1 %v10420_v41  ;;  %4188 = vmatprep.subr.bf16.mxu0 %v10425_v42  ;;  %v10470_v41 = vld [vmem:[#allocation7 + $0x3f0] ss:$44 sps:$4 sm:$0xff]   ;;  %v10467_v42 = vld [vmem:[#allocation7 + $0xc28] ss:$44 sps:$4 sm:$0xff]  }
 0x231   : > { %4229 = vmatprep.subr.bf16.mxu1 %v10428_v43  ;;  %v10471_v43 = vld [vmem:[#allocation7 + $0x130] ss:$44 sps:$4 sm:$0xff]  }
 0x233   : > { %4189 = vmatpush2.bf16.msra.mxu0 %v10423_v44  ;;  %v10474_v44 = vld [vmem:[#allocation7 + $0xbd4] ss:$44 sps:$4 sm:$0xff]  }
 0x234   : > { %4230 = vmatpush2.bf16.msra.mxu1 %v10426_v45  ;;  %4190 = vmatprep.subr.bf16.mxu0 %v10431_v46  ;;  %v10475_v45 = vld [vmem:[#allocation7 + $0x398] ss:$44 sps:$4 sm:$0xff]   ;;  %v10472_v46 = vld [vmem:[#allocation7 + $0xbd0] ss:$44 sps:$4 sm:$0xff]  }
 0x235   : > { %4231 = vmatprep.subr.bf16.mxu1 %v10434_v6  ;;  %v10476_v6 = vld [vmem:[#allocation7 + $0xd8] ss:$44 sps:$4 sm:$0xff]  }
 0x237   : > { %4191 = vmatpush2.bf16.msra.mxu0 %v10429_v49  ;;  %v10479_v49 = vld [vmem:[#allocation7 + $0xb7c] ss:$44 sps:$4 sm:$0xff]  }
 0x238   : > { %4232 = vmatpush2.bf16.msra.mxu1 %v10432_v50  ;;  %4192 = vmatprep.subr.bf16.mxu0 %v10437_v51  ;;  %v10480_v50 = vld [vmem:[#allocation7 + $0x340] ss:$44 sps:$4 sm:$0xff]   ;;  %v10477_v51 = vld [vmem:[#allocation7 + $0xb78] ss:$44 sps:$4 sm:$0xff]  }
 0x239   : > { %4233 = vmatprep.subr.bf16.mxu1 %v10440_v53  ;;  %v10481_v53 = vld [vmem:[#allocation7 + $0x80] ss:$44 sps:$4 sm:$0xff]  }
 0x23b   : > { %4193 = vmatpush2.bf16.msra.mxu0 %v10435_v55  ;;  %v10484_v55 = vld [vmem:[#allocation7 + $0xb24] ss:$44 sps:$4 sm:$0xff]  }
 0x23c   : > { %4234 = vmatpush2.bf16.msra.mxu1 %v10438_v13  ;;  %4194 = vmatprep.subr.bf16.mxu0 %v10443_v57  ;;  %v10485_v13 = vld [vmem:[#allocation7 + $0x2e8] ss:$44 sps:$4 sm:$0xff]   ;;  %v10482_v57 = vld [vmem:[#allocation7 + $0xb20] ss:$44 sps:$4 sm:$0xff]  }
 0x23d   : > { %4235 = vmatprep.subr.bf16.mxu1 %v10446_v58  ;;  %v10486_v58 = vld [vmem:[#allocation7 + $0x28] ss:$44 sps:$4 sm:$0xff]  }
 0x23f   : > { %4195 = vmatpush2.bf16.msra.mxu0 %v10441_v60  ;;  %v10489_v60 = vld [vmem:[#allocation7 + $0x104c] ss:$44 sps:$4 sm:$0xff]  }
 0x240   : > { %4236 = vmatpush2.bf16.msra.mxu1 %v10444_v61  ;;  %4246 = vmatprep.subr.bf16.mxu0 %v10449_v63  ;;  %v10490_v61 = vld [vmem:[#allocation7 + $0xad0] ss:$44 sps:$4 sm:$0xff]   ;;  %v10487_v63 = vld [vmem:[#allocation7 + $0x1048] ss:$44 sps:$4 sm:$0xff]  }
 0x241   : > { %9603 = vmatprep.subr.bf16.mxu1 %v10450_v0  ;;  %v10491_v0 = vld [vmem:[#allocation7 + $0x810] ss:$44 sps:$4 sm:$0xff]  }
 0x242   : > { %v3952_v16 = vpop.f32.mrf.mxu0  ;;  %4197 = vmatmul.mubr.bf16.vlgmr.msra.gmra.mxu0 %v11783_v8 }
 0x243   : > { %4238 = vmatmul.mubr.bf16.vlgmr.msra.gmra.mxu1 %v11785_v11  ;;  %v3993_v54 = vpop.f32.mrf.mxu1  ;;  %v3953_v21 = vadd.f32 %v3952_v16, %v948_v9  ;;  %4247 = vmatpush1.bf16.msra.mxu0 %v10447_v1  ;;  %v10494_v1 = vld [vmem:[#allocation7 + $0xff4] ss:$44 sps:$4 sm:$0xff]   ;;  %v10499_v9 = vld [vmem:[#allocation7 + $0xf9c] ss:$44 sps:$4 sm:$0xff]   ;;  %v10504_v16 = vld [vmem:[#allocation7 + $0xf44] ss:$44 sps:$4 sm:$0xff]  }
 0x244   : > { %9604 = vmatpush3.bf16.msra.mxu1 %v10451_v2  ;;  %v3954_v23 = vpop.f32.mrf.mxu0  ;;  %4248 = vmatprep.subr.bf16.mxu0 %v10454_v4  ;;  %v10495_v2 = vld [vmem:[#allocation7 + $0xa78] ss:$44 sps:$4 sm:$0xff]   ;;  %v10492_v4 = vld [vmem:[#allocation7 + $0xff0] ss:$44 sps:$4 sm:$0xff]  }
 0x245   : > { %v3995_v59 = vpop.f32.mrf.mxu1  ;;  %9605 = vmatprep.subr.bf16.mxu1 %v10455_v5  ;;  %v3955_v24 = vadd.f32 %v3954_v23, %v952_v10  ;;  %v11868_v27 = vadd.f32 %v3993_v54, %v3953_v21  ;;  %4319 = vmatprep.mubr.bf16.mxu1 %v11774_v48  ;;  %v10469_v48 = vld [vmem:[#allocation7 + $0xc2c] ss:$44 sps:$4 sm:$0xff]   ;;  %v10505_v54 = vld [vmem:[#allocation7 + $0x9c8] ss:$44 sps:$4 sm:$0xff]   ;;  %v10510_v21 = vld [vmem:[#allocation7 + $0x970] ss:$44 sps:$4 sm:$0xff]  }
 0x246   : > { %4278 = vmatprep.mubr.bf16.mxu0 %v11791_v35  ;;  %v3956_v29 = vpop.f32.mrf.mxu0  ;;  %v10496_v5 = vld [vmem:[#allocation7 + $0x7b8] ss:$44 sps:$4 sm:$0xff]   ;;  %v10500_v10 = vld [vmem:[#allocation7 + $0xa20] ss:$44 sps:$4 sm:$0xff]   ;;  %v10507_v23 = vld [vmem:[#allocation7 + $0xee8] ss:$44 sps:$4 sm:$0xff]  }
 0x247   : > { %v3997_v33 = vpop.f32.mrf.mxu1  ;;  %v11872_v36 = vadd.f32 %v3995_v59, %v3955_v24  ;;  %4249 = vmatpush1.bf16.msra.mxu0 %v10452_v12  ;;  %v10497_v12 = vld [vmem:[#allocation7 + $0xf98] ss:$44 sps:$4 sm:$0xff]   ;;  %v10514_v59 = vld [vmem:[#allocation7 + $0xe94] ss:$44 sps:$4 sm:$0xff]   ;;  %v10519_v29 = vld [vmem:[#allocation7 + $0xe3c] ss:$44 sps:$4 sm:$0xff]  }
 0x248   : > { %9606 = vmatpush3.bf16.msra.mxu1 %v10456_v15  ;;  %v3957_v37 = vpop.f32.mrf.mxu0  ;;  %4250 = vmatprep.subr.bf16.mxu0 %v10459_v18  ;;  %v10501_v15 = vld [vmem:[#allocation7 + $0x760] ss:$44 sps:$4 sm:$0xff]   ;;  %v10506_v18 = vld [vmem:[#allocation7 + $0x708] ss:$44 sps:$4 sm:$0xff]   ;;  %v10515_v24 = vld [vmem:[#allocation7 + $0x918] ss:$44 sps:$4 sm:$0xff]  }
 0x249   : > { %9607 = vmatprep.subr.bf16.mxu1 %v10460_v19  ;;  %v3998_v38 = vpop.f32.mrf.mxu1  ;;  %v10509_v19 = vld [vmem:[#allocation7 + $0xeec] ss:$44 sps:$4 sm:$0xff]   ;;  %v10524_v37 = vld [vmem:[#allocation7 + $0xde4] ss:$44 sps:$4 sm:$0xff]  }
 0x24a   : > { %v10521_v33 = vld [vmem:[#allocation7 + $0x600] ss:$44 sps:$4 sm:$0xff]   ;;  %v10525_v38 = vld [vmem:[#allocation7 + $0x868] ss:$44 sps:$4 sm:$0xff]  }
 0x24b   : > { %4251 = vmatpush1.bf16.msra.mxu0 %v10457_v25  ;;  %v10512_v25 = vld [vmem:[#allocation7 + $0xe90] ss:$44 sps:$4 sm:$0xff]  }
 0x24c   : > { %9608 = vmatpush3.bf16.msra.mxu1 %v10461_v28  ;;  %4252 = vmatprep.subr.bf16.mxu0 %v10464_v30  ;;  %v10516_v28 = vld [vmem:[#allocation7 + $0x658] ss:$44 sps:$4 sm:$0xff]   ;;  %v10520_v30 = vld [vmem:[#allocation7 + $0x8c0] ss:$44 sps:$4 sm:$0xff]  }
 0x24d   : > { %9609 = vmatprep.subr.bf16.mxu1 %v10465_v32  ;;  %v10517_v32 = vld [vmem:[#allocation7 + $0xe38] ss:$44 sps:$4 sm:$0xff]  }
 0x24f   : > { %4253 = vmatpush1.bf16.msra.mxu0 %v10462_v39  ;;  %v10522_v39 = vld [vmem:[#allocation7 + $0xde0] ss:$44 sps:$4 sm:$0xff]  }
 0x250   : > { %9610 = vmatpush3.bf16.msra.mxu1 %v10466_v40  ;;  %4254 = vmatprep.subr.bf16.mxu0 %v10469_v48  ;;  %v10526_v40 = vld [vmem:[#allocation7 + $0x5a8] ss:$44 sps:$4 sm:$0xff]   ;;  %v10527_v48 = vld [vmem:[#allocation7 + $0x1050] ss:$44 sps:$4 sm:$0xff]  }
 0x251   : > { %9611 = vmatprep.subr.bf16.mxu1 %v10470_v41  ;;  %v10530_v41 = vld [vmem:[#allocation10 + $0x154] ss:$24 sps:$4 sm:$0xff]  }
 0x253   : > { %4255 = vmatpush1.bf16.msra.mxu0 %v10467_v42  ;;  %v10528_v42 = vld [vmem:[#allocation10 + $0x150] ss:$24 sps:$4 sm:$0xff]  }
 0x254   : > { %9612 = vmatpush3.bf16.msra.mxu1 %v10471_v43  ;;  %4256 = vmatprep.subr.bf16.mxu0 %v10474_v44  ;;  %v10531_v43 = vld [vmem:[#allocation7 + $0xd90] ss:$44 sps:$4 sm:$0xff]   ;;  %v4408_v44 = vmax.f32 %v11833_v14, 0.0 }
 0x255   : > { %9613 = vmatprep.subr.bf16.mxu1 %v10475_v45  ;;  %v10532_v45 = vld [vmem:[#allocation7 + $0xff8] ss:$44 sps:$4 sm:$0xff]  }
 0x257   : > { %4257 = vmatpush1.bf16.msra.mxu0 %v10472_v46  ;;  %v10535_v46 = vld [vmem:[#allocation10 + $0x124] ss:$24 sps:$4 sm:$0xff]  }
 0x258   : > { %9614 = vmatpush3.bf16.msra.mxu1 %v10476_v6  ;;  %4258 = vmatprep.subr.bf16.mxu0 %v10479_v49  ;;  %v10533_v6 = vld [vmem:[#allocation10 + $0x120] ss:$24 sps:$4 sm:$0xff]  }
 0x259   : > { %9615 = vmatprep.subr.bf16.mxu1 %v10480_v50  ;;  %v10536_v49 = vld [vmem:[#allocation7 + $0xd38] ss:$44 sps:$4 sm:$0xff]   ;;  %v11877_v50 = vpack.c.bf16 %v4408_v44, %v4408_v44  ;;  %v10587_v44 = vld [vmem:[#allocation10 + $0x244] ss:$24 sps:$4 sm:$0xff]  }
 0x25b   : > { %4259 = vmatpush1.bf16.msra.mxu0 %v10477_v51 }
 0x25c   : > { %9616 = vmatpush3.bf16.msra.mxu1 %v10481_v53  ;;  %4260 = vmatprep.subr.bf16.mxu0 %v10484_v55  ;;  %v10537_v53 = vld [vmem:[#allocation7 + $0xfa0] ss:$44 sps:$4 sm:$0xff]  }
 0x25d   : > { %9617 = vmatprep.subr.bf16.mxu1 %v10485_v13  ;;  %v10540_v55 = vld [vmem:[#allocation10 + $0xf4] ss:$24 sps:$4 sm:$0xff]  }
 0x25f   : > { %4261 = vmatpush1.bf16.msra.mxu0 %v10482_v57 }
 0x260   : > { %9618 = vmatpush3.bf16.msra.mxu1 %v10486_v58  ;;  %4262 = vmatprep.subr.bf16.mxu0 %v10489_v60  ;;  %v10538_v60 = vld [vmem:[#allocation10 + $0xf0] ss:$24 sps:$4 sm:$0xff]  }
 0x261   : > { %9625 = vmatprep.subr.bf16.mxu1 %v10490_v61  ;;  %v10541_v61 = vld [vmem:[#allocation7 + $0xce0] ss:$44 sps:$4 sm:$0xff]  }
 0x263   : > { %4320 = vmatmul.mubr.bf16.vlgmr.msra.gmra.mxu1 %v11783_v8  ;;  %4263 = vmatpush2.bf16.msra.mxu0 %v10487_v63  ;;  %v10502_v8 = vld [vmem:[#allocation7 + $0xf40] ss:$44 sps:$4 sm:$0xff]  }
 0x264   : > { %9626 = vmatpush3.bf16.msra.mxu1 %v10491_v0  ;;  %4264 = vmatprep.subr.bf16.mxu0 %v10494_v1  ;;  %v10542_v0 = vld [vmem:[#allocation7 + $0xf48] ss:$44 sps:$4 sm:$0xff]  }
 0x265   : > { %9627 = vmatprep.subr.bf16.mxu1 %v10495_v2  ;;  %4359 = vmatprep.mubr.bf16.mxu1 %v11777_v52  ;;  %v10511_v52 = vld [vmem:[#allocation7 + $0x6b0] ss:$44 sps:$4 sm:$0xff]  }
 0x266   : > { %v10545_v1 = vld [vmem:[#allocation10 + $0xc4] ss:$24 sps:$4 sm:$0xff]  }
 0x267   : > { %4265 = vmatpush2.bf16.msra.mxu0 %v10492_v4  ;;  %v10543_v4 = vld [vmem:[#allocation10 + $0xc0] ss:$24 sps:$4 sm:$0xff]  }
 0x268   : > { %9628 = vmatpush3.bf16.msra.mxu1 %v10496_v5  ;;  %4266 = vmatprep.subr.bf16.mxu0 %v10499_v9  ;;  %v10546_v5 = vld [vmem:[#allocation7 + $0xc88] ss:$44 sps:$4 sm:$0xff]   ;;  %v10547_v9 = vld [vmem:[#allocation7 + $0xef0] ss:$44 sps:$4 sm:$0xff]  }
 0x269   : > { %9629 = vmatprep.subr.bf16.mxu1 %v10500_v10  ;;  %v10550_v10 = vld [vmem:[#allocation10 + $0x94] ss:$24 sps:$4 sm:$0xff]  }
 0x26b   : > { %4267 = vmatpush2.bf16.msra.mxu0 %v10497_v12  ;;  %v10551_v12 = vld [vmem:[#allocation7 + $0xc30] ss:$44 sps:$4 sm:$0xff]  }
 0x26c   : > { %9630 = vmatpush3.bf16.msra.mxu1 %v10501_v15  ;;  %4268 = vmatprep.subr.bf16.mxu0 %v10504_v16  ;;  %v10552_v15 = vld [vmem:[#allocation7 + $0xe98] ss:$44 sps:$4 sm:$0xff]   ;;  %v10555_v16 = vld [vmem:[#allocation10 + $0x64] ss:$24 sps:$4 sm:$0xff]  }
 0x26d   : > { %9631 = vmatprep.subr.bf16.mxu1 %v10505_v54  ;;  %v10553_v54 = vld [vmem:[#allocation10 + $0x60] ss:$24 sps:$4 sm:$0xff]  }
 0x26f   : > { %4269 = vmatpush2.bf16.msra.mxu0 %v10502_v8  ;;  %v10556_v8 = vld [vmem:[#allocation7 + $0xbd8] ss:$44 sps:$4 sm:$0xff]  }
 0x270   : > { %9632 = vmatpush3.bf16.msra.mxu1 %v10506_v18  ;;  %4270 = vmatprep.subr.bf16.mxu0 %v10509_v19  ;;  %v10557_v18 = vld [vmem:[#allocation7 + $0xe40] ss:$44 sps:$4 sm:$0xff]  }
 0x271   : > { %9633 = vmatprep.subr.bf16.mxu1 %v10510_v21  ;;  %v10560_v19 = vld [vmem:[#allocation10 + $0x34] ss:$24 sps:$4 sm:$0xff]   ;;  %v10558_v21 = vld [vmem:[#allocation10 + $0x30] ss:$24 sps:$4 sm:$0xff]  }
 0x273   : > { %4271 = vmatpush2.bf16.msra.mxu0 %v10507_v23  ;;  %v10561_v23 = vld [vmem:[#allocation7 + $0xb80] ss:$44 sps:$4 sm:$0xff]  }
 0x274   : > { %9634 = vmatpush3.bf16.msra.mxu1 %v10511_v52  ;;  %4272 = vmatprep.subr.bf16.mxu0 %v10514_v59  ;;  %v10562_v52 = vld [vmem:[#allocation7 + $0xde8] ss:$44 sps:$4 sm:$0xff]  }
 0x275   : > { %9635 = vmatprep.subr.bf16.mxu1 %v10515_v24  ;;  %v10565_v59 = vld [vmem:[#allocation10 + $0x4] ss:$24 sps:$4 sm:$0xff]   ;;  %v10563_v24 = vld [vmem:[#allocation10] ss:$24 sps:$4 sm:$0xff]  }
 0x277   : > { %4273 = vmatpush2.bf16.msra.mxu0 %v10512_v25  ;;  %v10566_v25 = vld [vmem:[#allocation7 + $0xb28] ss:$44 sps:$4 sm:$0xff]  }
 0x278   : > { %9636 = vmatpush3.bf16.msra.mxu1 %v10516_v28  ;;  %4274 = vmatprep.subr.bf16.mxu0 %v10519_v29  ;;  %v10569_v28 = vld [vmem:[#allocation10 + $0x2d4] ss:$24 sps:$4 sm:$0xff]  }
 0x279   : > { %9637 = vmatprep.subr.bf16.mxu1 %v10520_v30  ;;  %v10572_v29 = vld [vmem:[#allocation10 + $0x454] ss:$24 sps:$4 sm:$0xff]   ;;  %v10567_v30 = vld [vmem:[#allocation10 + $0x2d0] ss:$24 sps:$4 sm:$0xff]  }
 0x27b   : > { %4275 = vmatpush2.bf16.msra.mxu0 %v10517_v32  ;;  %v10570_v32 = vld [vmem:[#allocation10 + $0x450] ss:$24 sps:$4 sm:$0xff]  }
 0x27c   : > { %9638 = vmatpush3.bf16.msra.mxu1 %v10521_v33  ;;  %4276 = vmatprep.subr.bf16.mxu0 %v10524_v37  ;;  %v4410_v33 = vmax.f32 %v11856_v56, 0.0  ;;  %v10575_v37 = vld [vmem:[#allocation10 + $0x2a4] ss:$24 sps:$4 sm:$0xff]   ;;  %v10579_v56 = vld [vmem:[#allocation10 + $0x270] ss:$24 sps:$4 sm:$0xff]  }
 0x27d   : > { %9639 = vmatprep.subr.bf16.mxu1 %v10525_v38  ;;  %v10578_v38 = vld [vmem:[#allocation10 + $0x424] ss:$24 sps:$4 sm:$0xff]  }
 0x27f   : > { %4277 = vmatpush2.bf16.msra.mxu0 %v10522_v39  ;;  %v11893_v39 = vpack.c.bf16 %v4410_v33, %v4410_v33 }
 0x280   : > { %9640 = vmatpush3.bf16.msra.mxu1 %v10526_v40  ;;  %9647 = vmatprep.subr.bf16.mxu0 %v10527_v48  ;;  %v10573_v40 = vld [vmem:[#allocation10 + $0x2a0] ss:$24 sps:$4 sm:$0xff]  }
 0x281   : > { %7629 = vmatprep.subr.bf16.mxu1 %v10530_v41  ;;  %v10576_v48 = vld [vmem:[#allocation10 + $0x420] ss:$24 sps:$4 sm:$0xff]   ;;  %v10581_v41 = vld [vmem:[#allocation10 + $0x274] ss:$24 sps:$4 sm:$0xff]  }
 0x282   : > { %v4034_v51 = vpop.f32.mrf.mxu0  ;;  %4279 = vmatmul.mubr.bf16.vlgmr.msra.gmra.mxu0 %v11795_v17 }
 0x283   : > { %4360 = vmatmul.mubr.bf16.vlgmr.msra.gmra.mxu1 %v11785_v11  ;;  %v11881_v13 = vpop.f32.mrf.mxu1  ;;  %v11884_v14 = vadd.f32 %v4034_v51, %v11868_v27  ;;  %9648 = vmatpush3.bf16.msra.mxu0 %v10531_v43  ;;  %v10582_v43 = vld [vmem:[#allocation10 + $0x3f0] ss:$24 sps:$4 sm:$0xff]  }
 0x284   : > { %7630 = vmatpush1.bf16.msra.mxu1 %v10528_v42  ;;  %7661 = vmatprep.mubr.bf16.mxu1 %v11877_v50  ;;  %v11887_v57 = vpop.f32.mrf.mxu0  ;;  %v10584_v42 = vld [vmem:[#allocation10 + $0x3f4] ss:$24 sps:$4 sm:$0xff]   ;;  %v10591_v51 = vld [vmem:[#allocation10 + $0x210] ss:$24 sps:$4 sm:$0xff]  }
 0x285   : > { %9649 = vmatprep.subr.bf16.mxu0 %v10532_v45  ;;  %v11889_v58 = vpop.f32.mrf.mxu1  ;;  %7631 = vmatprep.subr.bf16.mxu1 %v10535_v46  ;;  %v10590_v45 = vld [vmem:[#allocation10 + $0x3c4] ss:$24 sps:$4 sm:$0xff]   ;;  %v10585_v46 = vld [vmem:[#allocation10 + $0x240] ss:$24 sps:$4 sm:$0xff]  }
 0x286   : > { %4399 = vmatprep.mubr.bf16.mxu0 %v11791_v35  ;;  %v4038_v11 = vpop.f32.mrf.mxu0  ;;  %v10548_v35 = vld [vmem:[#allocation10 + $0x90] ss:$24 sps:$4 sm:$0xff]  }
 0x287   : > { %v4079_v63 = vpop.f32.mrf.mxu1  ;;  %9650 = vmatpush3.bf16.msra.mxu0 %v10536_v49  ;;  %v10596_v49 = vld [vmem:[#allocation10 + $0x394] ss:$24 sps:$4 sm:$0xff]   ;;  %v10597_v11 = vld [vmem:[#allocation10 + $0x1e0] ss:$24 sps:$4 sm:$0xff]  }
 0x288   : > { %7632 = vmatpush1.bf16.msra.mxu1 %v10533_v6  ;;  %v4039_v27 = vpop.f32.mrf.mxu0  ;;  %9651 = vmatprep.subr.bf16.mxu0 %v10537_v53  ;;  %v10593_v6 = vld [vmem:[#allocation10 + $0x214] ss:$24 sps:$4 sm:$0xff]   ;;  %v10594_v53 = vld [vmem:[#allocation10 + $0x390] ss:$24 sps:$4 sm:$0xff]  }
 0x289   : > { %7633 = vmatprep.subr.bf16.mxu1 %v10540_v55  ;;  %v4080_v2 = vpop.f32.mrf.mxu1  ;;  %v10599_v55 = vld [vmem:[#allocation10 + $0x1e4] ss:$24 sps:$4 sm:$0xff]   ;;  %v10605_v63 = vld [vmem:[#allocation10 + $0x1b4] ss:$24 sps:$4 sm:$0xff]  }
 0x28a   : > { %v10608_v27 = vld [vmem:[#allocation10 + $0x334] ss:$24 sps:$4 sm:$0xff]   ;;  %v10611_v2 = vld [vmem:[#allocation10 + $0x184] ss:$24 sps:$4 sm:$0xff]  }
 0x28b   : > { %9652 = vmatpush3.bf16.msra.mxu0 %v10541_v61  ;;  %v10600_v61 = vld [vmem:[#allocation10 + $0x360] ss:$24 sps:$4 sm:$0xff]  }
 0x28c   : > { %7634 = vmatpush1.bf16.msra.mxu1 %v10538_v60  ;;  %9653 = vmatprep.subr.bf16.mxu0 %v10542_v0  ;;  %v10602_v60 = vld [vmem:[#allocation10 + $0x364] ss:$24 sps:$4 sm:$0xff]   ;;  %v10603_v0 = vld [vmem:[#allocation10 + $0x1b0] ss:$24 sps:$4 sm:$0xff]  }
 0x28d   : > { %7635 = vmatprep.subr.bf16.mxu1 %v10545_v1  ;;  %v10606_v1 = vld [vmem:[#allocation10 + $0x330] ss:$24 sps:$4 sm:$0xff]  }
 0x28f   : > { %9654 = vmatpush3.bf16.msra.mxu0 %v10546_v5  ;;  %v955_v5 = vsub.s32 6, %v11805_v26 }
 0x290   : > { %7636 = vmatpush1.bf16.msra.mxu1 %v10543_v4  ;;  %9655 = vmatprep.subr.bf16.mxu0 %v10547_v9  ;;  %v10614_v4 = vld [vmem:[#allocation10 + $0x304] ss:$24 sps:$4 sm:$0xff]   ;;  %v10609_v9 = vld [vmem:[#allocation10 + $0x180] ss:$24 sps:$4 sm:$0xff]  }
 0x291   : > { %7637 = vmatprep.subr.bf16.mxu1 %v10550_v10  ;;  %v10612_v10 = vld [vmem:[#allocation10 + $0x300] ss:$24 sps:$4 sm:$0xff]  }
 0x293   : > { %9656 = vmatpush3.bf16.msra.mxu0 %v10551_v12  ;;  %v10617_v12 = vld [vmem:[#allocation10 + $0x5d4] ss:$24 sps:$4 sm:$0xff]  }
 0x294   : > { %7638 = vmatpush1.bf16.msra.mxu1 %v10548_v35  ;;  %9657 = vmatprep.subr.bf16.mxu0 %v10552_v15  ;;  %v4037_v35 = vadd.f32 %v11887_v57, %v11872_v36  ;;  %v10620_v15 = vld [vmem:[#allocation10 + $0x754] ss:$24 sps:$4 sm:$0xff]   ;;  %v10621_v57 = vld [vmem:[#allocation10 + $0x5a0] ss:$24 sps:$4 sm:$0xff]  }
 0x295   : > { %7639 = vmatprep.subr.bf16.mxu1 %v10555_v16  ;;  %v4407_v16 = vmax.f32 %v11828_v7, 0.0 }
 0x297   : > { %9658 = vmatpush3.bf16.msra.mxu0 %v10556_v8 }
 0x298   : > { %7640 = vmatpush1.bf16.msra.mxu1 %v10553_v54  ;;  %9659 = vmatprep.subr.bf16.mxu0 %v10557_v18  ;;  %v11336_v54 = vld [vmem:[#allocation9] sm:$0xff]  ;;  %v10615_v18 = vld [vmem:[#allocation10 + $0x5d0] ss:$24 sps:$4 sm:$0xff]  }
 0x299   : > { %7641 = vmatprep.subr.bf16.mxu1 %v10560_v19  ;;  %v956_v8 = vrot.slane %v11336_v54, %v955_v5  ;;  %v10618_v19 = vld [vmem:[#allocation10 + $0x750] ss:$24 sps:$4 sm:$0xff]  }
 0x29b   : > { %9660 = vmatpush3.bf16.msra.mxu0 %v10561_v23  ;;  %v10623_v23 = vld [vmem:[#allocation10 + $0x5a4] ss:$24 sps:$4 sm:$0xff]   ;;  %v4076_v36 = vadd.f32 %v11881_v13, %v956_v8  ;;  %v10627_v13 = vld [vmem:[#allocation10 + $0x570] ss:$24 sps:$4 sm:$0xff]  }
 0x29c   : > { %7642 = vmatpush1.bf16.msra.mxu1 %v10558_v21  ;;  %9661 = vmatprep.subr.bf16.mxu0 %v10562_v52  ;;  %v4412_v21 = vmax.f32 %v4037_v35, 0.0  ;;  %v10626_v52 = vld [vmem:[#allocation10 + $0x724] ss:$24 sps:$4 sm:$0xff]   ;;  %v10657_v35 = vld [vmem:[#allocation10 + $0x480] ss:$24 sps:$4 sm:$0xff]  }
 0x29d   : > { %7643 = vmatprep.subr.bf16.mxu1 %v10565_v59  ;;  %v11901_v59 = vpack.c.bf16 %v4407_v16, %v4407_v16  ;;  %v10665_v16 = vld [vmem:[#allocation10 + $0x8d4] ss:$24 sps:$4 sm:$0xff]  }
 0x29e   : > { %v11904_v7 = vpack.c.bf16 %v4412_v21, %v4412_v21 }
 0x29f   : > { %9662 = vmatpush3.bf16.msra.mxu0 %v10566_v25 }
 0x2a0   : > { %7644 = vmatpush1.bf16.msra.mxu1 %v10563_v24  ;;  %7670 = vmatprep.subr.bf16.mxu0 %v10572_v29  ;;  %v10624_v24 = vld [vmem:[#allocation10 + $0x720] ss:$24 sps:$4 sm:$0xff]   ;;  %v10629_v29 = vld [vmem:[#allocation10 + $0x574] ss:$24 sps:$4 sm:$0xff]  }
 0x2a1   : > { %7645 = vmatprep.subr.bf16.mxu1 %v10569_v28 }
 0x2a2   : > { %4400 = vmatmul.mubr.bf16.vlgmr.msra.gmra.mxu0 %v11795_v17  ;;  %v10588_v17 = vld [vmem:[#allocation10 + $0x3c0] ss:$24 sps:$4 sm:$0xff]  }
 0x2a3   : > { %7671 = vmatpush1.bf16.msra.mxu0 %v10570_v32  ;;  %7702 = vmatprep.mubr.bf16.mxu0 %v11893_v39  ;;  %v10632_v32 = vld [vmem:[#allocation10 + $0x6f4] ss:$24 sps:$4 sm:$0xff]  }
 0x2a4   : > { %7646 = vmatpush2.bf16.msra.mxu1 %v10567_v30  ;;  %7672 = vmatprep.subr.bf16.mxu0 %v10578_v38 }
 0x2a5   : > { %7647 = vmatprep.subr.bf16.mxu1 %v10575_v37 }
 0x2a7   : > { %7673 = vmatpush1.bf16.msra.mxu0 %v10576_v48 }
 0x2a8   : > { %7648 = vmatpush2.bf16.msra.mxu1 %v10573_v40  ;;  %7674 = vmatprep.subr.bf16.mxu0 %v10584_v42  ;;  %v10630_v40 = vld [vmem:[#allocation10 + $0x6f0] ss:$24 sps:$4 sm:$0xff]  }
 0x2a9   : > { %7649 = vmatprep.subr.bf16.mxu1 %v10581_v41  ;;  %v10635_v41 = vld [vmem:[#allocation10 + $0x544] ss:$24 sps:$4 sm:$0xff]  }
 0x2ab   : > { %7675 = vmatpush1.bf16.msra.mxu0 %v10582_v43 }
 0x2ac   : > { %7650 = vmatpush2.bf16.msra.mxu1 %v10579_v56  ;;  %7676 = vmatprep.subr.bf16.mxu0 %v10590_v45  ;;  %v10638_v56 = vld [vmem:[#allocation10 + $0x6c4] ss:$24 sps:$4 sm:$0xff]   ;;  %v10633_v45 = vld [vmem:[#allocation10 + $0x540] ss:$24 sps:$4 sm:$0xff]  }
 0x2ad   : > { %7651 = vmatprep.subr.bf16.mxu1 %v10587_v44 }
 0x2af   : > { %7677 = vmatpush1.bf16.msra.mxu0 %v10588_v17  ;;  %v10641_v17 = vld [vmem:[#allocation10 + $0x514] ss:$24 sps:$4 sm:$0xff]  }
 0x2b0   : > { %7652 = vmatpush2.bf16.msra.mxu1 %v10585_v46  ;;  %7678 = vmatprep.subr.bf16.mxu0 %v10596_v49  ;;  %v10636_v46 = vld [vmem:[#allocation10 + $0x6c0] ss:$24 sps:$4 sm:$0xff]   ;;  %v10644_v49 = vld [vmem:[#allocation10 + $0x694] ss:$24 sps:$4 sm:$0xff]  }
 0x2b1   : > { %7653 = vmatprep.subr.bf16.mxu1 %v10593_v6  ;;  %v959_v6 = vsub.s32 7, %v11805_v26 }
 0x2b3   : > { %7679 = vmatpush1.bf16.msra.mxu0 %v10594_v53  ;;  %v10642_v53 = vld [vmem:[#allocation10 + $0x690] ss:$24 sps:$4 sm:$0xff]  }
 0x2b4   : > { %7654 = vmatpush2.bf16.msra.mxu1 %v10591_v51  ;;  %7680 = vmatprep.subr.bf16.mxu0 %v10602_v60  ;;  %v10639_v51 = vld [vmem:[#allocation10 + $0x510] ss:$24 sps:$4 sm:$0xff]   ;;  %v10650_v60 = vld [vmem:[#allocation10 + $0x664] ss:$24 sps:$4 sm:$0xff]  }
 0x2b5   : > { %7655 = vmatprep.subr.bf16.mxu1 %v10599_v55  ;;  %v10647_v55 = vld [vmem:[#allocation10 + $0x4e4] ss:$24 sps:$4 sm:$0xff]  }
 0x2b7   : > { %7681 = vmatpush1.bf16.msra.mxu0 %v10600_v61  ;;  %v10645_v61 = vld [vmem:[#allocation10 + $0x4e0] ss:$24 sps:$4 sm:$0xff]  }
 0x2b8   : > { %7656 = vmatpush2.bf16.msra.mxu1 %v10597_v11  ;;  %7682 = vmatprep.subr.bf16.mxu0 %v10608_v27  ;;  %v960_v11 = vrot.slane %v11336_v54, %v959_v6  ;;  %v10653_v27 = vld [vmem:[#allocation10 + $0x4b4] ss:$24 sps:$4 sm:$0xff]   ;;  %v10702_v6 = vld [vmem:[#allocation10 + $0x930] ss:$24 sps:$4 sm:$0xff]  }
 0x2b9   : > { %7657 = vmatprep.subr.bf16.mxu1 %v10605_v63  ;;  %v10648_v63 = vld [vmem:[#allocation10 + $0x660] ss:$24 sps:$4 sm:$0xff]   ;;  %v10668_v54 = vld [vmem:[#allocation10 + $0xa54] ss:$24 sps:$4 sm:$0xff]  }
 0x2bb   : > { %7683 = vmatpush1.bf16.msra.mxu0 %v10606_v1  ;;  %v4078_v1 = vadd.f32 %v11889_v58, %v960_v11  ;;  %v4409_v58 = vmax.f32 %v11852_v47, 0.0  ;;  %v10669_v47 = vld [vmem:[#allocation10 + $0x8a0] ss:$24 sps:$4 sm:$0xff]   ;;  %v10713_v11 = vld [vmem:[#allocation10 + $0xbd4] ss:$24 sps:$4 sm:$0xff]  }
 0x2bc   : > { %7658 = vmatpush2.bf16.msra.mxu1 %v10603_v0  ;;  %7684 = vmatprep.subr.bf16.mxu0 %v10614_v4  ;;  %v10656_v0 = vld [vmem:[#allocation10 + $0x634] ss:$24 sps:$4 sm:$0xff]   ;;  %v10654_v4 = vld [vmem:[#allocation10 + $0x630] ss:$24 sps:$4 sm:$0xff]  }
 0x2bd   : > { %7659 = vmatprep.subr.bf16.mxu1 %v10611_v2  ;;  %v10651_v2 = vld [vmem:[#allocation10 + $0x4b0] ss:$24 sps:$4 sm:$0xff]   ;;  %v11913_v21 = vpack.c.bf16 %v4409_v58, %v4409_v58 }
 0x2be   : > { %v10717_v58 = vld [vmem:[#allocation10 + $0xb70] ss:$24 sps:$4 sm:$0xff]  }
 0x2bf   : > { %7685 = vmatpush1.bf16.msra.mxu0 %v10612_v10  ;;  %v10662_v10 = vld [vmem:[#allocation10 + $0x604] ss:$24 sps:$4 sm:$0xff]  }
 0x2c0   : > { %7660 = vmatpush2.bf16.msra.mxu1 %v10609_v9  ;;  %7686 = vmatprep.subr.bf16.mxu0 %v10617_v12  ;;  %v10659_v9 = vld [vmem:[#allocation10 + $0x484] ss:$24 sps:$4 sm:$0xff]   ;;  %v10660_v12 = vld [vmem:[#allocation10 + $0x600] ss:$24 sps:$4 sm:$0xff]  }
 0x2c1   : > { %7711 = vmatprep.subr.bf16.mxu1 %v10620_v15 }
 0x2c2   : > { %v4116_v25 = vpop.f32.mrf.mxu0 }
 0x2c3   : > { %7662 = vmatmul.mubr.bf16.vlgmr.msra.gmra.mxu1 %v11901_v59  ;;  %v4157_v28 = vpop.f32.mrf.mxu1  ;;  %v4117_v30 = vadd.f32 %v4116_v25, %v4076_v36  ;;  %7687 = vmatpush2.bf16.msra.mxu0 %v10615_v18  ;;  %v10663_v18 = vld [vmem:[#allocation10 + $0x8d0] ss:$24 sps:$4 sm:$0xff]   ;;  %v10680_v25 = vld [vmem:[#allocation10 + $0x9f4] ss:$24 sps:$4 sm:$0xff]  }
 0x2c4   : > { %7712 = vmatpush1.bf16.msra.mxu1 %v10618_v19  ;;  %7743 = vmatprep.mubr.bf16.mxu1 %v11904_v7  ;;  %v4118_v33 = vpop.f32.mrf.mxu0  ;;  %v10666_v19 = vld [vmem:[#allocation10 + $0xa50] ss:$24 sps:$4 sm:$0xff]  }
 0x2c5   : > { %v4159_v37 = vpop.f32.mrf.mxu1  ;;  %7688 = vmatprep.subr.bf16.mxu0 %v10623_v23  ;;  %v11908_v38 = vadd.f32 %v4157_v28, %v4117_v30  ;;  %7713 = vmatprep.subr.bf16.mxu1 %v10626_v52  ;;  %v4119_v5 = vadd.f32 %v4118_v33, %v4078_v1  ;;  %v10671_v23 = vld [vmem:[#allocation10 + $0x8a4] ss:$24 sps:$4 sm:$0xff]   ;;  %v10675_v28 = vld [vmem:[#allocation10 + $0x870] ss:$24 sps:$4 sm:$0xff]   ;;  %v10681_v33 = vld [vmem:[#allocation10 + $0x840] ss:$24 sps:$4 sm:$0xff]  }
 0x2c6   : > { %v4120_v48 = vpop.f32.mrf.mxu0  ;;  %v10674_v52 = vld [vmem:[#allocation10 + $0xa24] ss:$24 sps:$4 sm:$0xff]  }
 0x2c7   : > { %v4161_v42 = vpop.f32.mrf.mxu1  ;;  %7689 = vmatpush2.bf16.msra.mxu0 %v10621_v57  ;;  %v4160_v15 = vadd.f32 %v4159_v37, %v4119_v5  ;;  %v10672_v57 = vld [vmem:[#allocation10 + $0xa20] ss:$24 sps:$4 sm:$0xff]   ;;  %v10683_v30 = vld [vmem:[#allocation10 + $0x844] ss:$24 sps:$4 sm:$0xff]   ;;  %v10687_v48 = vld [vmem:[#allocation10 + $0x810] ss:$24 sps:$4 sm:$0xff]  }
 0x2c8   : > { %7714 = vmatpush1.bf16.msra.mxu1 %v10624_v24  ;;  %v4121_v43 = vpop.f32.mrf.mxu0  ;;  %7690 = vmatprep.subr.bf16.mxu0 %v10629_v29  ;;  %v10677_v24 = vld [vmem:[#allocation10 + $0x874] ss:$24 sps:$4 sm:$0xff]   ;;  %v10678_v29 = vld [vmem:[#allocation10 + $0x9f0] ss:$24 sps:$4 sm:$0xff]   ;;  %v10684_v37 = vld [vmem:[#allocation10 + $0x9c0] ss:$24 sps:$4 sm:$0xff]  }
 0x2c9   : > { %7715 = vmatprep.subr.bf16.mxu1 %v10632_v32  ;;  %v4162_v44 = vpop.f32.mrf.mxu1  ;;  %v4414_v8 = vmax.f32 %v4160_v15, 0.0  ;;  %v10686_v32 = vld [vmem:[#allocation10 + $0x9c4] ss:$24 sps:$4 sm:$0xff]   ;;  %v10693_v43 = vld [vmem:[#allocation10 + $0x7e0] ss:$24 sps:$4 sm:$0xff]  }
 0x2ca   : > { %v10695_v42 = vld [vmem:[#allocation10 + $0x7e4] ss:$24 sps:$4 sm:$0xff]   ;;  %v10696_v44 = vld [vmem:[#allocation10 + $0x960] ss:$24 sps:$4 sm:$0xff]   ;;  %v10734_v15 = vld [vmem:[#allocation10 + $0xcf4] ss:$24 sps:$4 sm:$0xff]  }
 0x2cb   : > { %7691 = vmatpush2.bf16.msra.mxu0 %v10627_v13  ;;  %v11915_v36 = vpack.c.bf16 %v4414_v8, %v4414_v8  ;;  %v10689_v13 = vld [vmem:[#allocation10 + $0x814] ss:$24 sps:$4 sm:$0xff]   ;;  %v10716_v1 = vld [vmem:[#allocation10 + $0xba4] ss:$24 sps:$4 sm:$0xff]   ;;  %v10732_v8 = vld [vmem:[#allocation10 + $0xcf0] ss:$24 sps:$4 sm:$0xff]  }
 0x2cc   : > { %7716 = vmatpush1.bf16.msra.mxu1 %v10630_v40  ;;  %7692 = vmatprep.subr.bf16.mxu0 %v10635_v41  ;;  %v10692_v40 = vld [vmem:[#allocation10 + $0x994] ss:$24 sps:$4 sm:$0xff]   ;;  %v10690_v41 = vld [vmem:[#allocation10 + $0x990] ss:$24 sps:$4 sm:$0xff]  }
 0x2cd   : > { %7717 = vmatprep.subr.bf16.mxu1 %v10638_v56  ;;  %v10698_v56 = vld [vmem:[#allocation10 + $0x964] ss:$24 sps:$4 sm:$0xff]  }
 0x2cf   : > { %7693 = vmatpush2.bf16.msra.mxu0 %v10633_v45  ;;  %v10701_v45 = vld [vmem:[#allocation10 + $0x7b4] ss:$24 sps:$4 sm:$0xff]  }
 0x2d0   : > { %7718 = vmatpush1.bf16.msra.mxu1 %v10636_v46  ;;  %7694 = vmatprep.subr.bf16.mxu0 %v10641_v17  ;;  %v10704_v46 = vld [vmem:[#allocation10 + $0x934] ss:$24 sps:$4 sm:$0xff]   ;;  %v10699_v17 = vld [vmem:[#allocation10 + $0x7b0] ss:$24 sps:$4 sm:$0xff]  }
 0x2d1   : > { %7719 = vmatprep.subr.bf16.mxu1 %v10644_v49  ;;  %v10707_v49 = vld [vmem:[#allocation10 + $0x784] ss:$24 sps:$4 sm:$0xff]  }
 0x2d3   : > { %7695 = vmatpush2.bf16.msra.mxu0 %v10639_v51  ;;  %v10710_v51 = vld [vmem:[#allocation10 + $0x904] ss:$24 sps:$4 sm:$0xff]  }
 0x2d4   : > { %7720 = vmatpush1.bf16.msra.mxu1 %v10642_v53  ;;  %7696 = vmatprep.subr.bf16.mxu0 %v10647_v55  ;;  %v10705_v53 = vld [vmem:[#allocation10 + $0x780] ss:$24 sps:$4 sm:$0xff]  }
 0x2d5   : > { %7721 = vmatprep.subr.bf16.mxu1 %v10650_v60  ;;  %v10708_v55 = vld [vmem:[#allocation10 + $0x900] ss:$24 sps:$4 sm:$0xff]   ;;  %v4411_v60 = vmax.f32 %v11884_v14, 0.0 }
 0x2d6   : > { %v10714_v14 = vld [vmem:[#allocation10 + $0xba0] ss:$24 sps:$4 sm:$0xff]  }
 0x2d7   : > { %7697 = vmatpush2.bf16.msra.mxu0 %v10645_v61  ;;  %v10722_v61 = vld [vmem:[#allocation10 + $0xd54] ss:$24 sps:$4 sm:$0xff]  }
 0x2d8   : > { %7722 = vmatpush1.bf16.msra.mxu1 %v10648_v63  ;;  %7698 = vmatprep.subr.bf16.mxu0 %v10653_v27  ;;  %v10711_v63 = vld [vmem:[#allocation10 + $0xbd0] ss:$24 sps:$4 sm:$0xff]  }
 0x2d9   : > { %7723 = vmatprep.subr.bf16.mxu1 %v10656_v0  ;;  %v10720_v27 = vld [vmem:[#allocation10 + $0xd50] ss:$24 sps:$4 sm:$0xff]   ;;  %v11920_v0 = vpack.c.bf16 %v4411_v60, %v4411_v60 }
 0x2db   : > { %7699 = vmatpush2.bf16.msra.mxu0 %v10651_v2  ;;  %v10728_v2 = vld [vmem:[#allocation10 + $0xd24] ss:$24 sps:$4 sm:$0xff]  }
 0x2dc   : > { %7724 = vmatpush1.bf16.msra.mxu1 %v10654_v4  ;;  %7700 = vmatprep.subr.bf16.mxu0 %v10659_v9  ;;  %v10726_v9 = vld [vmem:[#allocation10 + $0xd20] ss:$24 sps:$4 sm:$0xff]  }
 0x2dd   : > { %7725 = vmatprep.subr.bf16.mxu1 %v10662_v10 }
 0x2df   : > { %7701 = vmatpush2.bf16.msra.mxu0 %v10657_v35 }
 0x2e0   : > { %7726 = vmatpush1.bf16.msra.mxu1 %v10660_v12  ;;  %7752 = vmatprep.subr.bf16.mxu0 %v10668_v54  ;;  %v10719_v12 = vld [vmem:[#allocation10 + $0xb74] ss:$24 sps:$4 sm:$0xff]  }
 0x2e1   : > { %7727 = vmatprep.subr.bf16.mxu1 %v10665_v16 }
 0x2e2   : > { %7703 = vmatmul.mubr.bf16.vlgmr.msra.gmra.mxu0 %v11913_v21 }
 0x2e3   : > { %7753 = vmatpush1.bf16.msra.mxu0 %v10666_v19  ;;  %7784 = vmatprep.mubr.bf16.mxu0 %v11915_v36  ;;  %v10725_v19 = vld [vmem:[#allocation10 + $0xb44] ss:$24 sps:$4 sm:$0xff]  }
 0x2e4   : > { %7728 = vmatpush2.bf16.msra.mxu1 %v10663_v18  ;;  %7754 = vmatprep.subr.bf16.mxu0 %v10674_v52 }
 0x2e5   : > { %7729 = vmatprep.subr.bf16.mxu1 %v10671_v23  ;;  %v10740_v23 = vld [vmem:[#allocation10 + $0xcc4] ss:$24 sps:$4 sm:$0xff]  }
 0x2e7   : > { %7755 = vmatpush1.bf16.msra.mxu0 %v10672_v57  ;;  %v10738_v57 = vld [vmem:[#allocation10 + $0xcc0] ss:$24 sps:$4 sm:$0xff]  }
 0x2e8   : > { %7730 = vmatpush2.bf16.msra.mxu1 %v10669_v47  ;;  %7756 = vmatprep.subr.bf16.mxu0 %v10680_v25  ;;  %v10723_v47 = vld [vmem:[#allocation10 + $0xb40] ss:$24 sps:$4 sm:$0xff]   ;;  %v10746_v25 = vld [vmem:[#allocation10 + $0xc94] ss:$24 sps:$4 sm:$0xff]  }
 0x2e9   : > { %7731 = vmatprep.subr.bf16.mxu1 %v10677_v24  ;;  %v10731_v24 = vld [vmem:[#allocation10 + $0xb14] ss:$24 sps:$4 sm:$0xff]  }
 0x2eb   : > { %7757 = vmatpush1.bf16.msra.mxu0 %v10678_v29  ;;  %v10744_v29 = vld [vmem:[#allocation10 + $0xc90] ss:$24 sps:$4 sm:$0xff]  }
 0x2ec   : > { %7732 = vmatpush2.bf16.msra.mxu1 %v10675_v28  ;;  %7758 = vmatprep.subr.bf16.mxu0 %v10686_v32  ;;  %v10729_v28 = vld [vmem:[#allocation10 + $0xb10] ss:$24 sps:$4 sm:$0xff]   ;;  %v10752_v32 = vld [vmem:[#allocation10 + $0xc64] ss:$24 sps:$4 sm:$0xff]  }
 0x2ed   : > { %7733 = vmatprep.subr.bf16.mxu1 %v10683_v30  ;;  %v10737_v30 = vld [vmem:[#allocation10 + $0xae4] ss:$24 sps:$4 sm:$0xff]  }
 0x2ef   : > { %7759 = vmatpush1.bf16.msra.mxu0 %v10684_v37  ;;  %v10750_v37 = vld [vmem:[#allocation10 + $0xc60] ss:$24 sps:$4 sm:$0xff]  }
 0x2f0   : > { %7734 = vmatpush2.bf16.msra.mxu1 %v10681_v33  ;;  %7760 = vmatprep.subr.bf16.mxu0 %v10692_v40  ;;  %v10735_v33 = vld [vmem:[#allocation10 + $0xae0] ss:$24 sps:$4 sm:$0xff]   ;;  %v10755_v40 = vld [vmem:[#allocation10 + $0xc34] ss:$24 sps:$4 sm:$0xff]  }
 0x2f1   : > { %7735 = vmatprep.subr.bf16.mxu1 %v10689_v13  ;;  %v10743_v13 = vld [vmem:[#allocation10 + $0xab4] ss:$24 sps:$4 sm:$0xff]  }
 0x2f3   : > { %7761 = vmatpush1.bf16.msra.mxu0 %v10690_v41  ;;  %v10753_v41 = vld [vmem:[#allocation10 + $0xc30] ss:$24 sps:$4 sm:$0xff]  }
 0x2f4   : > { %7736 = vmatpush2.bf16.msra.mxu1 %v10687_v48  ;;  %7762 = vmatprep.subr.bf16.mxu0 %v10698_v56  ;;  %v10741_v48 = vld [vmem:[#allocation10 + $0xab0] ss:$24 sps:$4 sm:$0xff]   ;;  %v10758_v56 = vld [vmem:[#allocation10 + $0xc04] ss:$24 sps:$4 sm:$0xff]  }
 0x2f5   : > { %7737 = vmatprep.subr.bf16.mxu1 %v10695_v42  ;;  %v10749_v42 = vld [vmem:[#allocation10 + $0xa84] ss:$24 sps:$4 sm:$0xff]  }
 0x2f7   : > { %7763 = vmatpush1.bf16.msra.mxu0 %v10696_v44  ;;  %v10756_v44 = vld [vmem:[#allocation10 + $0xc00] ss:$24 sps:$4 sm:$0xff]  }
 0x2f8   : > { %7738 = vmatpush2.bf16.msra.mxu1 %v10693_v43  ;;  %7764 = vmatprep.subr.bf16.mxu0 %v10704_v46  ;;  %v10747_v43 = vld [vmem:[#allocation10 + $0xa80] ss:$24 sps:$4 sm:$0xff]   ;;  %v10761_v46 = vld [vmem:[#allocation10 + $0xed4] ss:$24 sps:$4 sm:$0xff]  }
 0x2f9   : > { %7739 = vmatprep.subr.bf16.mxu1 %v10701_v45  ;;  %v4413_v45 = vmax.f32 %v11908_v38, 0.0  ;;  %v10762_v38 = vld [vmem:[#allocation10 + $0xea0] ss:$24 sps:$4 sm:$0xff]  }
 0x2fb   : > { %7765 = vmatpush1.bf16.msra.mxu0 %v10702_v6  ;;  %v10759_v6 = vld [vmem:[#allocation10 + $0xed0] ss:$24 sps:$4 sm:$0xff]  }
 0x2fc   : > { %7740 = vmatpush2.bf16.msra.mxu1 %v10699_v17  ;;  %7766 = vmatprep.subr.bf16.mxu0 %v10710_v51  ;;  %v10788_v17 = vld [vmem:[#allocation10 + $0x1054] ss:$24 sps:$4 sm:$0xff]   ;;  %v11932_v51 = vpack.c.bf16 %v4413_v45, %v4413_v45 }
 0x2fd   : > { %7741 = vmatprep.subr.bf16.mxu1 %v10707_v49  ;;  %v10786_v49 = vld [vmem:[#allocation10 + $0x1050] ss:$24 sps:$4 sm:$0xff]  }
 0x2ff   : > { %7767 = vmatpush1.bf16.msra.mxu0 %v10708_v55  ;;  %v10794_v55 = vld [vmem:[#allocation10 + $0x1024] ss:$24 sps:$4 sm:$0xff]  }
 0x300   : > { %7742 = vmatpush2.bf16.msra.mxu1 %v10705_v53  ;;  %7768 = vmatprep.subr.bf16.mxu0 %v10713_v11  ;;  %v10764_v53 = vld [vmem:[#allocation10 + $0xea4] ss:$24 sps:$4 sm:$0xff]   ;;  %v10792_v11 = vld [vmem:[#allocation10 + $0x1020] ss:$24 sps:$4 sm:$0xff]  }
 0x301   : > { %7793 = vmatprep.subr.bf16.mxu1 %v10722_v61  ;;  %v10767_v61 = vld [vmem:[#allocation10 + $0xe74] ss:$24 sps:$4 sm:$0xff]  }
 0x302   : > { %v11922_v4 = vpop.f32.mrf.mxu0 }
 0x303   : > { %7744 = vmatmul.mubr.bf16.vlgmr.msra.gmra.mxu1 %v11920_v0  ;;  %v11925_v5 = vpop.f32.mrf.mxu1  ;;  %7769 = vmatpush2.bf16.msra.mxu0 %v10711_v63 }
 0x304   : > { %7794 = vmatpush1.bf16.msra.mxu1 %v10720_v27  ;;  %v11927_v10 = vpop.f32.mrf.mxu0  ;;  %7770 = vmatprep.subr.bf16.mxu0 %v10716_v1  ;;  %v10800_v27 = vld [vmem:[#allocation10 + $0xff4] ss:$24 sps:$4 sm:$0xff]   ;;  %v11575_v1 = vmov 0  }
 0x305   : > { %v11929_v35 = vpop.f32.mrf.mxu1  ;;  %7795 = vmatprep.subr.bf16.mxu1 %v10728_v2 }
 0x306   : > { %v4202_v16 = vpop.f32.mrf.mxu0 }
 0x307   : > { %v4243_v54 = vpop.f32.mrf.mxu1  ;;  %7771 = vmatpush2.bf16.msra.mxu0 %v10714_v14  ;;  %v10765_v14 = vld [vmem:[#allocation10 + $0xe70] ss:$24 sps:$4 sm:$0xff]   ;;  %v10806_v16 = vld [vmem:[#allocation10 + $0xfc4] ss:$24 sps:$4 sm:$0xff]  }
 0x308   : > { %7796 = vmatpush1.bf16.msra.mxu1 %v10726_v9  ;;  %v4203_v18 = vpop.f32.mrf.mxu0  ;;  %7772 = vmatprep.subr.bf16.mxu0 %v10719_v12  ;;  %v10798_v9 = vld [vmem:[#allocation10 + $0xff0] ss:$24 sps:$4 sm:$0xff]   ;;  %v10770_v12 = vld [vmem:[#allocation10 + $0xe44] ss:$24 sps:$4 sm:$0xff]   ;;  %v10768_v54 = vld [vmem:[#allocation10 + $0xe40] ss:$24 sps:$4 sm:$0xff]  }
 0x309   : > { %7797 = vmatprep.subr.bf16.mxu1 %v10734_v15  ;;  %v4244_v52 = vpop.f32.mrf.mxu1  ;;  %v10812_v18 = vld [vmem:[#allocation10 + $0xf94] ss:$24 sps:$4 sm:$0xff]  }
 0x30a   : > { %v10776_v52 = vld [vmem:[#allocation10 + $0xde4] ss:$24 sps:$4 sm:$0xff]  }
 0x30b   : > { %7773 = vmatpush2.bf16.msra.mxu0 %v10717_v58  ;;  %v10804_v58 = vld [vmem:[#allocation10 + $0xfc0] ss:$24 sps:$4 sm:$0xff]  }
 0x30c   : > { %7798 = vmatpush1.bf16.msra.mxu1 %v10732_v8  ;;  %7774 = vmatprep.subr.bf16.mxu0 %v10725_v19  ;;  %v10773_v8 = vld [vmem:[#allocation10 + $0xe14] ss:$24 sps:$4 sm:$0xff]   ;;  %v10771_v19 = vld [vmem:[#allocation10 + $0xe10] ss:$24 sps:$4 sm:$0xff]  }
 0x30d   : > { %7799 = vmatprep.subr.bf16.mxu1 %v10740_v23  ;;  %v10810_v23 = vld [vmem:[#allocation10 + $0xf90] ss:$24 sps:$4 sm:$0xff]  }
 0x30f   : > { %7775 = vmatpush2.bf16.msra.mxu0 %v10723_v47  ;;  %v10818_v47 = vld [vmem:[#allocation10 + $0xf64] ss:$24 sps:$4 sm:$0xff]  }
 0x310   : > { %7800 = vmatpush1.bf16.msra.mxu1 %v10738_v57  ;;  %7776 = vmatprep.subr.bf16.mxu0 %v10731_v24  ;;  %v10774_v57 = vld [vmem:[#allocation10 + $0xde0] ss:$24 sps:$4 sm:$0xff]  }
 0x311   : > { %7801 = vmatprep.subr.bf16.mxu1 %v10746_v25  ;;  %v10816_v24 = vld [vmem:[#allocation10 + $0xf60] ss:$24 sps:$4 sm:$0xff]   ;;  %v10779_v25 = vld [vmem:[#allocation10 + $0xdb4] ss:$24 sps:$4 sm:$0xff]  }
 0x313   : > { %7777 = vmatpush2.bf16.msra.mxu0 %v10729_v28  ;;  %v10824_v28 = vld [vmem:[#allocation10 + $0xf34] ss:$24 sps:$4 sm:$0xff]  }
 0x314   : > { %7802 = vmatpush1.bf16.msra.mxu1 %v10744_v29  ;;  %7778 = vmatprep.subr.bf16.mxu0 %v10737_v30  ;;  %v11940_v29 = vld [vmem:[#allocation9 + $0x8] sm:$0x7]  ;;  %v10777_v30 = vld [vmem:[#allocation10 + $0xdb0] ss:$24 sps:$4 sm:$0xff]  }
 0x315   : > { %7803 = vmatprep.subr.bf16.mxu1 %v10752_v32  ;;  %v10822_v32 = vld [vmem:[#allocation10 + $0xf30] ss:$24 sps:$4 sm:$0xff]  }
 0x317   : > { %7779 = vmatpush2.bf16.msra.mxu0 %v10735_v33  ;;  %v10782_v33 = vld [vmem:[#allocation10 + $0xd84] ss:$24 sps:$4 sm:$0xff]  }
 0x318   : > { %7804 = vmatpush1.bf16.msra.mxu1 %v10750_v37  ;;  %7780 = vmatprep.subr.bf16.mxu0 %v10743_v13  ;;  %v10830_v37 = vld [vmem:[#allocation10 + $0xf04] ss:$24 sps:$4 sm:$0xff]   ;;  %v964_v13 = vrot.slane %v11940_v29, %v11808_v31 }
 0x319   : > { %7805 = vmatprep.subr.bf16.mxu1 %v10755_v40  ;;  %v968_v40 = vrot.slane %v11940_v29, %v11811_v34 }
 0x31b   : > { %7781 = vmatpush2.bf16.msra.mxu0 %v10741_v48  ;;  %v10780_v48 = vld [vmem:[#allocation10 + $0xd80] ss:$24 sps:$4 sm:$0xff]  }
 0x31c   : > { %7806 = vmatpush1.bf16.msra.mxu1 %v10753_v41  ;;  %7782 = vmatprep.subr.bf16.mxu0 %v10749_v42  ;;  %v10828_v41 = vld [vmem:[#allocation10 + $0xf00] ss:$24 sps:$4 sm:$0xff]   ;;  %v10785_v42 = vld [vmem:[#allocation10 + $0x45c] ss:$24 sps:$4 sm:$0xff]  }
 0x31d   : > { %7807 = vmatprep.subr.bf16.mxu1 %v10758_v56  ;;  %v10836_v56 = vld [vmem:[#allocation10 + $0x15c] ss:$24 sps:$4 sm:$0xff]  }
 0x31f   : > { %7783 = vmatpush2.bf16.msra.mxu0 %v10747_v43  ;;  %v4199_v43 = vadd.f32 %v11922_v4, %v964_v13 }
 0x320   : > { %7808 = vmatpush1.bf16.msra.mxu1 %v10756_v44  ;;  %7834 = vmatprep.subr.bf16.mxu0 %v10788_v17  ;;  %v4201_v44 = vadd.f32 %v11927_v10, %v968_v40  ;;  %v10825_v40 = vld [vmem:[#allocation10 + $0x308] ss:$24 sps:$4 sm:$0xff]  }
 0x321   : > { %7809 = vmatprep.subr.bf16.mxu1 %v10761_v46  ;;  %v4240_v45 = vadd.f32 %v11925_v5, %v4199_v43  ;;  %v10791_v5 = vld [vmem:[#allocation10 + $0x42c] ss:$24 sps:$4 sm:$0xff]  }
 0x322   : > { %7785 = vmatmul.mubr.bf16.vlgmr.msra.gmra.mxu0 %v11932_v51 }
 0x323   : > { %v11935_v60 = vpop.f32.mrf.mxu1  ;;  %7835 = vmatpush1.bf16.msra.mxu0 %v10786_v49  ;;  %7866 = vmatprep.mubr.bf16.mxu0 %v11575_v1 }
 0x324   : > { %7810 = vmatpush2.bf16.msra.mxu1 %v10759_v6  ;;  %7836 = vmatprep.subr.bf16.mxu0 %v10794_v55  ;;  %v4242_v6 = vadd.f32 %v11929_v35, %v4201_v44  ;;  %v10789_v35 = vld [vmem:[#allocation10 + $0x428] ss:$24 sps:$4 sm:$0xff]   ;;  %v10839_v44 = vld [vmem:[#allocation10 + $0x5ac] ss:$24 sps:$4 sm:$0xff]  }
 0x325   : > { %7811 = vmatprep.subr.bf16.mxu1 %v10764_v53  ;;  %v11937_v63 = vpop.f32.mrf.mxu1 }
 0x327   : > { %v9622_v2 = vpop.f32.mrf.mxu1  ;;  %7837 = vmatpush1.bf16.msra.mxu0 %v10792_v11 }
 0x328   : > { %7812 = vmatpush2.bf16.msra.mxu1 %v10762_v38  ;;  %7838 = vmatprep.subr.bf16.mxu0 %v10800_v27 }
 0x329   : > { %7813 = vmatprep.subr.bf16.mxu1 %v10767_v61  ;;  %v9623_v15 = vpop.f32.mrf.mxu1 }
 0x32a   : > { %v10797_v15 = vld [vmem:[#allocation10 + $0x3fc] ss:$24 sps:$4 sm:$0xff]  }
 0x32b   : > { %7839 = vmatpush1.bf16.msra.mxu0 %v10798_v9  ;;  %v10783_v9 = vld [vmem:[#allocation10 + $0x458] ss:$24 sps:$4 sm:$0xff]  }
 0x32c   : > { %7814 = vmatpush2.bf16.msra.mxu1 %v10765_v14  ;;  %7840 = vmatprep.subr.bf16.mxu0 %v10806_v16  ;;  %v10795_v16 = vld [vmem:[#allocation10 + $0x3f8] ss:$24 sps:$4 sm:$0xff]  }
 0x32d   : > { %7815 = vmatprep.subr.bf16.mxu1 %v10770_v12 }
 0x32f   : > { %7841 = vmatpush1.bf16.msra.mxu0 %v10804_v58  ;;  %v10801_v58 = vld [vmem:[#allocation10 + $0x3c8] ss:$24 sps:$4 sm:$0xff]  }
 0x330   : > { %7816 = vmatpush2.bf16.msra.mxu1 %v10768_v54  ;;  %7842 = vmatprep.subr.bf16.mxu0 %v10812_v18  ;;  %v10803_v54 = vld [vmem:[#allocation10 + $0x3cc] ss:$24 sps:$4 sm:$0xff]   ;;  %v10807_v18 = vld [vmem:[#allocation10 + $0x398] ss:$24 sps:$4 sm:$0xff]  }
 0x331   : > { %7817 = vmatprep.subr.bf16.mxu1 %v10773_v8  ;;  %v10809_v8 = vld [vmem:[#allocation10 + $0x39c] ss:$24 sps:$4 sm:$0xff]  }
 0x333   : > { %7843 = vmatpush1.bf16.msra.mxu0 %v10810_v23  ;;  %v972_v23 = vrot.slane %v11940_v29, %v11838_v20 }
 0x334   : > { %7818 = vmatpush2.bf16.msra.mxu1 %v10771_v19  ;;  %7844 = vmatprep.subr.bf16.mxu0 %v10818_v47  ;;  %v10815_v19 = vld [vmem:[#allocation10 + $0x36c] ss:$24 sps:$4 sm:$0xff]   ;;  %v10813_v47 = vld [vmem:[#allocation10 + $0x368] ss:$24 sps:$4 sm:$0xff]  }
 0x335   : > { %7819 = vmatprep.subr.bf16.mxu1 %v10776_v52  ;;  %v9621_v52 = vadd.f32 %v11937_v63, %v11935_v60 }
 0x337   : > { %7845 = vmatpush1.bf16.msra.mxu0 %v10816_v24  ;;  %v4322_v24 = vadd.f32 %v9621_v52, %v972_v23  ;;  %v10875_v23 = vld [vmem:[#allocation10 + $0x48c] ss:$24 sps:$4 sm:$0xff]  }
 0x338   : > { %7820 = vmatpush2.bf16.msra.mxu1 %v10774_v57  ;;  %7846 = vmatprep.subr.bf16.mxu0 %v10824_v28  ;;  %v10821_v57 = vld [vmem:[#allocation10 + $0x33c] ss:$24 sps:$4 sm:$0xff]   ;;  %v10819_v28 = vld [vmem:[#allocation10 + $0x338] ss:$24 sps:$4 sm:$0xff]   ;;  %v10878_v52 = vld [vmem:[#allocation10 + $0xc] ss:$24 sps:$4 sm:$0xff]  }
 0x339   : > { %7821 = vmatprep.subr.bf16.mxu1 %v10779_v25 }
 0x33b   : > { %7847 = vmatpush1.bf16.msra.mxu0 %v10822_v32  ;;  %v10827_v32 = vld [vmem:[#allocation10 + $0x30c] ss:$24 sps:$4 sm:$0xff]  }
 0x33c   : > { %7822 = vmatpush2.bf16.msra.mxu1 %v10777_v30  ;;  %7848 = vmatprep.subr.bf16.mxu0 %v10830_v37 }
 0x33d   : > { %7823 = vmatprep.subr.bf16.mxu1 %v10782_v33 }
 0x33f   : > { %7849 = vmatpush1.bf16.msra.mxu0 %v10828_v41 }
 0x340   : > { %7824 = vmatpush2.bf16.msra.mxu1 %v10780_v48  ;;  %7875 = vmatprep.subr.bf16.mxu0 %v10836_v56  ;;  %v10833_v48 = vld [vmem:[#allocation10 + $0x5dc] ss:$24 sps:$4 sm:$0xff]   ;;  %v10834_v56 = vld [vmem:[#allocation10 + $0x158] ss:$24 sps:$4 sm:$0xff]  }
 0x341   : > { %7916 = vmatprep.subr.bf16.mxu1 %v10785_v42  ;;  %v10831_v42 = vld [vmem:[#allocation10 + $0x5d8] ss:$24 sps:$4 sm:$0xff]  }
 0x342   : > { %v4280_v46 = vpop.f32.mrf.mxu0 }
 0x343   : > { %v9641_v17 = vpop.f32.mrf.mxu1  ;;  %v4281_v49 = vadd.f32 %v4280_v46, %v4240_v45  ;;  %v10842_v45 = vld [vmem:[#allocation10 + $0x12c] ss:$24 sps:$4 sm:$0xff]   ;;  %v10837_v46 = vld [vmem:[#allocation10 + $0x5a8] ss:$24 sps:$4 sm:$0xff]  }
 0x344   : > { %v4282_v53 = vpop.f32.mrf.mxu0 }
 0x345   : > { %v9642_v55 = vpop.f32.mrf.mxu1  ;;  %v4283_v38 = vadd.f32 %v4282_v53, %v4242_v6  ;;  %v4415_v11 = vmax.f32 %v4281_v49, 0.0  ;;  %v10845_v6 = vld [vmem:[#allocation10 + $0x57c] ss:$24 sps:$4 sm:$0xff]   ;;  %v10843_v53 = vld [vmem:[#allocation10 + $0x578] ss:$24 sps:$4 sm:$0xff]  }
 0x346   : > { %v4284_v61 = vpop.f32.mrf.mxu0  ;;  %v9643_v25 = vadd.f32 %v9642_v55, %v9641_v17  ;;  %v10840_v17 = vld [vmem:[#allocation10 + $0x128] ss:$24 sps:$4 sm:$0xff]   ;;  %v10848_v49 = vld [vmem:[#allocation10 + $0xfc] ss:$24 sps:$4 sm:$0xff]   ;;  %v10846_v55 = vld [vmem:[#allocation10 + $0xf8] ss:$24 sps:$4 sm:$0xff]  }
 0x347   : > { %v9644_v27 = vpop.f32.mrf.mxu1  ;;  %v4416_v4 = vmax.f32 %v4283_v38, 0.0  ;;  %v11952_v12 = vpack.c.bf16 %v4415_v11, %v4415_v11  ;;  %v10851_v38 = vld [vmem:[#allocation10 + $0x54c] ss:$24 sps:$4 sm:$0xff]   ;;  %v10849_v61 = vld [vmem:[#allocation10 + $0x548] ss:$24 sps:$4 sm:$0xff]  }
 0x348   : > { %v4285_v2 = vpop.f32.mrf.mxu0  ;;  %v4362_v37 = vadd.f32 %v9643_v25, %v4322_v24  ;;  %v10854_v11 = vld [vmem:[#allocation10 + $0xcc] ss:$24 sps:$4 sm:$0xff]   ;;  %v10852_v27 = vld [vmem:[#allocation10 + $0xc8] ss:$24 sps:$4 sm:$0xff]  }
 0x349   : > { %v9645_v10 = vpop.f32.mrf.mxu1  ;;  %v11950_v14 = vpack.c.bf16 %v4416_v4, %v4416_v4  ;;  %v10857_v4 = vld [vmem:[#allocation10 + $0x51c] ss:$24 sps:$4 sm:$0xff]   ;;  %v10876_v25 = vld [vmem:[#allocation10 + $0x8] ss:$24 sps:$4 sm:$0xff]  }
 0x34a   : > { %v10860_v2 = vld [vmem:[#allocation10 + $0x9c] ss:$24 sps:$4 sm:$0xff]   ;;  %v10855_v10 = vld [vmem:[#allocation10 + $0x518] ss:$24 sps:$4 sm:$0xff]  }
 0x34b   : > { %7825 = vmatprep.mubr.bf16.mxu1 %v11950_v14 }
 0x34c   : > { %7826 = vmatmul.mubr.bf16.vlgmr.msra.gmra.mxu1 %v11952_v12 }
 0x34d   : > { %7917 = vmatpush1.bf16.msra.mxu1 %v10783_v9  ;;  %7948 = vmatprep.mubr.bf16.mxu1 %v11893_v39  ;;  %v10858_v9 = vld [vmem:[#allocation10 + $0x98] ss:$24 sps:$4 sm:$0xff]  }
 0x34e   : > { %7918 = vmatprep.subr.bf16.mxu1 %v10791_v5  ;;  %v10863_v5 = vld [vmem:[#allocation10 + $0x4ec] ss:$24 sps:$4 sm:$0xff]  }
 0x351   : > { %7919 = vmatpush1.bf16.msra.mxu1 %v10789_v35  ;;  %v10866_v35 = vld [vmem:[#allocation10 + $0x6c] ss:$24 sps:$4 sm:$0xff]  }
 0x352   : > { %7920 = vmatprep.subr.bf16.mxu1 %v10797_v15  ;;  %v10861_v15 = vld [vmem:[#allocation10 + $0x4e8] ss:$24 sps:$4 sm:$0xff]  }
 0x355   : > { %7921 = vmatpush1.bf16.msra.mxu1 %v10795_v16  ;;  %v10864_v16 = vld [vmem:[#allocation10 + $0x68] ss:$24 sps:$4 sm:$0xff]  }
 0x356   : > { %7922 = vmatprep.subr.bf16.mxu1 %v10803_v54  ;;  %v10869_v54 = vld [vmem:[#allocation10 + $0x4bc] ss:$24 sps:$4 sm:$0xff]  }
 0x359   : > { %7923 = vmatpush1.bf16.msra.mxu1 %v10801_v58  ;;  %v10872_v58 = vld [vmem:[#allocation10 + $0x3c] ss:$24 sps:$4 sm:$0xff]  }
 0x35a   : > { %7924 = vmatprep.subr.bf16.mxu1 %v10809_v8  ;;  %v10867_v8 = vld [vmem:[#allocation10 + $0x4b8] ss:$24 sps:$4 sm:$0xff]  }
 0x35d   : > { %7925 = vmatpush1.bf16.msra.mxu1 %v10807_v18 }
 0x35e   : > { %7926 = vmatprep.subr.bf16.mxu1 %v10815_v19  ;;  %v10870_v19 = vld [vmem:[#allocation10 + $0x38] ss:$24 sps:$4 sm:$0xff]  }
 0x361   : > { %7927 = vmatpush1.bf16.msra.mxu1 %v10813_v47 }
 0x362   : > { %v9663_v30 = vpop.f32.mrf.mxu0  ;;  %7928 = vmatprep.subr.bf16.mxu1 %v10821_v57  ;;  %v10873_v57 = vld [vmem:[#allocation10 + $0x488] ss:$24 sps:$4 sm:$0xff]  }
 0x364   : > { %v9664_v33 = vpop.f32.mrf.mxu0 }
 0x365   : > { %v9665_v13 = vadd.f32 %v9664_v33, %v9663_v30  ;;  %7929 = vmatpush1.bf16.msra.mxu1 %v10819_v28  ;;  %v10881_v28 = vld [vmem:[#allocation10 + $0xa5c] ss:$24 sps:$4 sm:$0xff]   ;;  %v10879_v33 = vld [vmem:[#allocation10 + $0xa58] ss:$24 sps:$4 sm:$0xff]  }
 0x366   : > { %v9666_v29 = vpop.f32.mrf.mxu0  ;;  %7930 = vmatprep.subr.bf16.mxu1 %v10827_v32  ;;  %v10884_v30 = vld [vmem:[#allocation10 + $0x2dc] ss:$24 sps:$4 sm:$0xff]  }
 0x367   : > { %v4402_v60 = vadd.f32 %v9665_v13, %v4362_v37  ;;  %v10882_v37 = vld [vmem:[#allocation10 + $0x2d8] ss:$24 sps:$4 sm:$0xff]   ;;  %v10887_v13 = vld [vmem:[#allocation10 + $0xa2c] ss:$24 sps:$4 sm:$0xff]   ;;  %v10885_v29 = vld [vmem:[#allocation10 + $0xa28] ss:$24 sps:$4 sm:$0xff]  }
 0x368   : > { %v9667_v63 = vpop.f32.mrf.mxu0 }
 0x369   : > { %v4417_v41 = vmax.f32 %v4402_v60, 0.0  ;;  %7931 = vmatpush1.bf16.msra.mxu1 %v10825_v40  ;;  %v10890_v40 = vld [vmem:[#allocation10 + $0x2ac] ss:$24 sps:$4 sm:$0xff]   ;;  %v10893_v60 = vld [vmem:[#allocation10 + $0x9fc] ss:$24 sps:$4 sm:$0xff]  }
 0x36a   : > { %7932 = vmatprep.subr.bf16.mxu1 %v10833_v48  ;;  %v10888_v48 = vld [vmem:[#allocation10 + $0x2a8] ss:$24 sps:$4 sm:$0xff]   ;;  %v10896_v63 = vld [vmem:[#allocation10 + $0x27c] ss:$24 sps:$4 sm:$0xff]  }
 0x36b   : > { %v11961_v43 = vpack.c.bf16 %v4417_v41, %v4417_v41  ;;  %v10891_v41 = vld [vmem:[#allocation10 + $0x9f8] ss:$24 sps:$4 sm:$0xff]  }
 0x36d   : > { %7933 = vmatpush2.bf16.msra.mxu1 %v10831_v42  ;;  %7867 = vmatmul.mubr.bf16.vlgmr.msra.gmra.mxu0 %v11961_v43  ;;  %v10894_v42 = vld [vmem:[#allocation10 + $0x278] ss:$24 sps:$4 sm:$0xff]  }
 0x36e   : > { %7876 = vmatpush1.bf16.msra.mxu0 %v10834_v56  ;;  %7907 = vmatprep.mubr.bf16.mxu0 %v11877_v50  ;;  %v10899_v56 = vld [vmem:[#allocation10 + $0x9cc] ss:$24 sps:$4 sm:$0xff]  }
 0x36f   : > { %7934 = vmatprep.subr.bf16.mxu1 %v10839_v44  ;;  %7877 = vmatprep.subr.bf16.mxu0 %v10842_v45  ;;  %v10902_v44 = vld [vmem:[#allocation10 + $0x24c] ss:$24 sps:$4 sm:$0xff]   ;;  %v10897_v45 = vld [vmem:[#allocation10 + $0x9c8] ss:$24 sps:$4 sm:$0xff]  }
 0x371   : > { %7935 = vmatpush2.bf16.msra.mxu1 %v10837_v46  ;;  %v10900_v46 = vld [vmem:[#allocation10 + $0x248] ss:$24 sps:$4 sm:$0xff]  }
 0x372   : > { %7878 = vmatpush1.bf16.msra.mxu0 %v10840_v17  ;;  %7936 = vmatprep.subr.bf16.mxu1 %v10845_v6  ;;  %v10905_v17 = vld [vmem:[#allocation10 + $0x99c] ss:$24 sps:$4 sm:$0xff]  }
 0x373   : > { %7879 = vmatprep.subr.bf16.mxu0 %v10848_v49  ;;  %v10908_v6 = vld [vmem:[#allocation10 + $0x21c] ss:$24 sps:$4 sm:$0xff]   ;;  %v10903_v49 = vld [vmem:[#allocation10 + $0x998] ss:$24 sps:$4 sm:$0xff]  }
 0x375   : > { %7937 = vmatpush2.bf16.msra.mxu1 %v10843_v53  ;;  %v11971_v53 = vld [vmem:[#allocation12] sm:$0x3f] }
 0x376   : > { %7880 = vmatpush1.bf16.msra.mxu0 %v10846_v55  ;;  %7938 = vmatprep.subr.bf16.mxu1 %v10851_v38  ;;  %v10906_v55 = vld [vmem:[#allocation10 + $0x218] ss:$24 sps:$4 sm:$0xff]   ;;  %v10911_v38 = vld [vmem:[#allocation10 + $0x96c] ss:$24 sps:$4 sm:$0xff]  }
 0x377   : > { %7881 = vmatprep.subr.bf16.mxu0 %v10854_v11  ;;  %v10914_v11 = vld [vmem:[#allocation10 + $0x1ec] ss:$24 sps:$4 sm:$0xff]  }
 0x379   : > { %7939 = vmatpush2.bf16.msra.mxu1 %v10849_v61  ;;  %v4962_v61 = vrot.slane %v11971_v53, %v11808_v31  ;;  %v10923_v31 = vld [vmem:[#allocation10 + $0x90c] ss:$24 sps:$4 sm:$0xff]  }
 0x37a   : > { %7882 = vmatpush1.bf16.msra.mxu0 %v10852_v27  ;;  %7940 = vmatprep.subr.bf16.mxu1 %v10857_v4  ;;  %v10909_v27 = vld [vmem:[#allocation10 + $0x968] ss:$24 sps:$4 sm:$0xff]  }
 0x37b   : > { %7883 = vmatprep.subr.bf16.mxu0 %v10860_v2  ;;  %v10912_v4 = vld [vmem:[#allocation10 + $0x1e8] ss:$24 sps:$4 sm:$0xff]   ;;  %v10917_v2 = vld [vmem:[#allocation10 + $0x93c] ss:$24 sps:$4 sm:$0xff]  }
 0x37d   : > { %7941 = vmatpush2.bf16.msra.mxu1 %v10855_v10  ;;  %v4966_v10 = vrot.slane %v11971_v53, %v11811_v34  ;;  %v10921_v34 = vld [vmem:[#allocation10 + $0x908] ss:$24 sps:$4 sm:$0xff]  }
 0x37e   : > { %7884 = vmatpush1.bf16.msra.mxu0 %v10858_v9  ;;  %7942 = vmatprep.subr.bf16.mxu1 %v10863_v5  ;;  %v10920_v9 = vld [vmem:[#allocation10 + $0x1bc] ss:$24 sps:$4 sm:$0xff]  }
 0x37f   : > { %7885 = vmatprep.subr.bf16.mxu0 %v10866_v35  ;;  %v10915_v35 = vld [vmem:[#allocation10 + $0x938] ss:$24 sps:$4 sm:$0xff]  }
 0x381   : > { %7943 = vmatpush2.bf16.msra.mxu1 %v10861_v15 }
 0x382   : > { %7886 = vmatpush1.bf16.msra.mxu0 %v10864_v16  ;;  %7944 = vmatprep.subr.bf16.mxu1 %v10869_v54  ;;  %v10918_v16 = vld [vmem:[#allocation10 + $0x1b8] ss:$24 sps:$4 sm:$0xff]  }
 0x383   : > { %v11965_v18 = vpop.f32.mrf.mxu1  ;;  %7887 = vmatprep.subr.bf16.mxu0 %v10872_v58 }
 0x384   : > { %v7664_v5 = vadd.f32 %v11965_v18, %v4962_v61  ;;  %v10963_v61 = vld [vmem:[#allocation10 + $0xab8] ss:$24 sps:$4 sm:$0xff]  }
 0x385   : > { %v11967_v47 = vpop.f32.mrf.mxu1  ;;  %7945 = vmatpush2.bf16.msra.mxu1 %v10867_v8  ;;  %v10926_v8 = vld [vmem:[#allocation10 + $0x18c] ss:$24 sps:$4 sm:$0xff]  }
 0x386   : > { %7888 = vmatpush1.bf16.msra.mxu0 %v10870_v19  ;;  %7946 = vmatprep.subr.bf16.mxu1 %v10875_v23  ;;  %v7666_v54 = vadd.f32 %v11967_v47, %v4966_v10  ;;  %v10930_v47 = vld [vmem:[#allocation10 + $0x758] ss:$24 sps:$4 sm:$0xff]  }
 0x387   : > { %v7667_v24 = vpop.f32.mrf.mxu1  ;;  %7889 = vmatprep.subr.bf16.mxu0 %v10878_v52  ;;  %v10924_v52 = vld [vmem:[#allocation10 + $0x188] ss:$24 sps:$4 sm:$0xff]  }
 0x388   : > { %v10932_v24 = vld [vmem:[#allocation10 + $0x75c] ss:$24 sps:$4 sm:$0xff]  }
 0x389   : > { %v7668_v32 = vpop.f32.mrf.mxu1  ;;  %7947 = vmatpush2.bf16.msra.mxu1 %v10873_v57  ;;  %v10929_v57 = vld [vmem:[#allocation10 + $0xbdc] ss:$24 sps:$4 sm:$0xff]  }
 0x38a   : > { %7890 = vmatpush1.bf16.msra.mxu0 %v10876_v25  ;;  %7998 = vmatprep.subr.bf16.mxu1 %v10881_v28  ;;  %v10927_v28 = vld [vmem:[#allocation10 + $0xbd8] ss:$24 sps:$4 sm:$0xff]   ;;  %v10938_v32 = vld [vmem:[#allocation10 + $0x72c] ss:$24 sps:$4 sm:$0xff]  }
 0x38b   : > { %7891 = vmatprep.subr.bf16.mxu0 %v10884_v30  ;;  %v10935_v30 = vld [vmem:[#allocation10 + $0xbac] ss:$24 sps:$4 sm:$0xff]  }
 0x38c   : > { %7949 = vmatmul.mubr.bf16.vlgmr.msra.gmra.mxu1 %v11913_v21 }
 0x38d   : > { %7999 = vmatpush1.bf16.msra.mxu1 %v10879_v33  ;;  %8030 = vmatprep.mubr.bf16.mxu1 %v11915_v36  ;;  %v10933_v33 = vld [vmem:[#allocation10 + $0xba8] ss:$24 sps:$4 sm:$0xff]  }
 0x38e   : > { %7892 = vmatpush2.bf16.msra.mxu0 %v10882_v37  ;;  %8000 = vmatprep.subr.bf16.mxu1 %v10887_v13  ;;  %v10936_v37 = vld [vmem:[#allocation10 + $0x728] ss:$24 sps:$4 sm:$0xff]   ;;  %v10941_v13 = vld [vmem:[#allocation10 + $0xb7c] ss:$24 sps:$4 sm:$0xff]  }
 0x38f   : > { %7893 = vmatprep.subr.bf16.mxu0 %v10890_v40  ;;  %v10944_v40 = vld [vmem:[#allocation10 + $0x6fc] ss:$24 sps:$4 sm:$0xff]  }
 0x391   : > { %8001 = vmatpush1.bf16.msra.mxu1 %v10885_v29  ;;  %v10939_v29 = vld [vmem:[#allocation10 + $0xb78] ss:$24 sps:$4 sm:$0xff]  }
 0x392   : > { %7894 = vmatpush2.bf16.msra.mxu0 %v10888_v48  ;;  %8002 = vmatprep.subr.bf16.mxu1 %v10893_v60  ;;  %v10942_v48 = vld [vmem:[#allocation10 + $0x6f8] ss:$24 sps:$4 sm:$0xff]   ;;  %v10947_v60 = vld [vmem:[#allocation10 + $0xb4c] ss:$24 sps:$4 sm:$0xff]  }
 0x393   : > { %7895 = vmatprep.subr.bf16.mxu0 %v10896_v63  ;;  %v10950_v63 = vld [vmem:[#allocation10 + $0x6cc] ss:$24 sps:$4 sm:$0xff]  }
 0x395   : > { %8003 = vmatpush1.bf16.msra.mxu1 %v10891_v41  ;;  %v10945_v41 = vld [vmem:[#allocation10 + $0xb48] ss:$24 sps:$4 sm:$0xff]  }
 0x396   : > { %7896 = vmatpush2.bf16.msra.mxu0 %v10894_v42  ;;  %8004 = vmatprep.subr.bf16.mxu1 %v10899_v56  ;;  %v10948_v42 = vld [vmem:[#allocation10 + $0x6c8] ss:$24 sps:$4 sm:$0xff]   ;;  %v10953_v56 = vld [vmem:[#allocation10 + $0xb1c] ss:$24 sps:$4 sm:$0xff]  }
 0x397   : > { %7897 = vmatprep.subr.bf16.mxu0 %v10902_v44  ;;  %v10956_v44 = vld [vmem:[#allocation10 + $0x69c] ss:$24 sps:$4 sm:$0xff]  }
 0x399   : > { %8005 = vmatpush1.bf16.msra.mxu1 %v10897_v45  ;;  %v10951_v45 = vld [vmem:[#allocation10 + $0xb18] ss:$24 sps:$4 sm:$0xff]  }
 0x39a   : > { %7898 = vmatpush2.bf16.msra.mxu0 %v10900_v46  ;;  %8006 = vmatprep.subr.bf16.mxu1 %v10905_v17  ;;  %v10954_v46 = vld [vmem:[#allocation10 + $0x698] ss:$24 sps:$4 sm:$0xff]   ;;  %v10959_v17 = vld [vmem:[#allocation10 + $0xaec] ss:$24 sps:$4 sm:$0xff]  }
 0x39b   : > { %7899 = vmatprep.subr.bf16.mxu0 %v10908_v6  ;;  %v10962_v6 = vld [vmem:[#allocation10 + $0x66c] ss:$24 sps:$4 sm:$0xff]  }
 0x39d   : > { %8007 = vmatpush1.bf16.msra.mxu1 %v10903_v49  ;;  %v10957_v49 = vld [vmem:[#allocation10 + $0xae8] ss:$24 sps:$4 sm:$0xff]  }
 0x39e   : > { %7900 = vmatpush2.bf16.msra.mxu0 %v10906_v55  ;;  %8008 = vmatprep.subr.bf16.mxu1 %v10911_v38  ;;  %v10960_v55 = vld [vmem:[#allocation10 + $0x668] ss:$24 sps:$4 sm:$0xff]   ;;  %v10965_v38 = vld [vmem:[#allocation10 + $0xabc] ss:$24 sps:$4 sm:$0xff]  }
 0x39f   : > { %7901 = vmatprep.subr.bf16.mxu0 %v10914_v11  ;;  %v10968_v11 = vld [vmem:[#allocation10 + $0x63c] ss:$24 sps:$4 sm:$0xff]  }
 0x3a1   : > { %8009 = vmatpush1.bf16.msra.mxu1 %v10909_v27 }
 0x3a2   : > { %7902 = vmatpush2.bf16.msra.mxu0 %v10912_v4  ;;  %v7704_v15 = vpop.f32.mrf.mxu0  ;;  %8010 = vmatprep.subr.bf16.mxu1 %v10917_v2  ;;  %v10966_v4 = vld [vmem:[#allocation10 + $0x638] ss:$24 sps:$4 sm:$0xff]   ;;  %v10971_v2 = vld [vmem:[#allocation10 + $0xa8c] ss:$24 sps:$4 sm:$0xff]  }
 0x3a3   : > { %v11979_v58 = vadd.f32 %v7704_v15, %v7664_v5  ;;  %7903 = vmatprep.subr.bf16.mxu0 %v10920_v9  ;;  %v10974_v9 = vld [vmem:[#allocation10 + $0x60c] ss:$24 sps:$4 sm:$0xff]   ;;  %v10969_v15 = vld [vmem:[#allocation10 + $0xa88] ss:$24 sps:$4 sm:$0xff]  }
 0x3a4   : > { %v7706_v19 = vpop.f32.mrf.mxu0 }
 0x3a5   : > { %v11981_v23 = vadd.f32 %v7706_v19, %v7666_v54  ;;  %8011 = vmatpush1.bf16.msra.mxu1 %v10915_v35  ;;  %v10977_v54 = vld [vmem:[#allocation10 + $0x105c] ss:$24 sps:$4 sm:$0xff]  }
 0x3a6   : > { %7904 = vmatpush2.bf16.msra.mxu0 %v10918_v16  ;;  %v7708_v18 = vpop.f32.mrf.mxu0  ;;  %8012 = vmatprep.subr.bf16.mxu1 %v10923_v31  ;;  %v10972_v31 = vld [vmem:[#allocation10 + $0x608] ss:$24 sps:$4 sm:$0xff]  }
 0x3a7   : > { %7905 = vmatprep.subr.bf16.mxu0 %v10926_v8  ;;  %v10980_v8 = vld [vmem:[#allocation10 + $0x8dc] ss:$24 sps:$4 sm:$0xff]   ;;  %v10983_v18 = vld [vmem:[#allocation10 + $0x102c] ss:$24 sps:$4 sm:$0xff]  }
 0x3a8   : > { %v7709_v25 = vpop.f32.mrf.mxu0 }
 0x3a9   : > { %8013 = vmatpush1.bf16.msra.mxu1 %v10921_v34  ;;  %v10975_v34 = vld [vmem:[#allocation10 + $0x1058] ss:$24 sps:$4 sm:$0xff]   ;;  %v10992_v25 = vld [vmem:[#allocation10 + $0x87c] ss:$24 sps:$4 sm:$0xff]  }
 0x3aa   : > { %7906 = vmatpush2.bf16.msra.mxu0 %v10924_v52  ;;  %8014 = vmatprep.subr.bf16.mxu1 %v10929_v57  ;;  %v10986_v52 = vld [vmem:[#allocation10 + $0x8ac] ss:$24 sps:$4 sm:$0xff]   ;;  %v10984_v57 = vld [vmem:[#allocation10 + $0x8a8] ss:$24 sps:$4 sm:$0xff]  }
 0x3ab   : > { %7957 = vmatprep.subr.bf16.mxu0 %v10932_v24  ;;  %v10989_v24 = vld [vmem:[#allocation10 + $0xffc] ss:$24 sps:$4 sm:$0xff]  }
 0x3ad   : > { %7908 = vmatmul.mubr.bf16.vlgmr.msra.gmra.mxu0 %v11901_v59  ;;  %8015 = vmatpush2.bf16.msra.mxu1 %v10927_v28  ;;  %v10987_v28 = vld [vmem:[#allocation10 + $0xff8] ss:$24 sps:$4 sm:$0xff]  }
 0x3ae   : > { %7958 = vmatpush1.bf16.msra.mxu0 %v10930_v47  ;;  %7989 = vmatprep.mubr.bf16.mxu0 %v11904_v7  ;;  %v10990_v47 = vld [vmem:[#allocation10 + $0x878] ss:$24 sps:$4 sm:$0xff]  }
 0x3af   : > { %8016 = vmatprep.subr.bf16.mxu1 %v10935_v30  ;;  %7959 = vmatprep.subr.bf16.mxu0 %v10938_v32  ;;  %v10995_v30 = vld [vmem:[#allocation10 + $0xfcc] ss:$24 sps:$4 sm:$0xff]  }
 0x3b0   : > { %v10998_v32 = vld [vmem:[#allocation10 + $0x84c] ss:$24 sps:$4 sm:$0xff]  }
 0x3b1   : > { %8017 = vmatpush2.bf16.msra.mxu1 %v10933_v33  ;;  %v10993_v33 = vld [vmem:[#allocation10 + $0xfc8] ss:$24 sps:$4 sm:$0xff]  }
 0x3b2   : > { %7960 = vmatpush1.bf16.msra.mxu0 %v10936_v37  ;;  %8018 = vmatprep.subr.bf16.mxu1 %v10941_v13  ;;  %v10996_v37 = vld [vmem:[#allocation10 + $0x848] ss:$24 sps:$4 sm:$0xff]   ;;  %v11001_v13 = vld [vmem:[#allocation10 + $0xf9c] ss:$24 sps:$4 sm:$0xff]  }
 0x3b3   : > { %7961 = vmatprep.subr.bf16.mxu0 %v10944_v40  ;;  %v11004_v40 = vld [vmem:[#allocation10 + $0x81c] ss:$24 sps:$4 sm:$0xff]  }
 0x3b5   : > { %8019 = vmatpush2.bf16.msra.mxu1 %v10939_v29  ;;  %v10999_v29 = vld [vmem:[#allocation10 + $0xf98] ss:$24 sps:$4 sm:$0xff]  }
 0x3b6   : > { %7962 = vmatpush1.bf16.msra.mxu0 %v10942_v48  ;;  %8020 = vmatprep.subr.bf16.mxu1 %v10947_v60  ;;  %v11002_v48 = vld [vmem:[#allocation10 + $0x818] ss:$24 sps:$4 sm:$0xff]   ;;  %v11007_v60 = vld [vmem:[#allocation10 + $0xf6c] ss:$24 sps:$4 sm:$0xff]  }
 0x3b7   : > { %7963 = vmatprep.subr.bf16.mxu0 %v10950_v63  ;;  %v11010_v63 = vld [vmem:[#allocation10 + $0x7ec] ss:$24 sps:$4 sm:$0xff]  }
 0x3b9   : > { %8021 = vmatpush2.bf16.msra.mxu1 %v10945_v41  ;;  %v11005_v41 = vld [vmem:[#allocation10 + $0xf68] ss:$24 sps:$4 sm:$0xff]  }
 0x3ba   : > { %7964 = vmatpush1.bf16.msra.mxu0 %v10948_v42  ;;  %8022 = vmatprep.subr.bf16.mxu1 %v10953_v56  ;;  %v11008_v42 = vld [vmem:[#allocation10 + $0x7e8] ss:$24 sps:$4 sm:$0xff]   ;;  %v11013_v56 = vld [vmem:[#allocation10 + $0xf3c] ss:$24 sps:$4 sm:$0xff]  }
 0x3bb   : > { %7965 = vmatprep.subr.bf16.mxu0 %v10956_v44  ;;  %v11016_v44 = vld [vmem:[#allocation10 + $0x7bc] ss:$24 sps:$4 sm:$0xff]  }
 0x3bd   : > { %8023 = vmatpush2.bf16.msra.mxu1 %v10951_v45  ;;  %v11011_v45 = vld [vmem:[#allocation10 + $0xf38] ss:$24 sps:$4 sm:$0xff]  }
 0x3be   : > { %7966 = vmatpush1.bf16.msra.mxu0 %v10954_v46  ;;  %8024 = vmatprep.subr.bf16.mxu1 %v10959_v17  ;;  %v11014_v17 = vld [vmem:[#allocation10 + $0x7b8] ss:$24 sps:$4 sm:$0xff]  }
 0x3bf   : > { %7967 = vmatprep.subr.bf16.mxu0 %v10962_v6  ;;  %v11019_v6 = vld [vmem:[#allocation10 + $0xf0c] ss:$24 sps:$4 sm:$0xff]  }
 0x3c1   : > { %8025 = vmatpush2.bf16.msra.mxu1 %v10957_v49 }
 0x3c2   : > { %7968 = vmatpush1.bf16.msra.mxu0 %v10960_v55  ;;  %8026 = vmatprep.subr.bf16.mxu1 %v10965_v38  ;;  %v11022_v55 = vld [vmem:[#allocation10 + $0x78c] ss:$24 sps:$4 sm:$0xff]  }
 0x3c3   : > { %v7745_v27 = vpop.f32.mrf.mxu1  ;;  %7969 = vmatprep.subr.bf16.mxu0 %v10968_v11 }
 0x3c4   : > { %v11986_v10 = vadd.f32 %v7745_v27, %v11979_v58  ;;  %v10978_v58 = vld [vmem:[#allocation10 + $0x8d8] ss:$24 sps:$4 sm:$0xff]  }
 0x3c5   : > { %v7747_v5 = vpop.f32.mrf.mxu1  ;;  %8027 = vmatpush2.bf16.msra.mxu1 %v10963_v61  ;;  %v11017_v61 = vld [vmem:[#allocation10 + $0xf08] ss:$24 sps:$4 sm:$0xff]  }
 0x3c6   : > { %v11989_v35 = vadd.f32 %v7747_v5, %v11981_v23  ;;  %7970 = vmatpush1.bf16.msra.mxu0 %v10966_v4  ;;  %8028 = vmatprep.subr.bf16.mxu1 %v10971_v2  ;;  %v10981_v23 = vld [vmem:[#allocation10 + $0x1028] ss:$24 sps:$4 sm:$0xff]   ;;  %v11025_v2 = vld [vmem:[#allocation10 + $0x164] ss:$24 sps:$4 sm:$0xff]  }
 0x3c7   : > { %v7749_v16 = vpop.f32.mrf.mxu1  ;;  %7971 = vmatprep.subr.bf16.mxu0 %v10974_v9  ;;  %v11020_v4 = vld [vmem:[#allocation10 + $0x788] ss:$24 sps:$4 sm:$0xff]   ;;  %v11028_v9 = vld [vmem:[#allocation10 + $0xd5c] ss:$24 sps:$4 sm:$0xff]  }
 0x3c8   : > { %v11031_v16 = vld [vmem:[#allocation10 + $0x134] ss:$24 sps:$4 sm:$0xff]  }
 0x3c9   : > { %v7750_v19 = vpop.f32.mrf.mxu1  ;;  %8029 = vmatpush2.bf16.msra.mxu1 %v10969_v15  ;;  %v11023_v15 = vld [vmem:[#allocation10 + $0x160] ss:$24 sps:$4 sm:$0xff]  }
 0x3ca   : > { %7972 = vmatpush1.bf16.msra.mxu0 %v10972_v31  ;;  %8080 = vmatprep.subr.bf16.mxu1 %v10977_v54  ;;  %v11029_v31 = vld [vmem:[#allocation10 + $0x130] ss:$24 sps:$4 sm:$0xff]   ;;  %v11040_v19 = vld [vmem:[#allocation10 + $0xcfc] ss:$24 sps:$4 sm:$0xff]  }
 0x3cb   : > { %7973 = vmatprep.subr.bf16.mxu0 %v10980_v8  ;;  %v11032_v54 = vld [vmem:[#allocation10 + $0xd28] ss:$24 sps:$4 sm:$0xff]   ;;  %v11037_v8 = vld [vmem:[#allocation10 + $0x104] ss:$24 sps:$4 sm:$0xff]  }
 0x3cc   : > { %8031 = vmatmul.mubr.bf16.vlgmr.msra.gmra.mxu1 %v11932_v51 }
 0x3cd   : > { %8081 = vmatpush1.bf16.msra.mxu1 %v10975_v34  ;;  %8112 = vmatprep.mubr.bf16.mxu1 %v11575_v1  ;;  %v11035_v34 = vld [vmem:[#allocation10 + $0x100] ss:$24 sps:$4 sm:$0xff]  }
 0x3ce   : > { %7974 = vmatpush2.bf16.msra.mxu0 %v10978_v58  ;;  %8082 = vmatprep.subr.bf16.mxu1 %v10983_v18  ;;  %v11038_v58 = vld [vmem:[#allocation10 + $0xcf8] ss:$24 sps:$4 sm:$0xff]   ;;  %v11043_v18 = vld [vmem:[#allocation10 + $0xd4] ss:$24 sps:$4 sm:$0xff]  }
 0x3cf   : > { %7975 = vmatprep.subr.bf16.mxu0 %v10986_v52  ;;  %v11046_v52 = vld [vmem:[#allocation10 + $0xccc] ss:$24 sps:$4 sm:$0xff]  }
 0x3d1   : > { %8083 = vmatpush1.bf16.msra.mxu1 %v10981_v23  ;;  %v11041_v23 = vld [vmem:[#allocation10 + $0xd0] ss:$24 sps:$4 sm:$0xff]  }
 0x3d2   : > { %7976 = vmatpush2.bf16.msra.mxu0 %v10984_v57  ;;  %8084 = vmatprep.subr.bf16.mxu1 %v10989_v24  ;;  %v11049_v57 = vld [vmem:[#allocation10 + $0xa4] ss:$24 sps:$4 sm:$0xff]  }
 0x3d3   : > { %7977 = vmatprep.subr.bf16.mxu0 %v10992_v25  ;;  %v11052_v24 = vld [vmem:[#allocation10 + $0xc9c] ss:$24 sps:$4 sm:$0xff]   ;;  %v11047_v25 = vld [vmem:[#allocation10 + $0xa0] ss:$24 sps:$4 sm:$0xff]  }
 0x3d5   : > { %8085 = vmatpush1.bf16.msra.mxu1 %v10987_v28  ;;  %v11050_v28 = vld [vmem:[#allocation10 + $0xc98] ss:$24 sps:$4 sm:$0xff]  }
 0x3d6   : > { %7978 = vmatpush2.bf16.msra.mxu0 %v10990_v47  ;;  %8086 = vmatprep.subr.bf16.mxu1 %v10995_v30  ;;  %v11055_v47 = vld [vmem:[#allocation10 + $0x74] ss:$24 sps:$4 sm:$0xff]  }
 0x3d7   : > { %7979 = vmatprep.subr.bf16.mxu0 %v10998_v32  ;;  %v11058_v30 = vld [vmem:[#allocation10 + $0xc6c] ss:$24 sps:$4 sm:$0xff]   ;;  %v11053_v32 = vld [vmem:[#allocation10 + $0x70] ss:$24 sps:$4 sm:$0xff]  }
 0x3d9   : > { %8087 = vmatpush1.bf16.msra.mxu1 %v10993_v33  ;;  %v11056_v33 = vld [vmem:[#allocation10 + $0xc68] ss:$24 sps:$4 sm:$0xff]  }
 0x3da   : > { %7980 = vmatpush2.bf16.msra.mxu0 %v10996_v37  ;;  %8088 = vmatprep.subr.bf16.mxu1 %v11001_v13  ;;  %v11061_v37 = vld [vmem:[#allocation10 + $0x44] ss:$24 sps:$4 sm:$0xff]  }
 0x3db   : > { %7981 = vmatprep.subr.bf16.mxu0 %v11004_v40  ;;  %v11064_v13 = vld [vmem:[#allocation10 + $0xc3c] ss:$24 sps:$4 sm:$0xff]   ;;  %v11059_v40 = vld [vmem:[#allocation10 + $0x40] ss:$24 sps:$4 sm:$0xff]  }
 0x3dd   : > { %8089 = vmatpush1.bf16.msra.mxu1 %v10999_v29  ;;  %v11062_v29 = vld [vmem:[#allocation10 + $0xc38] ss:$24 sps:$4 sm:$0xff]  }
 0x3de   : > { %7982 = vmatpush2.bf16.msra.mxu0 %v11002_v48  ;;  %8090 = vmatprep.subr.bf16.mxu1 %v11007_v60  ;;  %v11067_v48 = vld [vmem:[#allocation10 + $0x14] ss:$24 sps:$4 sm:$0xff]  }
 0x3df   : > { %7983 = vmatprep.subr.bf16.mxu0 %v11010_v63  ;;  %v11070_v60 = vld [vmem:[#allocation10 + $0xc0c] ss:$24 sps:$4 sm:$0xff]   ;;  %v11065_v63 = vld [vmem:[#allocation10 + $0x10] ss:$24 sps:$4 sm:$0xff]  }
 0x3e1   : > { %8091 = vmatpush1.bf16.msra.mxu1 %v11005_v41  ;;  %v11068_v41 = vld [vmem:[#allocation10 + $0xc08] ss:$24 sps:$4 sm:$0xff]  }
 0x3e2   : > { %7984 = vmatpush2.bf16.msra.mxu0 %v11008_v42  ;;  %v7786_v46 = vpop.f32.mrf.mxu0  ;;  %8092 = vmatprep.subr.bf16.mxu1 %v11013_v56  ;;  %v11073_v42 = vld [vmem:[#allocation10 + $0x2e4] ss:$24 sps:$4 sm:$0xff]  }
 0x3e3   : > { %v11994_v49 = vadd.f32 %v7786_v46, %v11986_v10  ;;  %7985 = vmatprep.subr.bf16.mxu0 %v11016_v44  ;;  %v11026_v10 = vld [vmem:[#allocation10 + $0xd58] ss:$24 sps:$4 sm:$0xff]   ;;  %v11076_v56 = vld [vmem:[#allocation10 + $0xedc] ss:$24 sps:$4 sm:$0xff]  }
 0x3e4   : > { %v7788_v38 = vpop.f32.mrf.mxu0  ;;  %v11071_v44 = vld [vmem:[#allocation10 + $0x2e0] ss:$24 sps:$4 sm:$0xff]   ;;  %v11079_v46 = vld [vmem:[#allocation10 + $0x2b4] ss:$24 sps:$4 sm:$0xff]  }
 0x3e5   : > { %v11997_v11 = vadd.f32 %v7788_v38, %v11989_v35  ;;  %8093 = vmatpush1.bf16.msra.mxu1 %v11011_v45  ;;  %v11034_v35 = vld [vmem:[#allocation10 + $0xd2c] ss:$24 sps:$4 sm:$0xff]   ;;  %v11074_v45 = vld [vmem:[#allocation10 + $0xed8] ss:$24 sps:$4 sm:$0xff]  }
 0x3e6   : > { %7986 = vmatpush2.bf16.msra.mxu0 %v11014_v17  ;;  %v7790_v27 = vpop.f32.mrf.mxu0  ;;  %8094 = vmatprep.subr.bf16.mxu1 %v11019_v6  ;;  %v11082_v17 = vld [vmem:[#allocation10 + $0xeac] ss:$24 sps:$4 sm:$0xff]  }
 0x3e7   : > { %7987 = vmatprep.subr.bf16.mxu0 %v11022_v55  ;;  %v11077_v55 = vld [vmem:[#allocation10 + $0x2b0] ss:$24 sps:$4 sm:$0xff]   ;;  %v11085_v27 = vld [vmem:[#allocation10 + $0x284] ss:$24 sps:$4 sm:$0xff]  }
 0x3e8   : > { %v7791_v5 = vpop.f32.mrf.mxu0 }
 0x3e9   : > { %8095 = vmatpush1.bf16.msra.mxu1 %v11017_v61  ;;  %v11080_v61 = vld [vmem:[#allocation10 + $0xea8] ss:$24 sps:$4 sm:$0xff]  }
 0x3ea   : > { %7988 = vmatpush2.bf16.msra.mxu0 %v11020_v4  ;;  %8121 = vmatprep.subr.bf16.mxu1 %v11025_v2  ;;  %v11088_v4 = vld [vmem:[#allocation10 + $0xe7c] ss:$24 sps:$4 sm:$0xff]  }
 0x3eb   : > { %8039 = vmatprep.subr.bf16.mxu0 %v11028_v9  ;;  %v11083_v9 = vld [vmem:[#allocation10 + $0x280] ss:$24 sps:$4 sm:$0xff]  }
 0x3ec   : > { %8113 = vmatmul.mubr.bf16.vlgmr.msra.gmra.mxu1 %v11961_v43 }
 0x3ed   : > { %7990 = vmatmul.mubr.bf16.vlgmr.msra.gmra.mxu0 %v11920_v0  ;;  %8122 = vmatpush1.bf16.msra.mxu1 %v11023_v15  ;;  %v11086_v15 = vld [vmem:[#allocation10 + $0xe78] ss:$24 sps:$4 sm:$0xff]  }
 0x3ee   : > { %8153 = vmatprep.mubr.bf16.mxu1 %v11877_v50  ;;  %8040 = vmatpush1.bf16.msra.mxu0 %v11026_v10  ;;  %v11044_v50 = vld [vmem:[#allocation10 + $0xcc8] ss:$24 sps:$4 sm:$0xff]   ;;  %v11091_v10 = vld [vmem:[#allocation10 + $0x254] ss:$24 sps:$4 sm:$0xff]  }
 0x3ef   : > { %8071 = vmatprep.mubr.bf16.mxu0 %v11950_v14  ;;  %8123 = vmatprep.subr.bf16.mxu1 %v11031_v16  ;;  %v11094_v16 = vld [vmem:[#allocation10 + $0xe4c] ss:$24 sps:$4 sm:$0xff]  }
 0x3f0   : > { %8041 = vmatprep.subr.bf16.mxu0 %v11034_v35  ;;  %v11089_v35 = vld [vmem:[#allocation10 + $0x250] ss:$24 sps:$4 sm:$0xff]  }
 0x3f1   : > { %8124 = vmatpush1.bf16.msra.mxu1 %v11029_v31  ;;  %v11092_v31 = vld [vmem:[#allocation10 + $0xe48] ss:$24 sps:$4 sm:$0xff]  }
 0x3f2   : > { %8042 = vmatpush1.bf16.msra.mxu0 %v11032_v54  ;;  %8125 = vmatprep.subr.bf16.mxu1 %v11037_v8  ;;  %v11097_v54 = vld [vmem:[#allocation10 + $0x224] ss:$24 sps:$4 sm:$0xff]  }
 0x3f3   : > { %8043 = vmatprep.subr.bf16.mxu0 %v11040_v19  ;;  %v11100_v8 = vld [vmem:[#allocation10 + $0xe1c] ss:$24 sps:$4 sm:$0xff]   ;;  %v11095_v19 = vld [vmem:[#allocation10 + $0x220] ss:$24 sps:$4 sm:$0xff]  }
 0x3f5   : > { %8126 = vmatpush1.bf16.msra.mxu1 %v11035_v34  ;;  %v11098_v34 = vld [vmem:[#allocation10 + $0xe18] ss:$24 sps:$4 sm:$0xff]  }
 0x3f6   : > { %8044 = vmatpush1.bf16.msra.mxu0 %v11038_v58  ;;  %8127 = vmatprep.subr.bf16.mxu1 %v11043_v18  ;;  %v11103_v58 = vld [vmem:[#allocation10 + $0x1f4] ss:$24 sps:$4 sm:$0xff]  }
 0x3f7   : > { %8045 = vmatprep.subr.bf16.mxu0 %v11046_v52  ;;  %v11106_v18 = vld [vmem:[#allocation10 + $0xdec] ss:$24 sps:$4 sm:$0xff]   ;;  %v11101_v52 = vld [vmem:[#allocation10 + $0x1f0] ss:$24 sps:$4 sm:$0xff]  }
 0x3f9   : > { %8128 = vmatpush1.bf16.msra.mxu1 %v11041_v23  ;;  %v11104_v23 = vld [vmem:[#allocation10 + $0xde8] ss:$24 sps:$4 sm:$0xff]  }
 0x3fa   : > { %8046 = vmatpush1.bf16.msra.mxu0 %v11044_v50  ;;  %8129 = vmatprep.subr.bf16.mxu1 %v11049_v57  ;;  %v11109_v50 = vld [vmem:[#allocation10 + $0x1c4] ss:$24 sps:$4 sm:$0xff]  }
 0x3fb   : > { %8047 = vmatprep.subr.bf16.mxu0 %v11052_v24  ;;  %v11112_v57 = vld [vmem:[#allocation10 + $0xdbc] ss:$24 sps:$4 sm:$0xff]   ;;  %v11107_v24 = vld [vmem:[#allocation10 + $0x1c0] ss:$24 sps:$4 sm:$0xff]  }
 0x3fd   : > { %8130 = vmatpush1.bf16.msra.mxu1 %v11047_v25  ;;  %v11110_v25 = vld [vmem:[#allocation10 + $0xdb8] ss:$24 sps:$4 sm:$0xff]  }
 0x3fe   : > { %8048 = vmatpush1.bf16.msra.mxu0 %v11050_v28  ;;  %8131 = vmatprep.subr.bf16.mxu1 %v11055_v47  ;;  %v11115_v28 = vld [vmem:[#allocation10 + $0x194] ss:$24 sps:$4 sm:$0xff]  }
 0x3ff   : > { %8049 = vmatprep.subr.bf16.mxu0 %v11058_v30  ;;  %v11118_v47 = vld [vmem:[#allocation10 + $0xd8c] ss:$24 sps:$4 sm:$0xff]   ;;  %v11113_v30 = vld [vmem:[#allocation10 + $0x190] ss:$24 sps:$4 sm:$0xff]  }
 0x401   : > { %8132 = vmatpush1.bf16.msra.mxu1 %v11053_v32  ;;  %v11116_v32 = vld [vmem:[#allocation10 + $0xd88] ss:$24 sps:$4 sm:$0xff]  }
 0x402   : > { %8050 = vmatpush1.bf16.msra.mxu0 %v11056_v33  ;;  %8133 = vmatprep.subr.bf16.mxu1 %v11061_v37  ;;  %v11121_v33 = vld [vmem:[#allocation10 + $0x764] ss:$24 sps:$4 sm:$0xff]  }
 0x403   : > { %8051 = vmatprep.subr.bf16.mxu0 %v11064_v13  ;;  %v11124_v37 = vld [vmem:[#allocation10 + $0x464] ss:$24 sps:$4 sm:$0xff]   ;;  %v11119_v13 = vld [vmem:[#allocation10 + $0x760] ss:$24 sps:$4 sm:$0xff]  }
 0x405   : > { %8134 = vmatpush1.bf16.msra.mxu1 %v11059_v40  ;;  %v11122_v40 = vld [vmem:[#allocation10 + $0x460] ss:$24 sps:$4 sm:$0xff]  }
 0x406   : > { %8052 = vmatpush1.bf16.msra.mxu0 %v11062_v29  ;;  %8135 = vmatprep.subr.bf16.mxu1 %v11067_v48  ;;  %v12007_v29 = vstv %s8543_s28  ;;  %v11127_v48 = vld [vmem:[#allocation10 + $0x734] ss:$24 sps:$4 sm:$0xff]  }
 0x407   : > { %8053 = vmatprep.subr.bf16.mxu0 %v11070_v60 }
 0x409   : > { %8136 = vmatpush1.bf16.msra.mxu1 %v11065_v63  ;;  %v11130_v63 = vld [vmem:[#allocation10 + $0x434] ss:$24 sps:$4 sm:$0xff]  }
 0x40a   : > { %8054 = vmatpush1.bf16.msra.mxu0 %v11068_v41  ;;  %8137 = vmatprep.subr.bf16.mxu1 %v11073_v42  ;;  %v12013_v42 = vstv %s335_s19 }
 0x40b   : > { %8055 = vmatprep.subr.bf16.mxu0 %v11076_v56  ;;  %v11125_v56 = vld [vmem:[#allocation10 + $0x730] ss:$24 sps:$4 sm:$0xff]  }
 0x40c   : > { %v12003_v6 = vpop.f32.mrf.mxu1 }
 0x40d   : > { %8138 = vmatpush2.bf16.msra.mxu1 %v11071_v44  ;;  %v7828_v60 = vadd.f32 %v12003_v6, %v11994_v49 }
 0x40e   : > { %8056 = vmatpush2.bf16.msra.mxu0 %v11074_v45  ;;  %v12005_v38 = vpop.f32.mrf.mxu1  ;;  %8139 = vmatprep.subr.bf16.mxu1 %v11079_v46  ;;  %v11337_v46 = vld [vmem:[%s11759_s11] sm:$0xff] }
 0x40f   : > { %8057 = vmatprep.subr.bf16.mxu0 %v11082_v17  ;;  %v7830_v44 = vadd.f32 %v12005_v38, %v11997_v11  ;;  %v8375_v49 = vmul.f32 %v11337_v46, %v12007_v29  ;;  %v11133_v17 = vld [vmem:[#allocation10 + $0x704] ss:$24 sps:$4 sm:$0xff]   ;;  %v11131_v38 = vld [vmem:[#allocation10 + $0x700] ss:$24 sps:$4 sm:$0xff]  }
 0x410   : > { %v7831_v2 = vpop.f32.mrf.mxu1  ;;  %v11184_v46 = vld [vmem:[#allocation10 + $0x584] ss:$24 sps:$4 sm:$0xff]  }
 0x411   : > { %8140 = vmatpush2.bf16.msra.mxu1 %v11077_v55  ;;  %v11136_v55 = vld [vmem:[#allocation10 + $0x404] ss:$24 sps:$4 sm:$0xff]  }
 0x412   : > { %8058 = vmatpush2.bf16.msra.mxu0 %v11080_v61  ;;  %v7832_v5 = vpop.f32.mrf.mxu1  ;;  %8141 = vmatprep.subr.bf16.mxu1 %v11085_v27 }
 0x413   : > { %8059 = vmatprep.subr.bf16.mxu0 %v11088_v4  ;;  %v11338_v4 = vld [vmem:[%s11759_s11 + $0x8] sm:$0xff] }
 0x414   : > { %v8376_v11 = vmul.f32 %v11338_v4, %v12007_v29  ;;  %v11139_v5 = vld [vmem:[#allocation10 + $0x6d4] ss:$24 sps:$4 sm:$0xff]   ;;  %v11188_v4 = vld [vmem:[#allocation10 + $0x550] ss:$24 sps:$4 sm:$0xff]  }
 0x415   : > { %8142 = vmatpush2.bf16.msra.mxu1 %v11083_v9 }
 0x416   : > { %8060 = vmatpush2.bf16.msra.mxu0 %v11086_v15  ;;  %8143 = vmatprep.subr.bf16.mxu1 %v11091_v10  ;;  %v11142_v10 = vld [vmem:[#allocation10 + $0x3d4] ss:$24 sps:$4 sm:$0xff]  }
 0x417   : > { %8061 = vmatprep.subr.bf16.mxu0 %v11094_v16 }
 0x419   : > { %8144 = vmatpush2.bf16.msra.mxu1 %v11089_v35  ;;  %v11137_v35 = vld [vmem:[#allocation10 + $0x6d0] ss:$24 sps:$4 sm:$0xff]  }
 0x41a   : > { %8062 = vmatpush2.bf16.msra.mxu0 %v11092_v31  ;;  %8145 = vmatprep.subr.bf16.mxu1 %v11097_v54  ;;  %v11140_v31 = vld [vmem:[#allocation10 + $0x3d0] ss:$24 sps:$4 sm:$0xff]   ;;  %v11145_v54 = vld [vmem:[#allocation10 + $0x6a4] ss:$24 sps:$4 sm:$0xff]  }
 0x41b   : > { %8063 = vmatprep.subr.bf16.mxu0 %v11100_v8  ;;  %v11148_v8 = vld [vmem:[#allocation10 + $0x3a4] ss:$24 sps:$4 sm:$0xff]  }
 0x41d   : > { %8146 = vmatpush2.bf16.msra.mxu1 %v11095_v19  ;;  %v11143_v19 = vld [vmem:[#allocation10 + $0x6a0] ss:$24 sps:$4 sm:$0xff]  }
 0x41e   : > { %8064 = vmatpush2.bf16.msra.mxu0 %v11098_v34  ;;  %8147 = vmatprep.subr.bf16.mxu1 %v11103_v58  ;;  %v11146_v34 = vld [vmem:[#allocation10 + $0x3a0] ss:$24 sps:$4 sm:$0xff]   ;;  %v11151_v58 = vld [vmem:[#allocation10 + $0x674] ss:$24 sps:$4 sm:$0xff]  }
 0x41f   : > { %8065 = vmatprep.subr.bf16.mxu0 %v11106_v18  ;;  %v11154_v18 = vld [vmem:[#allocation10 + $0x374] ss:$24 sps:$4 sm:$0xff]  }
 0x421   : > { %8148 = vmatpush2.bf16.msra.mxu1 %v11101_v52  ;;  %v11149_v52 = vld [vmem:[#allocation10 + $0x670] ss:$24 sps:$4 sm:$0xff]  }
 0x422   : > { %8066 = vmatpush2.bf16.msra.mxu0 %v11104_v23  ;;  %8149 = vmatprep.subr.bf16.mxu1 %v11109_v50  ;;  %v11152_v23 = vld [vmem:[#allocation10 + $0x370] ss:$24 sps:$4 sm:$0xff]   ;;  %v11157_v50 = vld [vmem:[#allocation10 + $0x644] ss:$24 sps:$4 sm:$0xff]  }
 0x423   : > { %8067 = vmatprep.subr.bf16.mxu0 %v11112_v57  ;;  %v11160_v57 = vld [vmem:[#allocation10 + $0x344] ss:$24 sps:$4 sm:$0xff]  }
 0x425   : > { %8150 = vmatpush2.bf16.msra.mxu1 %v11107_v24  ;;  %v11155_v24 = vld [vmem:[#allocation10 + $0x640] ss:$24 sps:$4 sm:$0xff]  }
 0x426   : > { %8068 = vmatpush2.bf16.msra.mxu0 %v11110_v25  ;;  %8151 = vmatprep.subr.bf16.mxu1 %v11115_v28  ;;  %v11158_v25 = vld [vmem:[#allocation10 + $0x340] ss:$24 sps:$4 sm:$0xff]   ;;  %v11163_v28 = vld [vmem:[#allocation10 + $0x614] ss:$24 sps:$4 sm:$0xff]  }
 0x427   : > { %8069 = vmatprep.subr.bf16.mxu0 %v11118_v47  ;;  %v11166_v47 = vld [vmem:[#allocation10 + $0x314] ss:$24 sps:$4 sm:$0xff]  }
 0x429   : > { %8152 = vmatpush2.bf16.msra.mxu1 %v11113_v30  ;;  %v11161_v30 = vld [vmem:[#allocation10 + $0x610] ss:$24 sps:$4 sm:$0xff]  }
 0x42a   : > { %8070 = vmatpush2.bf16.msra.mxu0 %v11116_v32  ;;  %8203 = vmatprep.subr.bf16.mxu1 %v11121_v33  ;;  %v11164_v32 = vld [vmem:[#allocation10 + $0x310] ss:$24 sps:$4 sm:$0xff]   ;;  %v11169_v33 = vld [vmem:[#allocation10 + $0x8e4] ss:$24 sps:$4 sm:$0xff]  }
 0x42b   : > { %8162 = vmatprep.subr.bf16.mxu0 %v11124_v37  ;;  %v11172_v37 = vld [vmem:[#allocation10 + $0x5e4] ss:$24 sps:$4 sm:$0xff]  }
 0x42c   : > { %8154 = vmatmul.mubr.bf16.vlgmr.msra.gmra.mxu1 %v11901_v59  ;;  %v11128_v59 = vld [vmem:[#allocation10 + $0x430] ss:$24 sps:$4 sm:$0xff]  }
 0x42d   : > { %8072 = vmatmul.mubr.bf16.vlgmr.msra.gmra.mxu0 %v11952_v12  ;;  %8204 = vmatpush1.bf16.msra.mxu1 %v11119_v13  ;;  %v7868_v41 = vpop.f32.mrf.mxu0  ;;  %v11167_v13 = vld [vmem:[#allocation10 + $0x8e0] ss:$24 sps:$4 sm:$0xff]  }
 0x42e   : > { %8235 = vmatprep.mubr.bf16.mxu1 %v11904_v7  ;;  %v7869_v45 = vadd.f32 %v7868_v41, %v7828_v60  ;;  %8163 = vmatpush1.bf16.msra.mxu0 %v11122_v40  ;;  %v11170_v40 = vld [vmem:[#allocation10 + $0x5e0] ss:$24 sps:$4 sm:$0xff]   ;;  %v11178_v60 = vld [vmem:[#allocation10 + $0x5b4] ss:$24 sps:$4 sm:$0xff]   ;;  %v11173_v41 = vld [vmem:[#allocation10 + $0x8b0] ss:$24 sps:$4 sm:$0xff]  }
 0x42f   : > { %8194 = vmatprep.mubr.bf16.mxu0 %v11893_v39  ;;  %v7870_v6 = vpop.f32.mrf.mxu0  ;;  %8205 = vmatprep.subr.bf16.mxu1 %v11127_v48  ;;  %v11134_v39 = vld [vmem:[#allocation10 + $0x400] ss:$24 sps:$4 sm:$0xff]   ;;  %v11175_v48 = vld [vmem:[#allocation10 + $0x8b4] ss:$24 sps:$4 sm:$0xff]  }
 0x430   : > { %v8368_v61 = vmul.f32 %v12013_v42, %v7869_v45  ;;  %v7871_v27 = vadd.f32 %v7870_v6, %v7830_v44  ;;  %8164 = vmatprep.subr.bf16.mxu0 %v11130_v63  ;;  %v11176_v44 = vld [vmem:[#allocation10 + $0x5b0] ss:$24 sps:$4 sm:$0xff]   ;;  %v11181_v45 = vld [vmem:[#allocation10 + $0x884] ss:$24 sps:$4 sm:$0xff]   ;;  %v11182_v6 = vld [vmem:[#allocation10 + $0x580] ss:$24 sps:$4 sm:$0xff]  }
 0x431   : > { %8206 = vmatpush1.bf16.msra.mxu1 %v11125_v56  ;;  %v7872_v7 = vpop.f32.mrf.mxu0 }
 0x432   : > { %v8381_v2 = vadd.f32 %v8375_v49, %v8368_v61  ;;  %v8369_v9 = vmul.f32 %v12013_v42, %v7871_v27  ;;  %8165 = vmatpush1.bf16.msra.mxu0 %v11128_v59  ;;  %8207 = vmatprep.subr.bf16.mxu1 %v11133_v17  ;;  %v11179_v59 = vld [vmem:[#allocation10 + $0x880] ss:$24 sps:$4 sm:$0xff]   ;;  %v11190_v61 = vld [vmem:[#allocation10 + $0x554] ss:$24 sps:$4 sm:$0xff]   ;;  %v11185_v27 = vld [vmem:[#allocation10 + $0x850] ss:$24 sps:$4 sm:$0xff]  }
 0x433   : > { %v7873_v15 = vpop.f32.mrf.mxu0  ;;  %8166 = vmatprep.subr.bf16.mxu0 %v11136_v55  ;;  %v11187_v55 = vld [vmem:[#allocation10 + $0x854] ss:$24 sps:$4 sm:$0xff]   ;;  %v11196_v7 = vld [vmem:[#allocation10 + $0x524] ss:$24 sps:$4 sm:$0xff]  }
 0x434   : > { %8387 = vst [vmem:[%s12027_s13] sm:$0xff] %v8381_v2  ;;  %v8382_v16 = vadd.f32 %v8376_v11, %v8369_v9  ;;  %v11193_v11 = vld [vmem:[#allocation10 + $0x824] ss:$24 sps:$4 sm:$0xff]   ;;  %v11194_v2 = vld [vmem:[#allocation10 + $0x520] ss:$24 sps:$4 sm:$0xff]   ;;  %v11199_v9 = vld [vmem:[#allocation10 + $0x7f4] ss:$24 sps:$4 sm:$0xff]  }
 0x435   : > { %8208 = vmatpush1.bf16.msra.mxu1 %v11131_v38  ;;  %v11191_v38 = vld [vmem:[#allocation10 + $0x820] ss:$24 sps:$4 sm:$0xff]   ;;  %v11200_v15 = vld [vmem:[#allocation10 + $0x4f0] ss:$24 sps:$4 sm:$0xff]  }
 0x436   : > { %8388 = vst [vmem:[%s12027_s13 + $0x8] sm:$0xff] %v8382_v16  ;;  %8167 = vmatpush1.bf16.msra.mxu0 %v11134_v39  ;;  %8209 = vmatprep.subr.bf16.mxu1 %v11139_v5  ;;  %v11202_v39 = vld [vmem:[#allocation10 + $0x4f4] ss:$24 sps:$4 sm:$0xff]   ;;  %v11197_v5 = vld [vmem:[#allocation10 + $0x7f0] ss:$24 sps:$4 sm:$0xff]  }
 0x437   : > { %8168 = vmatprep.subr.bf16.mxu0 %v11142_v10  ;;  %v11205_v10 = vld [vmem:[#allocation10 + $0x7c4] ss:$24 sps:$4 sm:$0xff]  }
 0x438   : > { %v11208_v16 = vld [vmem:[#allocation10 + $0x4c4] ss:$24 sps:$4 sm:$0xff]  }
 0x439   : > { %8210 = vmatpush1.bf16.msra.mxu1 %v11137_v35  ;;  %v11203_v35 = vld [vmem:[#allocation10 + $0x7c0] ss:$24 sps:$4 sm:$0xff]  }
 0x43a   : > { %8169 = vmatpush1.bf16.msra.mxu0 %v11140_v31  ;;  %8211 = vmatprep.subr.bf16.mxu1 %v11145_v54  ;;  %v11206_v31 = vld [vmem:[#allocation10 + $0x4c0] ss:$24 sps:$4 sm:$0xff]   ;;  %v11211_v54 = vld [vmem:[#allocation10 + $0x794] ss:$24 sps:$4 sm:$0xff]  }
 0x43b   : > { %8170 = vmatprep.subr.bf16.mxu0 %v11148_v8  ;;  %v11214_v8 = vld [vmem:[#allocation10 + $0x494] ss:$24 sps:$4 sm:$0xff]  }
 0x43d   : > { %8212 = vmatpush1.bf16.msra.mxu1 %v11143_v19  ;;  %v11209_v19 = vld [vmem:[#allocation10 + $0x790] ss:$24 sps:$4 sm:$0xff]  }
 0x43e   : > { %8171 = vmatpush1.bf16.msra.mxu0 %v11146_v34  ;;  %8213 = vmatprep.subr.bf16.mxu1 %v11151_v58  ;;  %v11212_v34 = vld [vmem:[#allocation10 + $0x490] ss:$24 sps:$4 sm:$0xff]   ;;  %v11217_v58 = vld [vmem:[#allocation10 + $0xd64] ss:$24 sps:$4 sm:$0xff]  }
 0x43f   : > { %8172 = vmatprep.subr.bf16.mxu0 %v11154_v18  ;;  %v11220_v18 = vld [vmem:[#allocation10 + $0xa64] ss:$24 sps:$4 sm:$0xff]  }
 0x441   : > { %8214 = vmatpush1.bf16.msra.mxu1 %v11149_v52  ;;  %v11215_v52 = vld [vmem:[#allocation10 + $0xd60] ss:$24 sps:$4 sm:$0xff]  }
 0x442   : > { %8173 = vmatpush1.bf16.msra.mxu0 %v11152_v23  ;;  %8215 = vmatprep.subr.bf16.mxu1 %v11157_v50  ;;  %v4970_v23 = vrot.slane %v11971_v53, %v11838_v20  ;;  %v11218_v50 = vld [vmem:[#allocation10 + $0xa60] ss:$24 sps:$4 sm:$0xff]   ;;  %v11224_v20 = vld [vmem:[#allocation10 + $0xa30] ss:$24 sps:$4 sm:$0xff]  }
 0x443   : > { %8174 = vmatprep.subr.bf16.mxu0 %v11160_v57  ;;  %v11223_v57 = vld [vmem:[#allocation10 + $0xd34] ss:$24 sps:$4 sm:$0xff]  }
 0x445   : > { %8216 = vmatpush1.bf16.msra.mxu1 %v11155_v24  ;;  %v4974_v24 = vrot.slane %v11971_v53, %v943_v22 }
 0x446   : > { %8175 = vmatpush1.bf16.msra.mxu0 %v11158_v25  ;;  %8217 = vmatprep.subr.bf16.mxu1 %v11163_v28  ;;  %v11226_v25 = vld [vmem:[#allocation10 + $0xa34] ss:$24 sps:$4 sm:$0xff]  }
 0x447   : > { %8176 = vmatprep.subr.bf16.mxu0 %v11166_v47  ;;  %v11221_v47 = vld [vmem:[#allocation10 + $0xd30] ss:$24 sps:$4 sm:$0xff]  }
 0x449   : > { %8218 = vmatpush1.bf16.msra.mxu1 %v11161_v30 }
 0x44a   : > { %8177 = vmatpush1.bf16.msra.mxu0 %v11164_v32  ;;  %8219 = vmatprep.subr.bf16.mxu1 %v11169_v33  ;;  %v11229_v32 = vld [vmem:[#allocation10 + $0xd04] ss:$24 sps:$4 sm:$0xff]  }
 0x44b   : > { %8178 = vmatprep.subr.bf16.mxu0 %v11172_v37 }
 0x44c   : > { %v12031_v63 = vpop.f32.mrf.mxu1 }
 0x44d   : > { %8220 = vmatpush2.bf16.msra.mxu1 %v11167_v13  ;;  %v11230_v13 = vld [vmem:[#allocation10 + $0xa00] ss:$24 sps:$4 sm:$0xff]  }
 0x44e   : > { %v12033_v56 = vpop.f32.mrf.mxu1  ;;  %8179 = vmatpush2.bf16.msra.mxu0 %v11170_v40  ;;  %8221 = vmatprep.subr.bf16.mxu1 %v11175_v48 }
 0x44f   : > { %8180 = vmatprep.subr.bf16.mxu0 %v11178_v60  ;;  %v11233_v60 = vld [vmem:[#allocation10 + $0xcd0] ss:$24 sps:$4 sm:$0xff]  }
 0x450   : > { %v7954_v49 = vpop.f32.mrf.mxu1 }
 0x451   : > { %8222 = vmatpush2.bf16.msra.mxu1 %v11173_v41  ;;  %v11236_v41 = vld [vmem:[#allocation10 + $0x9d0] ss:$24 sps:$4 sm:$0xff]   ;;  %v11247_v49 = vld [vmem:[#allocation10 + $0xc74] ss:$24 sps:$4 sm:$0xff]  }
 0x452   : > { %v7955_v17 = vpop.f32.mrf.mxu1  ;;  %8181 = vmatpush2.bf16.msra.mxu0 %v11176_v44  ;;  %8223 = vmatprep.subr.bf16.mxu1 %v11181_v45  ;;  %v11244_v44 = vld [vmem:[#allocation10 + $0x9a4] ss:$24 sps:$4 sm:$0xff]   ;;  %v11239_v45 = vld [vmem:[#allocation10 + $0xca0] ss:$24 sps:$4 sm:$0xff]  }
 0x453   : > { %8182 = vmatprep.subr.bf16.mxu0 %v11184_v46  ;;  %v11242_v46 = vld [vmem:[#allocation10 + $0x9a0] ss:$24 sps:$4 sm:$0xff]   ;;  %v11248_v17 = vld [vmem:[#allocation10 + $0x970] ss:$24 sps:$4 sm:$0xff]  }
 0x455   : > { %8224 = vmatpush2.bf16.msra.mxu1 %v11179_v59  ;;  %v11245_v59 = vld [vmem:[#allocation10 + $0xc70] ss:$24 sps:$4 sm:$0xff]  }
 0x456   : > { %8183 = vmatpush2.bf16.msra.mxu0 %v11182_v6  ;;  %8225 = vmatprep.subr.bf16.mxu1 %v11187_v55  ;;  %v11253_v6 = vld [vmem:[#allocation10 + $0xc44] ss:$24 sps:$4 sm:$0xff]  }
 0x457   : > { %8184 = vmatprep.subr.bf16.mxu0 %v11190_v61  ;;  %v11256_v55 = vld [vmem:[#allocation10 + $0x944] ss:$24 sps:$4 sm:$0xff]   ;;  %v11251_v61 = vld [vmem:[#allocation10 + $0xc40] ss:$24 sps:$4 sm:$0xff]  }
 0x459   : > { %8226 = vmatpush2.bf16.msra.mxu1 %v11185_v27  ;;  %v11254_v27 = vld [vmem:[#allocation10 + $0x940] ss:$24 sps:$4 sm:$0xff]  }
 0x45a   : > { %8185 = vmatpush2.bf16.msra.mxu0 %v11188_v4  ;;  %8227 = vmatprep.subr.bf16.mxu1 %v11193_v11  ;;  %v11259_v4 = vld [vmem:[#allocation10 + $0xc14] ss:$24 sps:$4 sm:$0xff]  }
 0x45b   : > { %8186 = vmatprep.subr.bf16.mxu0 %v11196_v7  ;;  %v11262_v11 = vld [vmem:[#allocation10 + $0x914] ss:$24 sps:$4 sm:$0xff]   ;;  %v11257_v7 = vld [vmem:[#allocation10 + $0xc10] ss:$24 sps:$4 sm:$0xff]  }
 0x45d   : > { %8228 = vmatpush2.bf16.msra.mxu1 %v11191_v38  ;;  %v11260_v38 = vld [vmem:[#allocation10 + $0x910] ss:$24 sps:$4 sm:$0xff]  }
 0x45e   : > { %8187 = vmatpush2.bf16.msra.mxu0 %v11194_v2  ;;  %8229 = vmatprep.subr.bf16.mxu1 %v11199_v9  ;;  %v11265_v2 = vld [vmem:[#allocation10 + $0xee4] ss:$24 sps:$4 sm:$0xff]  }
 0x45f   : > { %8188 = vmatprep.subr.bf16.mxu0 %v11202_v39  ;;  %v11268_v9 = vld [vmem:[#allocation10 + $0xbe4] ss:$24 sps:$4 sm:$0xff]   ;;  %v11263_v39 = vld [vmem:[#allocation10 + $0xee0] ss:$24 sps:$4 sm:$0xff]  }
 0x461   : > { %8230 = vmatpush2.bf16.msra.mxu1 %v11197_v5  ;;  %v11266_v5 = vld [vmem:[#allocation10 + $0xbe0] ss:$24 sps:$4 sm:$0xff]  }
 0x462   : > { %8189 = vmatpush2.bf16.msra.mxu0 %v11200_v15  ;;  %8231 = vmatprep.subr.bf16.mxu1 %v11205_v10  ;;  %v11271_v15 = vld [vmem:[#allocation10 + $0xeb4] ss:$24 sps:$4 sm:$0xff]  }
 0x463   : > { %8190 = vmatprep.subr.bf16.mxu0 %v11208_v16  ;;  %v11274_v10 = vld [vmem:[#allocation10 + $0xbb4] ss:$24 sps:$4 sm:$0xff]  }
 0x465   : > { %8232 = vmatpush2.bf16.msra.mxu1 %v11203_v35  ;;  %v11269_v35 = vld [vmem:[#allocation10 + $0xeb0] ss:$24 sps:$4 sm:$0xff]  }
 0x466   : > { %8191 = vmatpush2.bf16.msra.mxu0 %v11206_v31  ;;  %8233 = vmatprep.subr.bf16.mxu1 %v11211_v54  ;;  %v11272_v54 = vld [vmem:[#allocation10 + $0xbb0] ss:$24 sps:$4 sm:$0xff]  }
 0x467   : > { %8192 = vmatprep.subr.bf16.mxu0 %v11214_v8  ;;  %v11277_v8 = vld [vmem:[#allocation10 + $0xe84] ss:$24 sps:$4 sm:$0xff]  }
 0x469   : > { %8234 = vmatpush2.bf16.msra.mxu1 %v11209_v19  ;;  %v11280_v19 = vld [vmem:[#allocation10 + $0xb84] ss:$24 sps:$4 sm:$0xff]  }
 0x46a   : > { %8193 = vmatpush2.bf16.msra.mxu0 %v11212_v34  ;;  %8285 = vmatprep.subr.bf16.mxu1 %v11217_v58  ;;  %v11275_v58 = vld [vmem:[#allocation10 + $0xe80] ss:$24 sps:$4 sm:$0xff]  }
 0x46b   : > { %8244 = vmatprep.subr.bf16.mxu0 %v11220_v18 }
 0x46c   : > { %8236 = vmatmul.mubr.bf16.vlgmr.msra.gmra.mxu1 %v11920_v0  ;;  %v11232_v0 = vld [vmem:[#allocation10 + $0xa04] ss:$24 sps:$4 sm:$0xff]  }
 0x46d   : > { %v7909_v28 = vpop.f32.mrf.mxu0  ;;  %8195 = vmatmul.mubr.bf16.vlgmr.msra.gmra.mxu0 %v11913_v21  ;;  %8286 = vmatpush1.bf16.msra.mxu1 %v11215_v52  ;;  %v11227_v21 = vld [vmem:[#allocation10 + $0xd00] ss:$24 sps:$4 sm:$0xff]  }
 0x46e   : > { %v7910_v30 = vadd.f32 %v7909_v28, %v4970_v23  ;;  %8317 = vmatprep.mubr.bf16.mxu1 %v11950_v14  ;;  %8245 = vmatpush1.bf16.msra.mxu0 %v11218_v50  ;;  %v11235_v14 = vld [vmem:[#allocation10 + $0xcd4] ss:$24 sps:$4 sm:$0xff]   ;;  %v11278_v52 = vld [vmem:[#allocation10 + $0xb80] ss:$24 sps:$4 sm:$0xff]   ;;  %v11292_v28 = vld [vmem:[#allocation10 + $0xb24] ss:$24 sps:$4 sm:$0xff]  }
 0x46f   : > { %8276 = vmatprep.mubr.bf16.mxu0 %v11915_v36  ;;  %v7911_v33 = vpop.f32.mrf.mxu0  ;;  %8287 = vmatprep.subr.bf16.mxu1 %v11223_v57  ;;  %v11238_v36 = vld [vmem:[#allocation10 + $0x9d4] ss:$24 sps:$4 sm:$0xff]   ;;  %v11281_v57 = vld [vmem:[#allocation10 + $0xe50] ss:$24 sps:$4 sm:$0xff]  }
 0x470   : > { %v7912_v37 = vadd.f32 %v7911_v33, %v4974_v24  ;;  %8246 = vmatprep.subr.bf16.mxu0 %v11226_v25  ;;  %v12045_v22 = vadd.f32 %v12031_v63, %v7910_v30  ;;  %v11241_v63 = vld [vmem:[#allocation10 + $0xca4] ss:$24 sps:$4 sm:$0xff]   ;;  %v11283_v23 = vld [vmem:[#allocation10 + $0xe54] ss:$24 sps:$4 sm:$0xff]   ;;  %v11284_v24 = vld [vmem:[#allocation10 + $0xb50] ss:$24 sps:$4 sm:$0xff]  }
 0x471   : > { %v7913_v53 = vpop.f32.mrf.mxu0  ;;  %8288 = vmatpush1.bf16.msra.mxu1 %v11221_v47  ;;  %v11286_v50 = vld [vmem:[#allocation10 + $0xb54] ss:$24 sps:$4 sm:$0xff]   ;;  %v11289_v25 = vld [vmem:[#allocation10 + $0xe24] ss:$24 sps:$4 sm:$0xff]   ;;  %v11287_v47 = vld [vmem:[#allocation10 + $0xe20] ss:$24 sps:$4 sm:$0xff]  }
 0x472   : > { %8247 = vmatpush1.bf16.msra.mxu0 %v11224_v20  ;;  %8289 = vmatprep.subr.bf16.mxu1 %v11229_v32  ;;  %v12048_v40 = vadd.f32 %v12033_v56, %v7912_v37  ;;  %v11250_v56 = vld [vmem:[#allocation10 + $0x974] ss:$24 sps:$4 sm:$0xff]   ;;  %v11290_v30 = vld [vmem:[#allocation10 + $0xb20] ss:$24 sps:$4 sm:$0xff]   ;;  %v11293_v33 = vld [vmem:[#allocation10 + $0xdf0] ss:$24 sps:$4 sm:$0xff]  }
 0x473   : > { %v7914_v48 = vpop.f32.mrf.mxu0  ;;  %8248 = vmatprep.subr.bf16.mxu0 %v11232_v0  ;;  %v11295_v20 = vld [vmem:[#allocation10 + $0xdf4] ss:$24 sps:$4 sm:$0xff]   ;;  %v11296_v0 = vld [vmem:[#allocation10 + $0xaf0] ss:$24 sps:$4 sm:$0xff]   ;;  %v11301_v37 = vld [vmem:[#allocation10 + $0xdc4] ss:$24 sps:$4 sm:$0xff]  }
 0x474   : > { %v11298_v32 = vld [vmem:[#allocation10 + $0xaf4] ss:$24 sps:$4 sm:$0xff]   ;;  %v11304_v53 = vld [vmem:[#allocation10 + $0xac4] ss:$24 sps:$4 sm:$0xff]  }
 0x475   : > { %8290 = vmatpush1.bf16.msra.mxu1 %v11227_v21  ;;  %v11299_v21 = vld [vmem:[#allocation10 + $0xdc0] ss:$24 sps:$4 sm:$0xff]   ;;  %v11310_v48 = vld [vmem:[#allocation10 + $0xa94] ss:$24 sps:$4 sm:$0xff]  }
 0x476   : > { %8249 = vmatpush1.bf16.msra.mxu0 %v11230_v13  ;;  %8291 = vmatprep.subr.bf16.mxu1 %v11235_v14  ;;  %v11302_v13 = vld [vmem:[#allocation10 + $0xac0] ss:$24 sps:$4 sm:$0xff]   ;;  %v11307_v14 = vld [vmem:[#allocation10 + $0xd94] ss:$24 sps:$4 sm:$0xff]  }
 0x477   : > { %8250 = vmatprep.subr.bf16.mxu0 %v11238_v36  ;;  %v11305_v36 = vld [vmem:[#allocation10 + $0xd90] ss:$24 sps:$4 sm:$0xff]  }
 0x479   : > { %8292 = vmatpush1.bf16.msra.mxu1 %v11233_v60  ;;  %v11308_v60 = vld [vmem:[#allocation10 + $0xa90] ss:$24 sps:$4 sm:$0xff]  }
 0x47a   : > { %8251 = vmatpush1.bf16.msra.mxu0 %v11236_v41  ;;  %8293 = vmatprep.subr.bf16.mxu1 %v11241_v63  ;;  %v11313_v41 = vld [vmem:[#allocation10 + $0x1064] ss:$24 sps:$4 sm:$0xff]   ;;  %v11311_v63 = vld [vmem:[#allocation10 + $0x1060] ss:$24 sps:$4 sm:$0xff]  }
 0x47b   : > { %8252 = vmatprep.subr.bf16.mxu0 %v11244_v44  ;;  %v11316_v44 = vld [vmem:[#allocation10 + $0x1034] ss:$24 sps:$4 sm:$0xff]  }
 0x47d   : > { %8294 = vmatpush1.bf16.msra.mxu1 %v11239_v45 }
 0x47e   : > { %8253 = vmatpush1.bf16.msra.mxu0 %v11242_v46  ;;  %8295 = vmatprep.subr.bf16.mxu1 %v11247_v49 }
 0x47f   : > { %8254 = vmatprep.subr.bf16.mxu0 %v11250_v56 }
 0x481   : > { %8296 = vmatpush1.bf16.msra.mxu1 %v11245_v59  ;;  %v11314_v59 = vld [vmem:[#allocation10 + $0x1030] ss:$24 sps:$4 sm:$0xff]  }
 0x482   : > { %8255 = vmatpush1.bf16.msra.mxu0 %v11248_v17  ;;  %8297 = vmatprep.subr.bf16.mxu1 %v11253_v6  ;;  %v11319_v6 = vld [vmem:[#allocation10 + $0x1004] ss:$24 sps:$4 sm:$0xff]  }
 0x483   : > { %8256 = vmatprep.subr.bf16.mxu0 %v11256_v55 }
 0x485   : > { %8298 = vmatpush1.bf16.msra.mxu1 %v11251_v61 }
 0x486   : > { %8257 = vmatpush1.bf16.msra.mxu0 %v11254_v27  ;;  %8299 = vmatprep.subr.bf16.mxu1 %v11259_v4 }
 0x487   : > { %8258 = vmatprep.subr.bf16.mxu0 %v11262_v11  ;;  %v11317_v11 = vld [vmem:[#allocation10 + $0x1000] ss:$24 sps:$4 sm:$0xff]  }
 0x489   : > { %8300 = vmatpush1.bf16.msra.mxu1 %v11257_v7  ;;  %v11322_v7 = vld [vmem:[#allocation10 + $0xfd4] ss:$24 sps:$4 sm:$0xff]  }
 0x48a   : > { %8259 = vmatpush1.bf16.msra.mxu0 %v11260_v38  ;;  %8301 = vmatprep.subr.bf16.mxu1 %v11265_v2  ;;  %v11320_v38 = vld [vmem:[#allocation10 + $0xfd0] ss:$24 sps:$4 sm:$0xff]   ;;  %v11323_v2 = vld [vmem:[#allocation10 + $0xfa0] ss:$24 sps:$4 sm:$0xff]  }
 0x48b   : > { %8260 = vmatprep.subr.bf16.mxu0 %v11268_v9  ;;  %v11326_v9 = vld [vmem:[#allocation10 + $0xf70] ss:$24 sps:$4 sm:$0xff]  }
 0x48c   : > { %v12050_v16 = vpop.f32.mrf.mxu1 }
 0x48d   : > { %8302 = vmatpush2.bf16.msra.mxu1 %v11263_v39  ;;  %v11331_v39 = vld [vmem:[#allocation10 + $0xf44] ss:$24 sps:$4 sm:$0xff]  }
 0x48e   : > { %v12052_v31 = vpop.f32.mrf.mxu1  ;;  %8261 = vmatpush2.bf16.msra.mxu0 %v11266_v5  ;;  %8303 = vmatprep.subr.bf16.mxu1 %v11271_v15  ;;  %v11329_v5 = vld [vmem:[#allocation10 + $0xf40] ss:$24 sps:$4 sm:$0xff]   ;;  %v11334_v15 = vld [vmem:[#allocation10 + $0xf14] ss:$24 sps:$4 sm:$0xff]  }
 0x48f   : > { %8262 = vmatprep.subr.bf16.mxu0 %v11274_v10  ;;  %v11332_v10 = vld [vmem:[#allocation10 + $0xf10] ss:$24 sps:$4 sm:$0xff]  }
 0x490   : > { %v8036_v34 = vpop.f32.mrf.mxu1 }
 0x491   : > { %8304 = vmatpush2.bf16.msra.mxu1 %v11269_v35  ;;  %v11339_v34 = vld [vmem:[%s11759_s11 + $0x10] sm:$0xff] }
 0x492   : > { %v8037_v18 = vpop.f32.mrf.mxu1  ;;  %8263 = vmatpush2.bf16.msra.mxu0 %v11272_v54  ;;  %8305 = vmatprep.subr.bf16.mxu1 %v11277_v8 }
 0x493   : > { %8264 = vmatprep.subr.bf16.mxu0 %v11280_v19 }
 0x495   : > { %8306 = vmatpush2.bf16.msra.mxu1 %v11275_v58  ;;  %v8377_v58 = vmul.f32 %v11339_v34, %v12007_v29 }
 0x496   : > { %8265 = vmatpush2.bf16.msra.mxu0 %v11278_v52  ;;  %8307 = vmatprep.subr.bf16.mxu1 %v11283_v23 }
 0x497   : > { %8266 = vmatprep.subr.bf16.mxu0 %v11286_v50 }
 0x499   : > { %8308 = vmatpush2.bf16.msra.mxu1 %v11281_v57 }
 0x49a   : > { %8267 = vmatpush2.bf16.msra.mxu0 %v11284_v24  ;;  %8309 = vmatprep.subr.bf16.mxu1 %v11289_v25  ;;  %v11340_v24 = vld [vmem:[%s11759_s11 + $0x18] sm:$0xff] }
 0x49b   : > { %8268 = vmatprep.subr.bf16.mxu0 %v11292_v28 }
 0x49d   : > { %8310 = vmatpush2.bf16.msra.mxu1 %v11287_v47 }
 0x49e   : > { %8269 = vmatpush2.bf16.msra.mxu0 %v11290_v30  ;;  %8311 = vmatprep.subr.bf16.mxu1 %v11295_v20 }
 0x49f   : > { %8270 = vmatprep.subr.bf16.mxu0 %v11298_v32  ;;  %v11341_v32 = vld [vmem:[#allocation12] sm:$0x3f] }
 0x4a1   : > { %8312 = vmatpush2.bf16.msra.mxu1 %v11293_v33  ;;  %v4978_v33 = vrot.slane %v11341_v32, %v947_v62 }
 0x4a2   : > { %8271 = vmatpush2.bf16.msra.mxu0 %v11296_v0  ;;  %8313 = vmatprep.subr.bf16.mxu1 %v11301_v37  ;;  %v4982_v0 = vrot.slane %v11341_v32, %v951_v3 }
 0x4a3   : > { %8272 = vmatprep.subr.bf16.mxu0 %v11304_v53 }
 0x4a5   : > { %8314 = vmatpush2.bf16.msra.mxu1 %v11299_v21 }
 0x4a6   : > { %8273 = vmatpush2.bf16.msra.mxu0 %v11302_v13  ;;  %8315 = vmatprep.subr.bf16.mxu1 %v11307_v14 }
 0x4a7   : > { %8274 = vmatprep.subr.bf16.mxu0 %v11310_v48 }
 0x4a9   : > { %8316 = vmatpush2.bf16.msra.mxu1 %v11305_v36 }
 0x4aa   : > { %8275 = vmatpush2.bf16.msra.mxu0 %v11308_v60 }
 0x4ab   : > { %8326 = vmatprep.subr.bf16.mxu0 %v11313_v41 }
 0x4ac   : > { %v8114_v45 = vpop.f32.mrf.mxu1  ;;  %8318 = vmatmul.mubr.bf16.vlgmr.msra.gmra.mxu1 %v11952_v12 }
 0x4ad   : > { %v7991_v46 = vpop.f32.mrf.mxu0  ;;  %8277 = vmatmul.mubr.bf16.vlgmr.msra.gmra.mxu0 %v11932_v51 }
 0x4ae   : > { %v7992_v49 = vadd.f32 %v7991_v46, %v12045_v22  ;;  %v8116_v56 = vpop.f32.mrf.mxu1  ;;  %8327 = vmatpush1.bf16.msra.mxu0 %v11311_v63  ;;  %8358 = vmatprep.mubr.bf16.mxu0 %v11575_v1  ;;  %v11325_v1 = vld [vmem:[#allocation10 + $0xfa4] ss:$24 sps:$4 sm:$0xff]  }
 0x4af   : > { %v7993_v17 = vpop.f32.mrf.mxu0  ;;  %8328 = vmatprep.subr.bf16.mxu0 %v11316_v44 }
 0x4b0   : > { %v7994_v55 = vadd.f32 %v7993_v17, %v12048_v40  ;;  %v8118_v61 = vpop.f32.mrf.mxu1  ;;  %v8033_v27 = vadd.f32 %v12050_v16, %v7992_v49  ;;  %v11328_v40 = vld [vmem:[#allocation10 + $0xf74] ss:$24 sps:$4 sm:$0xff]  }
 0x4b1   : > { %v7995_v4 = vpop.f32.mrf.mxu0 }
 0x4b2   : > { %v8119_v12 = vpop.f32.mrf.mxu1  ;;  %8329 = vmatpush1.bf16.msra.mxu0 %v11314_v59  ;;  %v8035_v51 = vadd.f32 %v12052_v31, %v7994_v55 }
 0x4b3   : > { %v7996_v22 = vpop.f32.mrf.mxu0  ;;  %8330 = vmatprep.subr.bf16.mxu0 %v11319_v6 }
 0x4b6   : > { %8331 = vmatpush1.bf16.msra.mxu0 %v11317_v11 }
 0x4b7   : > { %8332 = vmatprep.subr.bf16.mxu0 %v11322_v7 }
 0x4ba   : > { %8333 = vmatpush1.bf16.msra.mxu0 %v11320_v38 }
 0x4bb   : > { %8334 = vmatprep.subr.bf16.mxu0 %v11325_v1 }
 0x4be   : > { %8335 = vmatpush1.bf16.msra.mxu0 %v11323_v2 }
 0x4bf   : > { %8336 = vmatprep.subr.bf16.mxu0 %v11328_v40  ;;  %v11343_v40 = vld [vmem:[%s11759_s11 + $0x28] sm:$0xff] }
 0x4c2   : > { %8337 = vmatpush1.bf16.msra.mxu0 %v11326_v9  ;;  %v8380_v9 = vmul.f32 %v11343_v40, %v12007_v29 }
 0x4c3   : > { %8338 = vmatprep.subr.bf16.mxu0 %v11331_v39 }
 0x4c6   : > { %8339 = vmatpush1.bf16.msra.mxu0 %v11329_v5 }
 0x4c7   : > { %8340 = vmatprep.subr.bf16.mxu0 %v11334_v15 }
 0x4ca   : > { %8341 = vmatpush1.bf16.msra.mxu0 %v11332_v10 }
 0x4cd   : > { %8359 = vmatmul.mubr.bf16.vlgmr.msra.gmra.mxu0 %v11961_v43  ;;  %v8378_v43 = vmul.f32 %v11340_v24, %v12007_v29 }
 0x4ec   : > { %v8155_v16 = vpop.f32.mrf.mxu1 }
 0x4ed   : > { %v8073_v35 = vpop.f32.mrf.mxu0  ;;  %v8156_v37 = vadd.f32 %v8155_v16, %v4978_v33 }
 0x4ee   : > { %v8074_v31 = vadd.f32 %v8073_v35, %v8033_v27  ;;  %v8157_v54 = vpop.f32.mrf.mxu1 }
 0x4ef   : > { %v8075_v8 = vpop.f32.mrf.mxu0  ;;  %v8158_v13 = vadd.f32 %v8157_v54, %v4982_v0 }
 0x4f0   : > { %v8115_v19 = vadd.f32 %v8114_v45, %v8074_v31  ;;  %v8076_v18 = vadd.f32 %v8075_v8, %v8035_v51  ;;  %v8159_v52 = vpop.f32.mrf.mxu1  ;;  %v11342_v51 = vld [vmem:[%s11759_s11 + $0x20] sm:$0xff] }
 0x4f1   : > { %v8077_v23 = vpop.f32.mrf.mxu0  ;;  %v8379_v22 = vmul.f32 %v11342_v51, %v12007_v29 }
 0x4f2   : > { %v8370_v50 = vmul.f32 %v12013_v42, %v8115_v19  ;;  %v8117_v57 = vadd.f32 %v8116_v56, %v8076_v18  ;;  %v8160_v25 = vpop.f32.mrf.mxu1 }
 0x4f3   : > { %v8078_v28 = vpop.f32.mrf.mxu0 }
 0x4f4   : > { %v8383_v47 = vadd.f32 %v8377_v58, %v8370_v50  ;;  %v8371_v30 = vmul.f32 %v12013_v42, %v8117_v57 }
 0x4f6   : > { %8389 = vst [vmem:[%s12027_s13 + $0x10] sm:$0xff] %v8383_v47  ;;  %v8384_v20 = vadd.f32 %v8378_v43, %v8371_v30 }
 0x4f8   : > { %8390 = vst [vmem:[%s12027_s13 + $0x18] sm:$0xff] %v8384_v20 }
 0x52c   : > { %v8237_v53 = vpop.f32.mrf.mxu1 }
 0x52d   : > { %v8196_v21 = vpop.f32.mrf.mxu0 }
 0x52e   : > { %v8197_v14 = vadd.f32 %v8196_v21, %v8156_v37  ;;  %v8239_v48 = vpop.f32.mrf.mxu1 }
 0x52f   : > { %v8198_v36 = vpop.f32.mrf.mxu0 }
 0x530   : > { %v8199_v60 = vadd.f32 %v8198_v36, %v8158_v13  ;;  %v8241_v41 = vpop.f32.mrf.mxu1  ;;  %v8238_v63 = vadd.f32 %v8237_v53, %v8197_v14 }
 0x531   : > { %v8200_v44 = vpop.f32.mrf.mxu0 }
 0x532   : > { %v8242_v45 = vpop.f32.mrf.mxu1  ;;  %v8240_v46 = vadd.f32 %v8239_v48, %v8199_v60 }
 0x533   : > { %v8201_v49 = vpop.f32.mrf.mxu0 }
 0x56c   : > { %v8319_v56 = vpop.f32.mrf.mxu1 }
 0x56d   : > { %v8278_v62 = vpop.f32.mrf.mxu0 }
 0x56e   : > { %v8321_v59 = vpop.f32.mrf.mxu1  ;;  %v8279_v61 = vadd.f32 %v8278_v62, %v8238_v63 }
 0x56f   : > { %v8280_v26 = vpop.f32.mrf.mxu0 }
 0x570   : > { %v8323_v3 = vpop.f32.mrf.mxu1  ;;  %v8281_v27 = vadd.f32 %v8280_v26, %v8240_v46  ;;  %v8320_v4 = vadd.f32 %v8319_v56, %v8279_v61 }
 0x571   : > { %v8282_v17 = vpop.f32.mrf.mxu0 }
 0x572   : > { %v8324_v6 = vpop.f32.mrf.mxu1  ;;  %v8322_v7 = vadd.f32 %v8321_v59, %v8281_v27 }
 0x573   : > { %v8283_v55 = vpop.f32.mrf.mxu0 }
 0x58d   : > { %v8360_v12 = vpop.f32.mrf.mxu0 }
 0x58e   : > { %v8361_v11 = vadd.f32 %v8360_v12, %v8320_v4 }
 0x58f   : > { %v8362_v38 = vpop.f32.mrf.mxu0 }
 0x590   : > { %v8372_v1 = vmul.f32 %v12013_v42, %v8361_v11  ;;  %v8363_v2 = vadd.f32 %v8362_v38, %v8322_v7 }
 0x591   : > { %v8364_v39 = vpop.f32.mrf.mxu0 }
 0x592   : > { %v8385_v5 = vadd.f32 %v8379_v22, %v8372_v1  ;;  %v8373_v15 = vmul.f32 %v12013_v42, %v8363_v2 }
 0x593   : > { %v8365_v10 = vpop.f32.mrf.mxu0 }
 0x594   : > { %8391 = vst [vmem:[%s12027_s13 + $0x20] sm:$0xff] %v8385_v5  ;;  %v8386_v16 = vadd.f32 %v8380_v9, %v8373_v15 }
 0x596   : > { %8392 = vst [vmem:[%s12027_s13 + $0x28] sm:$0xff] %v8386_v16 }
 0x597   : > { %11500 = shalt.err (!%p11497_p5)
}
 0x598   : > { %s11501_s15 = scalar_lea.hbm %s8406_s9, 768  ;;  %s11505_s11 = scalar_lea.hbm %s12124_s6, 1536 }
 0x599   : > { %p11502_p12 = scmp.ne.s32.totalorder %s8406_s9, %s11501_s15  ;;  %p11506_p6 = scmp.lt.s32.totalorder %s8406_s9, %s12124_s6 }
 0x59a   : > { %p11507_p0 = scmp.lt.s32.totalorder %s11505_s11, %s11501_s15 }
 0x59b   : > { %p11503_p3 = pnand %p11502_p12, %p12146_p9 }
 0x59c   : > { %p11508_p7 = por %p11507_p0, %p11506_p6 }
 0x59d   : > { %p11504_p11 = pneg %p11503_p3 }
 0x59f   : > { %p11509_p8 = pnand %p11508_p7, %p11504_p11 }
 0x5a1   : > { %11512 = shalt.err (!%p11509_p8)
}
 0x5a2   : > { %9695 = dma.vmem_to_hbm [thread:$0]  (%p12146_p9), %s8409_s16, 768, %s8406_s9, %s8394_s29  }
 0x5a3 PF: > { %s8420_s13 = sand.u32 1, %s11551_s21   ;;  %p12147_p10 = scmp.ne.s32.totalorder %s12136_s26, 0 }
 0x5a4   : > { %p12148_p4 = scmp.ge.s32.totalorder %s11563_s24, 2  ;;  %s8421_s14 = scalar_lea.sflag [#allocation4], %s8420_s13 }
 0x5a6   : > { %p9718_p1 = pnand %p12148_p4, %p12147_p10 }
 0x5a8   : > { %p9719_p13 = pneg %p9718_p1 }
 0x5aa   : > { %11546 = dma.done.wait (%p9719_p13), %s8421_s14, 768  }
 0x5ab   : > { %11548 = vsyncadd (%p9719_p13), %s8421_s14, 4294966528  ;;  %p22_p2 = scmp.ge.s32.totalorder %s11692_s7, 4   ;;  %s12149_s21 = smov %s11555_s22 }
 0x5ac   : > { %s12150_s22 = smov %s11559_s23  ;;  %s12151_s23 = smov %s11704_s18 }
 0x5ad   : > { %s12152_s24 = smov %s11692_s7  ;;  %24 = sbr.rel (!%p22_p2) target bundleno = 10 (0xa), region = 110 }
 0x5b2   :  { %8426 = vsyncpa [#allocation3], 1 }
 0x5b3   :  { %8428 = vsyncpa [#allocation3 + $0x1], 1 }
 0x5b4   :  { %8429 = vsyncpa [#allocation8], 1 }
 0x5b5   :  { %8430 = vsyncpa [#allocation11], 1 }
 0x5b6   :  { %8431 = vsyncpa [#allocation4], 1 }
 0x5b7   :  { %8433 = vsyncpa [#allocation4 + $0x1], 1 }
 0x5b8   :  { %8434 = vsyncpa [#allocation5], 1 }
 0x5b9   :  { %8436 = vsyncpa [#allocation5 + $0x1], 1 }

</bundles_post_ra>
